<compile_context>
chip_gen: v7x
topology: tpu7x:2x2x1
jax: 0.10.0
libtpu: 0.0.40
codegen_flags: <defaults>
</compile_context>

<pallas_src>
import jax
import jax.numpy as jnp
from jax.experimental import pallas as pl
from jax.experimental.pallas import tpu as pltpu

EPS = 1e-5
LANE = 128


def _resblock_kernel(x_ref, w1_ref, b1_ref, w2_ref, b2_ref, o_ref,
                     pad_ref, taps_ref):
    # x_ref/o_ref: (H, W, Cp) f32   (batch dim squeezed by BlockSpec)
    # w*_ref:      (9*Cp, Cp) f32   (tap-major flattened HWIO weights)
    # b*_ref:      (1, Cp)    f32
    # pad_ref:     (H+2, W+2, Cp) f32 VMEM scratch (reflection-padded act.)
    # taps_ref:    (H*W, 9*Cp)    f32 VMEM scratch (im2col tap matrix)
    H, W, Cp = x_ref.shape
    HW = H * W
    inv_hw = 1.0 / HW

    def reflect_pad_store(a):
        # a: (H, W, Cp) value.  Fill padded scratch with reflection pad = 1.
        pad_ref[1:H + 1, 1:W + 1, :] = a                          # interior
        pad_ref[0:1, 1:W + 1, :] = a[1:2, :, :]                   # top    <- row 1
        pad_ref[H + 1:H + 2, 1:W + 1, :] = a[H - 2:H - 1, :, :]   # bottom <- row H-2
        # column reflection reads already-padded rows -> corners correct
        pad_ref[:, 0:1, :] = pad_ref[:, 2:3, :]                   # left   <- col 1
        pad_ref[:, W + 1:W + 2, :] = pad_ref[:, W - 1:W, :]       # right  <- col W-2

    def conv3x3(w_ref, b_ref):
        # Assemble (HW, 9*Cp) tap matrix in scratch (lane-aligned stores),
        # then one fused MXU matmul with K = 9*Cp.
        t = 0
        for dy in range(3):
            for dx in range(3):
                taps_ref[:, t * Cp:(t + 1) * Cp] = (
                    pad_ref[dy:dy + H, dx:dx + W, :].reshape(HW, Cp))
                t += 1
        return jnp.dot(taps_ref[...], w_ref[...],
                       preferred_element_type=jnp.float32) + b_ref[...]

    def instance_norm(a):
        # a: (HW, Cp); per-channel stats over spatial positions, single pass.
        s = jnp.sum(a, axis=0, keepdims=True)
        sq = jnp.sum(a * a, axis=0, keepdims=True)
        mean = s * inv_hw
        var = jnp.maximum(sq * inv_hw - mean * mean, 0.0)         # biased var
        return (a - mean) * jax.lax.rsqrt(var + EPS)

    reflect_pad_store(x_ref[...])
    y = jnp.maximum(instance_norm(conv3x3(w1_ref, b1_ref)), 0.0)  # ReLU
    reflect_pad_store(y.reshape(H, W, Cp))
    z = instance_norm(conv3x3(w2_ref, b2_ref))
    o_ref[...] = x_ref[...] + z.reshape(H, W, Cp)                 # residual add


def _vmem_limit_bytes(H, W, Cp):
    f32 = 4
    blk = H * W * Cp * f32                       # one activation block
    w = 9 * Cp * Cp * f32                        # one flattened conv weight
    pad = (H + 2) * (W + 2) * Cp * f32           # padded scratch
    taps = 9 * blk                               # tap-matrix scratch
    # in/out blocks + weights double-buffered by the pipeline, plus scratches
    # and live f32 values inside the body.
    est = 2 * 2 * blk + 2 * 2 * w + pad + taps + 8 * blk
    est = int(est * 1.5)                         # headroom
    return max(16 * 2 ** 20, min(est, 48 * 2 ** 20))


def residual_block(x_nchw, w1_hwio, b1, w2_hwio, b2):
    """x_nchw: (N, C, H, W) f32; weights HWIO (3, 3, C, C); biases (C,)."""
    x = jnp.transpose(x_nchw, (0, 2, 3, 1)).astype(jnp.float32)   # -> NHWC
    N, H, W, C = x.shape
    assert H >= 2 and W >= 2, "ReflectionPad2d(1) requires H, W >= 2"

    # Lane-dense channel padding (multiple of 128).
    Cp = ((C + LANE - 1) // LANE) * LANE
    pc = Cp - C
    w1 = w1_hwio.astype(jnp.float32)
    w2 = w2_hwio.astype(jnp.float32)
    b1p = b1.astype(jnp.float32)
    b2p = b2.astype(jnp.float32)
    if pc:
        x = jnp.pad(x, ((0, 0), (0, 0), (0, 0), (0, pc)))
        w1 = jnp.pad(w1, ((0, 0), (0, 0), (0, pc), (0, pc)))
        w2 = jnp.pad(w2, ((0, 0), (0, 0), (0, pc), (0, pc)))
        b1p = jnp.pad(b1p, (0, pc))
        b2p = jnp.pad(b2p, (0, pc))

    # (3,3,Cp,Cp) -> (9*Cp, Cp): row = (dy*3+dx)*Cp + ci, col = co (tap-major),
    # matching the tap-column order built inside the kernel.
    w1f = w1.reshape(9 * Cp, Cp)
    w2f = w2.reshape(9 * Cp, Cp)
    b1r = b1p.reshape(1, Cp)
    b2r = b2p.reshape(1, Cp)

    out = pl.pallas_call(
        _resblock_kernel,
        out_shape=jax.ShapeDtypeStruct((N, H, W, Cp), jnp.float32),
        grid=(N,),
        in_specs=[
            pl.BlockSpec((None, H, W, Cp), lambda n: (n, 0, 0, 0)),
            pl.BlockSpec((9 * Cp, Cp), lambda n: (0, 0)),
            pl.BlockSpec((1, Cp), lambda n: (0, 0)),
            pl.BlockSpec((9 * Cp, Cp), lambda n: (0, 0)),
            pl.BlockSpec((1, Cp), lambda n: (0, 0)),
        ],
        out_specs=pl.BlockSpec((None, H, W, Cp), lambda n: (n, 0, 0, 0)),
        scratch_shapes=[
            pltpu.VMEM((H + 2, W + 2, Cp), jnp.float32),   # reflection-padded act
            pltpu.VMEM((H * W, 9 * Cp), jnp.float32),      # im2col tap matrix
        ],
        compiler_params=pltpu.CompilerParams(
            dimension_semantics=("parallel",),
            vmem_limit_bytes=_vmem_limit_bytes(H, W, Cp),
        ),
    )(x, w1f, b1r, w2f, b2r)

    if pc:
        out = out[..., :C]
    return jnp.transpose(out, (0, 3, 1, 2))                       # -> NCHW


def _reference(x_nchw, w1_hwio, b1, w2_hwio, b2):
    # pure-JAX reference for the correctness check
    x = jnp.transpose(x_nchw, (0, 2, 3, 1))

    def rpad(a):
        return jnp.pad(a, ((0, 0), (1, 1), (1, 1), (0, 0)), mode="reflect")

    def conv(a, w, b):
        return jax.lax.conv_general_dilated(
            rpad(a), w, (1, 1), "VALID",
            dimension_numbers=("NHWC", "HWIO", "NHWC")) + b

    def inorm(a):
        m = jnp.mean(a, axis=(1, 2), keepdims=True)
        v = jnp.mean((a - m) ** 2, axis=(1, 2), keepdims=True)
        return (a - m) * jax.lax.rsqrt(v + EPS)

    y = jnp.maximum(inorm(conv(x, w1_hwio, b1)), 0.0)
    z = inorm(conv(y, w2_hwio, b2))
    return jnp.transpose(x + z, (0, 3, 1, 2))


if __name__ == "__main__":
    N, C, H, W = 2, 4, 16, 16
    key = jax.random.PRNGKey(0)
    kx, kw1, kb1, kw2, kb2 = jax.random.split(key, 5)

    x = jax.random.normal(kx, (N, C, H, W), dtype=jnp.float32)
    # Conv2d(C, C, 3) weights stored directly in HWIO layout (3, 3, Cin, Cout).
    fan_in = C * 3 * 3
    bound = 1.0 / jnp.sqrt(fan_in)
    w1 = jax.random.uniform(kw1, (3, 3, C, C), jnp.float32, -bound, bound)
    b1 = jax.random.uniform(kb1, (C,), jnp.float32, -bound, bound)
    w2 = jax.random.uniform(kw2, (3, 3, C, C), jnp.float32, -bound, bound)
    b2 = jax.random.uniform(kb2, (C,), jnp.float32, -bound, bound)

    out = residual_block(x, w1, b1, w2, b2)
    out = jax.block_until_ready(out)

    ref = jax.block_until_ready(_reference(x, w1, b1, w2, b2))
    assert out.shape == (N, C, H, W)
    assert jnp.allclose(out, ref, atol=2e-4, rtol=2e-4), "mismatch vs reference"

    print("KERNEL_OK")
</pallas_src>

<mosaic_0001>
module attributes {stable_mosaic.version = 11 : i64} {
  func.func @_resblock_kernel(%arg0: i32, %arg1: memref<1x16x16x128xf32, #tpu.memory_space<vmem>>, %arg2: memref<1152x128xf32, #tpu.memory_space<vmem>>, %arg3: memref<1x128xf32, #tpu.memory_space<vmem>>, %arg4: memref<1152x128xf32, #tpu.memory_space<vmem>>, %arg5: memref<1x128xf32, #tpu.memory_space<vmem>>, %arg6: memref<1x16x16x128xf32, #tpu.memory_space<vmem>>, %arg7: memref<18x18x128xf32, #tpu.memory_space<vmem>>, %arg8: memref<256x1152xf32, #tpu.memory_space<vmem>>) attributes {dimension_semantics = [#tpu.dimension_semantics<parallel>], iteration_bounds = array<i64: 2>, scalar_prefetch = 0 : i64, scratch_operands = 2 : i64, tpu.core_type = #tpu.core_type<tc>, window_params = [{transform_indices = @transform_0, window_bounds = array<i64: 1, 16, 16, 128>}, {pipeline_mode = #tpu.pipeline_mode<synchronous>, transform_indices = @transform_1, window_bounds = array<i64: 1152, 128>}, {pipeline_mode = #tpu.pipeline_mode<synchronous>, transform_indices = @transform_2, window_bounds = array<i64: 1, 128>}, {pipeline_mode = #tpu.pipeline_mode<synchronous>, transform_indices = @transform_3, window_bounds = array<i64: 1152, 128>}, {pipeline_mode = #tpu.pipeline_mode<synchronous>, transform_indices = @transform_4, window_bounds = array<i64: 1, 128>}, {transform_indices = @transform_5, window_bounds = array<i64: 1, 16, 16, 128>}]} {
    %c0 = arith.constant 0 : index
    %c0_0 = arith.constant 0 : index
    %c0_1 = arith.constant 0 : index
    %c0_2 = arith.constant 0 : index
    %0 = vector.load %arg1[%c0, %c0_0, %c0_1, %c0_2] : memref<1x16x16x128xf32, #tpu.memory_space<vmem>>, vector<1x16x16x128xf32>
    %1 = vector.shape_cast %0 : vector<1x16x16x128xf32> to vector<16x16x128xf32>
    %c1 = arith.constant 1 : index
    %c1_3 = arith.constant 1 : index
    %c0_4 = arith.constant 0 : index
    %2 = vector.load %arg7[%c1, %c1_3, %c0_4] : memref<18x18x128xf32, #tpu.memory_space<vmem>>, vector<16x16x128xf32>
    tpu.vector_store %arg7[%c1, %c1_3, %c0_4], %1 {strides = array<i32>} : memref<18x18x128xf32, #tpu.memory_space<vmem>>, vector<16x16x128xf32>,
    %3 = vector.extract_strided_slice %1 {offsets = [1, 0, 0], sizes = [1, 16, 128], strides = [1, 1, 1]} : vector<16x16x128xf32> to vector<1x16x128xf32>
    %c0_5 = arith.constant 0 : index
    %c1_6 = arith.constant 1 : index
    %c0_7 = arith.constant 0 : index
    %4 = vector.load %arg7[%c0_5, %c1_6, %c0_7] : memref<18x18x128xf32, #tpu.memory_space<vmem>>, vector<1x16x128xf32>
    tpu.vector_store %arg7[%c0_5, %c1_6, %c0_7], %3 {strides = array<i32>} : memref<18x18x128xf32, #tpu.memory_space<vmem>>, vector<1x16x128xf32>,
    %5 = vector.extract_strided_slice %1 {offsets = [14, 0, 0], sizes = [1, 16, 128], strides = [1, 1, 1]} : vector<16x16x128xf32> to vector<1x16x128xf32>
    %c17 = arith.constant 17 : index
    %c1_8 = arith.constant 1 : index
    %c0_9 = arith.constant 0 : index
    %6 = vector.load %arg7[%c17, %c1_8, %c0_9] : memref<18x18x128xf32, #tpu.memory_space<vmem>>, vector<1x16x128xf32>
    tpu.vector_store %arg7[%c17, %c1_8, %c0_9], %5 {strides = array<i32>} : memref<18x18x128xf32, #tpu.memory_space<vmem>>, vector<1x16x128xf32>,
    %c0_10 = arith.constant 0 : index
    %c2 = arith.constant 2 : index
    %c0_11 = arith.constant 0 : index
    %7 = vector.load %arg7[%c0_10, %c2, %c0_11] : memref<18x18x128xf32, #tpu.memory_space<vmem>>, vector<18x1x128xf32>
    %c0_12 = arith.constant 0 : index
    %c0_13 = arith.constant 0 : index
    %c0_14 = arith.constant 0 : index
    %8 = vector.load %arg7[%c0_12, %c0_13, %c0_14] : memref<18x18x128xf32, #tpu.memory_space<vmem>>, vector<18x1x128xf32>
    tpu.vector_store %arg7[%c0_12, %c0_13, %c0_14], %7 {strides = array<i32>} : memref<18x18x128xf32, #tpu.memory_space<vmem>>, vector<18x1x128xf32>,
    %c0_15 = arith.constant 0 : index
    %c15 = arith.constant 15 : index
    %c0_16 = arith.constant 0 : index
    %9 = vector.load %arg7[%c0_15, %c15, %c0_16] : memref<18x18x128xf32, #tpu.memory_space<vmem>>, vector<18x1x128xf32>
    %c0_17 = arith.constant 0 : index
    %c17_18 = arith.constant 17 : index
    %c0_19 = arith.constant 0 : index
    %10 = vector.load %arg7[%c0_17, %c17_18, %c0_19] : memref<18x18x128xf32, #tpu.memory_space<vmem>>, vector<18x1x128xf32>
    tpu.vector_store %arg7[%c0_17, %c17_18, %c0_19], %9 {strides = array<i32>} : memref<18x18x128xf32, #tpu.memory_space<vmem>>, vector<18x1x128xf32>,
    %c0_20 = arith.constant 0 : index
    %c0_21 = arith.constant 0 : index
    %c0_22 = arith.constant 0 : index
    %11 = vector.load %arg7[%c0_20, %c0_21, %c0_22] : memref<18x18x128xf32, #tpu.memory_space<vmem>>, vector<16x16x128xf32>
    %12 = vector.shape_cast %11 : vector<16x16x128xf32> to vector<256x128xf32>
    %c0_23 = arith.constant 0 : index
    %c0_24 = arith.constant 0 : index
    %13 = vector.load %arg8[%c0_23, %c0_24] : memref<256x1152xf32, #tpu.memory_space<vmem>>, vector<256x128xf32>
    tpu.vector_store %arg8[%c0_23, %c0_24], %12 {strides = array<i32>} : memref<256x1152xf32, #tpu.memory_space<vmem>>, vector<256x128xf32>,
    %c0_25 = arith.constant 0 : index
    %c1_26 = arith.constant 1 : index
    %c0_27 = arith.constant 0 : index
    %14 = vector.load %arg7[%c0_25, %c1_26, %c0_27] : memref<18x18x128xf32, #tpu.memory_space<vmem>>, vector<16x16x128xf32>
    %15 = vector.shape_cast %14 : vector<16x16x128xf32> to vector<256x128xf32>
    %c0_28 = arith.constant 0 : index
    %c128 = arith.constant 128 : index
    %16 = vector.load %arg8[%c0_28, %c128] : memref<256x1152xf32, #tpu.memory_space<vmem>>, vector<256x128xf32>
    tpu.vector_store %arg8[%c0_28, %c128], %15 {strides = array<i32>} : memref<256x1152xf32, #tpu.memory_space<vmem>>, vector<256x128xf32>,
    %c0_29 = arith.constant 0 : index
    %c2_30 = arith.constant 2 : index
    %c0_31 = arith.constant 0 : index
    %17 = vector.load %arg7[%c0_29, %c2_30, %c0_31] : memref<18x18x128xf32, #tpu.memory_space<vmem>>, vector<16x16x128xf32>
    %18 = vector.shape_cast %17 : vector<16x16x128xf32> to vector<256x128xf32>
    %c0_32 = arith.constant 0 : index
    %c256 = arith.constant 256 : index
    %19 = vector.load %arg8[%c0_32, %c256] : memref<256x1152xf32, #tpu.memory_space<vmem>>, vector<256x128xf32>
    tpu.vector_store %arg8[%c0_32, %c256], %18 {strides = array<i32>} : memref<256x1152xf32, #tpu.memory_space<vmem>>, vector<256x128xf32>,
    %c1_33 = arith.constant 1 : index
    %c0_34 = arith.constant 0 : index
    %c0_35 = arith.constant 0 : index
    %20 = vector.load %arg7[%c1_33, %c0_34, %c0_35] : memref<18x18x128xf32, #tpu.memory_space<vmem>>, vector<16x16x128xf32>
    %21 = vector.shape_cast %20 : vector<16x16x128xf32> to vector<256x128xf32>
    %c0_36 = arith.constant 0 : index
    %c384 = arith.constant 384 : index
    %22 = vector.load %arg8[%c0_36, %c384] : memref<256x1152xf32, #tpu.memory_space<vmem>>, vector<256x128xf32>
    tpu.vector_store %arg8[%c0_36, %c384], %21 {strides = array<i32>} : memref<256x1152xf32, #tpu.memory_space<vmem>>, vector<256x128xf32>,
    %c1_37 = arith.constant 1 : index
    %c1_38 = arith.constant 1 : index
    %c0_39 = arith.constant 0 : index
    %23 = vector.load %arg7[%c1_37, %c1_38, %c0_39] : memref<18x18x128xf32, #tpu.memory_space<vmem>>, vector<16x16x128xf32>
    %24 = vector.shape_cast %23 : vector<16x16x128xf32> to vector<256x128xf32>
    %c0_40 = arith.constant 0 : index
    %c512 = arith.constant 512 : index
    %25 = vector.load %arg8[%c0_40, %c512] : memref<256x1152xf32, #tpu.memory_space<vmem>>, vector<256x128xf32>
    tpu.vector_store %arg8[%c0_40, %c512], %24 {strides = array<i32>} : memref<256x1152xf32, #tpu.memory_space<vmem>>, vector<256x128xf32>,
    %c1_41 = arith.constant 1 : index
    %c2_42 = arith.constant 2 : index
    %c0_43 = arith.constant 0 : index
    %26 = vector.load %arg7[%c1_41, %c2_42, %c0_43] : memref<18x18x128xf32, #tpu.memory_space<vmem>>, vector<16x16x128xf32>
    %27 = vector.shape_cast %26 : vector<16x16x128xf32> to vector<256x128xf32>
    %c0_44 = arith.constant 0 : index
    %c640 = arith.constant 640 : index
    %28 = vector.load %arg8[%c0_44, %c640] : memref<256x1152xf32, #tpu.memory_space<vmem>>, vector<256x128xf32>
    tpu.vector_store %arg8[%c0_44, %c640], %27 {strides = array<i32>} : memref<256x1152xf32, #tpu.memory_space<vmem>>, vector<256x128xf32>,
    %c2_45 = arith.constant 2 : index
    %c0_46 = arith.constant 0 : index
    %c0_47 = arith.constant 0 : index
    %29 = vector.load %arg7[%c2_45, %c0_46, %c0_47] : memref<18x18x128xf32, #tpu.memory_space<vmem>>, vector<16x16x128xf32>
    %30 = vector.shape_cast %29 : vector<16x16x128xf32> to vector<256x128xf32>
    %c0_48 = arith.constant 0 : index
    %c768 = arith.constant 768 : index
    %31 = vector.load %arg8[%c0_48, %c768] : memref<256x1152xf32, #tpu.memory_space<vmem>>, vector<256x128xf32>
    tpu.vector_store %arg8[%c0_48, %c768], %30 {strides = array<i32>} : memref<256x1152xf32, #tpu.memory_space<vmem>>, vector<256x128xf32>,
    %c2_49 = arith.constant 2 : index
    %c1_50 = arith.constant 1 : index
    %c0_51 = arith.constant 0 : index
    %32 = vector.load %arg7[%c2_49, %c1_50, %c0_51] : memref<18x18x128xf32, #tpu.memory_space<vmem>>, vector<16x16x128xf32>
    %33 = vector.shape_cast %32 : vector<16x16x128xf32> to vector<256x128xf32>
    %c0_52 = arith.constant 0 : index
    %c896 = arith.constant 896 : index
    %34 = vector.load %arg8[%c0_52, %c896] : memref<256x1152xf32, #tpu.memory_space<vmem>>, vector<256x128xf32>
    tpu.vector_store %arg8[%c0_52, %c896], %33 {strides = array<i32>} : memref<256x1152xf32, #tpu.memory_space<vmem>>, vector<256x128xf32>,
    %c2_53 = arith.constant 2 : index
    %c2_54 = arith.constant 2 : index
    %c0_55 = arith.constant 0 : index
    %35 = vector.load %arg7[%c2_53, %c2_54, %c0_55] : memref<18x18x128xf32, #tpu.memory_space<vmem>>, vector<16x16x128xf32>
    %36 = vector.shape_cast %35 : vector<16x16x128xf32> to vector<256x128xf32>
    %c0_56 = arith.constant 0 : index
    %c1024 = arith.constant 1024 : index
    %37 = vector.load %arg8[%c0_56, %c1024] : memref<256x1152xf32, #tpu.memory_space<vmem>>, vector<256x128xf32>
    tpu.vector_store %arg8[%c0_56, %c1024], %36 {strides = array<i32>} : memref<256x1152xf32, #tpu.memory_space<vmem>>, vector<256x128xf32>,
    %c0_57 = arith.constant 0 : index
    %c0_58 = arith.constant 0 : index
    %38 = vector.load %arg8[%c0_57, %c0_58] : memref<256x1152xf32, #tpu.memory_space<vmem>>, vector<256x1152xf32>
    %c0_59 = arith.constant 0 : index
    %c0_60 = arith.constant 0 : index
    %39 = vector.load %arg2[%c0_59, %c0_60] : memref<1152x128xf32, #tpu.memory_space<vmem>>, vector<1152x128xf32>
    %cst = arith.constant dense<0.000000e+00> : vector<256x128xf32>
    %40 = tpu.matmul %38, %39, %cst {dimension_numbers = #tpu.dot_dimension_numbers<[1], [0], [0], [1], [0, 0, 1, 1], [], []>} : vector<256x1152xf32>, vector<1152x128xf32>, vector<256x128xf32> -> vector<256x128xf32>
    %c0_61 = arith.constant 0 : index
    %c0_62 = arith.constant 0 : index
    %41 = vector.load %arg3[%c0_61, %c0_62] : memref<1x128xf32, #tpu.memory_space<vmem>>, vector<1x128xf32>
    %42 = vector.broadcast %41 : vector<1x128xf32> to vector<256x128xf32>
    %43 = arith.addf %40, %42 : vector<256x128xf32>
    %cst_63 = arith.constant dense<0.000000e+00> : vector<128xf32>
    %44 = vector.multi_reduction <add>, %43, %cst_63 [0] : vector<256x128xf32> to vector<128xf32>
    %45 = vector.shape_cast %44 : vector<128xf32> to vector<1x128xf32>
    %46 = arith.mulf %43, %43 : vector<256x128xf32>
    %cst_64 = arith.constant dense<0.000000e+00> : vector<128xf32>
    %47 = vector.multi_reduction <add>, %46, %cst_64 [0] : vector<256x128xf32> to vector<128xf32>
    %48 = vector.shape_cast %47 : vector<128xf32> to vector<1x128xf32>
    %cst_65 = arith.constant 3.906250e-03 : f32
    %49 = vector.broadcast %cst_65 : f32 to vector<1x128xf32>
    %50 = arith.mulf %45, %49 : vector<1x128xf32>
    %cst_66 = arith.constant 3.906250e-03 : f32
    %51 = vector.broadcast %cst_66 : f32 to vector<1x128xf32>
    %52 = arith.mulf %48, %51 : vector<1x128xf32>
    %53 = arith.mulf %50, %50 : vector<1x128xf32>
    %54 = arith.subf %52, %53 : vector<1x128xf32>
    %cst_67 = arith.constant 0.000000e+00 : f32
    %55 = vector.broadcast %cst_67 : f32 to vector<1x128xf32>
    %56 = arith.maximumf %54, %55 : vector<1x128xf32>
    %57 = vector.broadcast %50 : vector<1x128xf32> to vector<256x128xf32>
    %58 = arith.subf %43, %57 : vector<256x128xf32>
    %cst_68 = arith.constant 9.99999974E-6 : f32
    %59 = vector.broadcast %cst_68 : f32 to vector<1x128xf32>
    %60 = arith.addf %56, %59 : vector<1x128xf32>
    %61 = math.rsqrt %60 : vector<1x128xf32>
    %62 = vector.broadcast %61 : vector<1x128xf32> to vector<256x128xf32>
    %63 = arith.mulf %58, %62 : vector<256x128xf32>
    %cst_69 = arith.constant 0.000000e+00 : f32
    %64 = vector.broadcast %cst_69 : f32 to vector<256x128xf32>
    %65 = arith.maximumf %63, %64 : vector<256x128xf32>
    %66 = vector.shape_cast %65 : vector<256x128xf32> to vector<16x16x128xf32>
    %c1_70 = arith.constant 1 : index
    %c1_71 = arith.constant 1 : index
    %c0_72 = arith.constant 0 : index
    %67 = vector.load %arg7[%c1_70, %c1_71, %c0_72] : memref<18x18x128xf32, #tpu.memory_space<vmem>>, vector<16x16x128xf32>
    tpu.vector_store %arg7[%c1_70, %c1_71, %c0_72], %66 {strides = array<i32>} : memref<18x18x128xf32, #tpu.memory_space<vmem>>, vector<16x16x128xf32>,
    %68 = vector.extract_strided_slice %66 {offsets = [1, 0, 0], sizes = [1, 16, 128], strides = [1, 1, 1]} : vector<16x16x128xf32> to vector<1x16x128xf32>
    %c0_73 = arith.constant 0 : index
    %c1_74 = arith.constant 1 : index
    %c0_75 = arith.constant 0 : index
    %69 = vector.load %arg7[%c0_73, %c1_74, %c0_75] : memref<18x18x128xf32, #tpu.memory_space<vmem>>, vector<1x16x128xf32>
    tpu.vector_store %arg7[%c0_73, %c1_74, %c0_75], %68 {strides = array<i32>} : memref<18x18x128xf32, #tpu.memory_space<vmem>>, vector<1x16x128xf32>,
    %70 = vector.extract_strided_slice %66 {offsets = [14, 0, 0], sizes = [1, 16, 128], strides = [1, 1, 1]} : vector<16x16x128xf32> to vector<1x16x128xf32>
    %c17_76 = arith.constant 17 : index
    %c1_77 = arith.constant 1 : index
    %c0_78 = arith.constant 0 : index
    %71 = vector.load %arg7[%c17_76, %c1_77, %c0_78] : memref<18x18x128xf32, #tpu.memory_space<vmem>>, vector<1x16x128xf32>
    tpu.vector_store %arg7[%c17_76, %c1_77, %c0_78], %70 {strides = array<i32>} : memref<18x18x128xf32, #tpu.memory_space<vmem>>, vector<1x16x128xf32>,
    %c0_79 = arith.constant 0 : index
    %c2_80 = arith.constant 2 : index
    %c0_81 = arith.constant 0 : index
    %72 = vector.load %arg7[%c0_79, %c2_80, %c0_81] : memref<18x18x128xf32, #tpu.memory_space<vmem>>, vector<18x1x128xf32>
    %c0_82 = arith.constant 0 : index
    %c0_83 = arith.constant 0 : index
    %c0_84 = arith.constant 0 : index
    %73 = vector.load %arg7[%c0_82, %c0_83, %c0_84] : memref<18x18x128xf32, #tpu.memory_space<vmem>>, vector<18x1x128xf32>
    tpu.vector_store %arg7[%c0_82, %c0_83, %c0_84], %72 {strides = array<i32>} : memref<18x18x128xf32, #tpu.memory_space<vmem>>, vector<18x1x128xf32>,
    %c0_85 = arith.constant 0 : index
    %c15_86 = arith.constant 15 : index
    %c0_87 = arith.constant 0 : index
    %74 = vector.load %arg7[%c0_85, %c15_86, %c0_87] : memref<18x18x128xf32, #tpu.memory_space<vmem>>, vector<18x1x128xf32>
    %c0_88 = arith.constant 0 : index
    %c17_89 = arith.constant 17 : index
    %c0_90 = arith.constant 0 : index
    %75 = vector.load %arg7[%c0_88, %c17_89, %c0_90] : memref<18x18x128xf32, #tpu.memory_space<vmem>>, vector<18x1x128xf32>
    tpu.vector_store %arg7[%c0_88, %c17_89, %c0_90], %74 {strides = array<i32>} : memref<18x18x128xf32, #tpu.memory_space<vmem>>, vector<18x1x128xf32>,
    %c0_91 = arith.constant 0 : index
    %c0_92 = arith.constant 0 : index
    %c0_93 = arith.constant 0 : index
    %76 = vector.load %arg7[%c0_91, %c0_92, %c0_93] : memref<18x18x128xf32, #tpu.memory_space<vmem>>, vector<16x16x128xf32>
    %77 = vector.shape_cast %76 : vector<16x16x128xf32> to vector<256x128xf32>
    %c0_94 = arith.constant 0 : index
    %c0_95 = arith.constant 0 : index
    %78 = vector.load %arg8[%c0_94, %c0_95] : memref<256x1152xf32, #tpu.memory_space<vmem>>, vector<256x128xf32>
    tpu.vector_store %arg8[%c0_94, %c0_95], %77 {strides = array<i32>} : memref<256x1152xf32, #tpu.memory_space<vmem>>, vector<256x128xf32>,
    %c0_96 = arith.constant 0 : index
    %c1_97 = arith.constant 1 : index
    %c0_98 = arith.constant 0 : index
    %79 = vector.load %arg7[%c0_96, %c1_97, %c0_98] : memref<18x18x128xf32, #tpu.memory_space<vmem>>, vector<16x16x128xf32>
    %80 = vector.shape_cast %79 : vector<16x16x128xf32> to vector<256x128xf32>
    %c0_99 = arith.constant 0 : index
    %c128_100 = arith.constant 128 : index
    %81 = vector.load %arg8[%c0_99, %c128_100] : memref<256x1152xf32, #tpu.memory_space<vmem>>, vector<256x128xf32>
    tpu.vector_store %arg8[%c0_99, %c128_100], %80 {strides = array<i32>} : memref<256x1152xf32, #tpu.memory_space<vmem>>, vector<256x128xf32>,
    %c0_101 = arith.constant 0 : index
    %c2_102 = arith.constant 2 : index
    %c0_103 = arith.constant 0 : index
    %82 = vector.load %arg7[%c0_101, %c2_102, %c0_103] : memref<18x18x128xf32, #tpu.memory_space<vmem>>, vector<16x16x128xf32>
    %83 = vector.shape_cast %82 : vector<16x16x128xf32> to vector<256x128xf32>
    %c0_104 = arith.constant 0 : index
    %c256_105 = arith.constant 256 : index
    %84 = vector.load %arg8[%c0_104, %c256_105] : memref<256x1152xf32, #tpu.memory_space<vmem>>, vector<256x128xf32>
    tpu.vector_store %arg8[%c0_104, %c256_105], %83 {strides = array<i32>} : memref<256x1152xf32, #tpu.memory_space<vmem>>, vector<256x128xf32>,
    %c1_106 = arith.constant 1 : index
    %c0_107 = arith.constant 0 : index
    %c0_108 = arith.constant 0 : index
    %85 = vector.load %arg7[%c1_106, %c0_107, %c0_108] : memref<18x18x128xf32, #tpu.memory_space<vmem>>, vector<16x16x128xf32>
    %86 = vector.shape_cast %85 : vector<16x16x128xf32> to vector<256x128xf32>
    %c0_109 = arith.constant 0 : index
    %c384_110 = arith.constant 384 : index
    %87 = vector.load %arg8[%c0_109, %c384_110] : memref<256x1152xf32, #tpu.memory_space<vmem>>, vector<256x128xf32>
    tpu.vector_store %arg8[%c0_109, %c384_110], %86 {strides = array<i32>} : memref<256x1152xf32, #tpu.memory_space<vmem>>, vector<256x128xf32>,
    %c1_111 = arith.constant 1 : index
    %c1_112 = arith.constant 1 : index
    %c0_113 = arith.constant 0 : index
    %88 = vector.load %arg7[%c1_111, %c1_112, %c0_113] : memref<18x18x128xf32, #tpu.memory_space<vmem>>, vector<16x16x128xf32>
    %89 = vector.shape_cast %88 : vector<16x16x128xf32> to vector<256x128xf32>
    %c0_114 = arith.constant 0 : index
    %c512_115 = arith.constant 512 : index
    %90 = vector.load %arg8[%c0_114, %c512_115] : memref<256x1152xf32, #tpu.memory_space<vmem>>, vector<256x128xf32>
    tpu.vector_store %arg8[%c0_114, %c512_115], %89 {strides = array<i32>} : memref<256x1152xf32, #tpu.memory_space<vmem>>, vector<256x128xf32>,
    %c1_116 = arith.constant 1 : index
    %c2_117 = arith.constant 2 : index
    %c0_118 = arith.constant 0 : index
    %91 = vector.load %arg7[%c1_116, %c2_117, %c0_118] : memref<18x18x128xf32, #tpu.memory_space<vmem>>, vector<16x16x128xf32>
    %92 = vector.shape_cast %91 : vector<16x16x128xf32> to vector<256x128xf32>
    %c0_119 = arith.constant 0 : index
    %c640_120 = arith.constant 640 : index
    %93 = vector.load %arg8[%c0_119, %c640_120] : memref<256x1152xf32, #tpu.memory_space<vmem>>, vector<256x128xf32>
    tpu.vector_store %arg8[%c0_119, %c640_120], %92 {strides = array<i32>} : memref<256x1152xf32, #tpu.memory_space<vmem>>, vector<256x128xf32>,
    %c2_121 = arith.constant 2 : index
    %c0_122 = arith.constant 0 : index
    %c0_123 = arith.constant 0 : index
    %94 = vector.load %arg7[%c2_121, %c0_122, %c0_123] : memref<18x18x128xf32, #tpu.memory_space<vmem>>, vector<16x16x128xf32>
    %95 = vector.shape_cast %94 : vector<16x16x128xf32> to vector<256x128xf32>
    %c0_124 = arith.constant 0 : index
    %c768_125 = arith.constant 768 : index
    %96 = vector.load %arg8[%c0_124, %c768_125] : memref<256x1152xf32, #tpu.memory_space<vmem>>, vector<256x128xf32>
    tpu.vector_store %arg8[%c0_124, %c768_125], %95 {strides = array<i32>} : memref<256x1152xf32, #tpu.memory_space<vmem>>, vector<256x128xf32>,
    %c2_126 = arith.constant 2 : index
    %c1_127 = arith.constant 1 : index
    %c0_128 = arith.constant 0 : index
    %97 = vector.load %arg7[%c2_126, %c1_127, %c0_128] : memref<18x18x128xf32, #tpu.memory_space<vmem>>, vector<16x16x128xf32>
    %98 = vector.shape_cast %97 : vector<16x16x128xf32> to vector<256x128xf32>
    %c0_129 = arith.constant 0 : index
    %c896_130 = arith.constant 896 : index
    %99 = vector.load %arg8[%c0_129, %c896_130] : memref<256x1152xf32, #tpu.memory_space<vmem>>, vector<256x128xf32>
    tpu.vector_store %arg8[%c0_129, %c896_130], %98 {strides = array<i32>} : memref<256x1152xf32, #tpu.memory_space<vmem>>, vector<256x128xf32>,
    %c2_131 = arith.constant 2 : index
    %c2_132 = arith.constant 2 : index
    %c0_133 = arith.constant 0 : index
    %100 = vector.load %arg7[%c2_131, %c2_132, %c0_133] : memref<18x18x128xf32, #tpu.memory_space<vmem>>, vector<16x16x128xf32>
    %101 = vector.shape_cast %100 : vector<16x16x128xf32> to vector<256x128xf32>
    %c0_134 = arith.constant 0 : index
    %c1024_135 = arith.constant 1024 : index
    %102 = vector.load %arg8[%c0_134, %c1024_135] : memref<256x1152xf32, #tpu.memory_space<vmem>>, vector<256x128xf32>
    tpu.vector_store %arg8[%c0_134, %c1024_135], %101 {strides = array<i32>} : memref<256x1152xf32, #tpu.memory_space<vmem>>, vector<256x128xf32>,
    %c0_136 = arith.constant 0 : index
    %c0_137 = arith.constant 0 : index
    %103 = vector.load %arg8[%c0_136, %c0_137] : memref<256x1152xf32, #tpu.memory_space<vmem>>, vector<256x1152xf32>
    %c0_138 = arith.constant 0 : index
    %c0_139 = arith.constant 0 : index
    %104 = vector.load %arg4[%c0_138, %c0_139] : memref<1152x128xf32, #tpu.memory_space<vmem>>, vector<1152x128xf32>
    %cst_140 = arith.constant dense<0.000000e+00> : vector<256x128xf32>
    %105 = tpu.matmul %103, %104, %cst_140 {dimension_numbers = #tpu.dot_dimension_numbers<[1], [0], [0], [1], [0, 0, 1, 1], [], []>} : vector<256x1152xf32>, vector<1152x128xf32>, vector<256x128xf32> -> vector<256x128xf32>
    %c0_141 = arith.constant 0 : index
    %c0_142 = arith.constant 0 : index
    %106 = vector.load %arg5[%c0_141, %c0_142] : memref<1x128xf32, #tpu.memory_space<vmem>>, vector<1x128xf32>
    %107 = vector.broadcast %106 : vector<1x128xf32> to vector<256x128xf32>
    %108 = arith.addf %105, %107 : vector<256x128xf32>
    %cst_143 = arith.constant dense<0.000000e+00> : vector<128xf32>
    %109 = vector.multi_reduction <add>, %108, %cst_143 [0] : vector<256x128xf32> to vector<128xf32>
    %110 = vector.shape_cast %109 : vector<128xf32> to vector<1x128xf32>
    %111 = arith.mulf %108, %108 : vector<256x128xf32>
    %cst_144 = arith.constant dense<0.000000e+00> : vector<128xf32>
    %112 = vector.multi_reduction <add>, %111, %cst_144 [0] : vector<256x128xf32> to vector<128xf32>
    %113 = vector.shape_cast %112 : vector<128xf32> to vector<1x128xf32>
    %cst_145 = arith.constant 3.906250e-03 : f32
    %114 = vector.broadcast %cst_145 : f32 to vector<1x128xf32>
    %115 = arith.mulf %110, %114 : vector<1x128xf32>
    %cst_146 = arith.constant 3.906250e-03 : f32
    %116 = vector.broadcast %cst_146 : f32 to vector<1x128xf32>
    %117 = arith.mulf %113, %116 : vector<1x128xf32>
    %118 = arith.mulf %115, %115 : vector<1x128xf32>
    %119 = arith.subf %117, %118 : vector<1x128xf32>
    %cst_147 = arith.constant 0.000000e+00 : f32
    %120 = vector.broadcast %cst_147 : f32 to vector<1x128xf32>
    %121 = arith.maximumf %119, %120 : vector<1x128xf32>
    %122 = vector.broadcast %115 : vector<1x128xf32> to vector<256x128xf32>
    %123 = arith.subf %108, %122 : vector<256x128xf32>
    %cst_148 = arith.constant 9.99999974E-6 : f32
    %124 = vector.broadcast %cst_148 : f32 to vector<1x128xf32>
    %125 = arith.addf %121, %124 : vector<1x128xf32>
    %126 = math.rsqrt %125 : vector<1x128xf32>
    %127 = vector.broadcast %126 : vector<1x128xf32> to vector<256x128xf32>
    %128 = arith.mulf %123, %127 : vector<256x128xf32>
    %c0_149 = arith.constant 0 : index
    %c0_150 = arith.constant 0 : index
    %c0_151 = arith.constant 0 : index
    %c0_152 = arith.constant 0 : index
    %129 = vector.load %arg1[%c0_149, %c0_150, %c0_151, %c0_152] : memref<1x16x16x128xf32, #tpu.memory_space<vmem>>, vector<1x16x16x128xf32>
    %130 = vector.shape_cast %129 : vector<1x16x16x128xf32> to vector<16x16x128xf32>
    %131 = vector.shape_cast %128 : vector<256x128xf32> to vector<16x16x128xf32>
    %132 = arith.addf %130, %131 : vector<16x16x128xf32>
    %c0_153 = arith.constant 0 : index
    %c0_154 = arith.constant 0 : index
    %c0_155 = arith.constant 0 : index
    %c0_156 = arith.constant 0 : index
    %133 = vector.load %arg6[%c0_153, %c0_154, %c0_155, %c0_156] : memref<1x16x16x128xf32, #tpu.memory_space<vmem>>, vector<1x16x16x128xf32>
    %134 = vector.shape_cast %133 : vector<1x16x16x128xf32> to vector<16x16x128xf32>
    %135 = vector.shape_cast %132 : vector<16x16x128xf32> to vector<1x16x16x128xf32>
    tpu.vector_store %arg6[%c0_153, %c0_154, %c0_155, %c0_156], %135 {strides = array<i32>} : memref<1x16x16x128xf32, #tpu.memory_space<vmem>>, vector<1x16x16x128xf32>,
    return
  }
  func.func @transform_0(%arg0: i32) -> (i32, i32, i32, i32) {
    %c0_i32 = arith.constant 0 : i32
    %c0_i32_0 = arith.constant 0 : i32
    %c0_i32_1 = arith.constant 0 : i32
    %c0_i32_2 = arith.constant 0 : i32
    return %arg0, %c0_i32, %c0_i32_0, %c0_i32_1 : i32, i32, i32, i32
  }
  func.func @transform_1(%arg0: i32) -> (i32, i32) {
    %c0_i32 = arith.constant 0 : i32
    %c0_i32_0 = arith.constant 0 : i32
    %c0_i32_1 = arith.constant 0 : i32
    return %c0_i32, %c0_i32_0 : i32, i32
  }
  func.func @transform_2(%arg0: i32) -> (i32, i32) {
    %c0_i32 = arith.constant 0 : i32
    %c0_i32_0 = arith.constant 0 : i32
    %c0_i32_1 = arith.constant 0 : i32
    return %c0_i32, %c0_i32_0 : i32, i32
  }
  func.func @transform_3(%arg0: i32) -> (i32, i32) {
    %c0_i32 = arith.constant 0 : i32
    %c0_i32_0 = arith.constant 0 : i32
    %c0_i32_1 = arith.constant 0 : i32
    return %c0_i32, %c0_i32_0 : i32, i32
  }
  func.func @transform_4(%arg0: i32) -> (i32, i32) {
    %c0_i32 = arith.constant 0 : i32
    %c0_i32_0 = arith.constant 0 : i32
    %c0_i32_1 = arith.constant 0 : i32
    return %c0_i32, %c0_i32_0 : i32, i32
  }
  func.func @transform_5(%arg0: i32) -> (i32, i32, i32, i32) {
    %c0_i32 = arith.constant 0 : i32
    %c0_i32_0 = arith.constant 0 : i32
    %c0_i32_1 = arith.constant 0 : i32
    %c0_i32_2 = arith.constant 0 : i32
    return %arg0, %c0_i32, %c0_i32_0, %c0_i32_1 : i32, i32, i32, i32
  }
}

</mosaic_0001>

<bundles_post_ra>
// kernel: tpu_custom_call.1
= control target key start
LH: loop header
LB: loop body
LE: loop exit
PB: predicated region body
PF: predicated region fallthrough
CT: control target
= control target key end

     0   :  { %10 = vsyncpa [#allocation5], 0  ;;  %s9188_s0 = inlined_call_operand.hbm [shape: f32[2,16,16,128], index: 0, kind: input, shape index: {}]   ;;  %s9189_s1 = inlined_call_operand.hbm [shape: f32[1152,128], index: 1, kind: input, shape index: {}]   ;;  %s9190_s2 = inlined_call_operand.vmem [shape: f32[1,128], index: 2, kind: input, shape index: {}]   ;;  %s9191_s3 = inlined_call_operand.hbm [shape: f32[1152,128], index: 3, kind: input, shape index: {}]   ;;  %s9192_s4 = inlined_call_operand.vmem [shape: f32[1,128], index: 4, kind: input, shape index: {}]   ;;  %s9193_s5 = inlined_call_operand.hbm [shape: f32[2,16,16,128], index: 5, kind: output, shape index: {}]  }
   0x1   :  { %12 = vsyncpa [#allocation5 + $0x1], 0 }
   0x2   :  { %13 = vsyncpa [#allocation8], 0 }
   0x3   :  { %14 = vsyncpa [#allocation6], 0 }
   0x4   :  { %16 = vsyncpa [#allocation6 + $0x1], 0  ;;  %s6879_s18 = smov 0   ;;  %s6881_s19 = smov 0  }
   0x5   :  { %s6883_s20 = smov 0   ;;  %s6885_s21 = smov 0  }
   0x6 LB: > { %s6900_s22 = sadd.s32 4294967295, %s6838_s21   ;;  %s5391_s23 = sadd.s32 4294967294, %s6838_s21   ;;  %s6838_s21 = sphi %s6885_s21, %s9311_s21   ;;  %s6834_s20 = sphi %s6883_s20, %s9310_s20   ;;  %s6830_s19 = sphi %s6881_s19, %s9309_s19   ;;  %s6826_s18 = sphi %s6879_s18, %s9308_s18  }
   0x7   : > { %p42_p0 = scmp.ne.s32.totalorder %s6830_s19, %s6826_s18  ;;  %p9194_p1 = scmp.eq.s32.totalorder %s6900_s22, 0 }
   0x8   : > { %p156_p3 = scmp.eq.s32.totalorder %s5391_s23, 1  ;;  %p5392_p5 = scmp.ge.s32.totalorder %s6838_s21, 1 }
   0x9   : > { %p6909_p4 = por %p9194_p1, %p42_p0  ;;  %p163_p7 = scmp.lt.s32.totalorder %s6838_s21, 3 }
   0xa   : > { %p6914_p6 = por %p156_p3, %p42_p0  ;;  %s6840_s27 = smov [#allocation7]  }
   0xb   : > { %s9240_s24 = scalar_select %p6909_p4, 1, 0 }
   0xc   : > { %s9241_s25 = scalar_select %p6914_p6, 1, 0 }
   0xd   : > { %p6919_p8 = pnand %p5392_p5, %p163_p7  ;;  %s175_s28 = sshll.u32 %s6840_s27, 4  ;;  %s6923_s28 = int_to_ptr.vmem [resolvable:$true] %s175_s28 }
   0xe   : > { %s6841_s30 = smov [#allocation9]   ;;  %s6682_s9 = scalar_lea.hbm %s9189_s1, 18432 }
   0xf   : > { %p6593_p9 = pneg %p6919_p8  ;;  %s191_s6 = sshll.u32 %s6841_s30, 4  ;;  %s6934_s6 = int_to_ptr.vmem [resolvable:$true] %s191_s6 }
  0x10   : > { %p6683_p12 = scmp.ne.s32.totalorder %s9189_s1, %s6682_s9  ;;  %p6689_p5 = scmp.lt.u32.totalorder %s6682_s9, %s9189_s1 }
  0x11   : > { %p6930_p11 = pnand %p6593_p9, %p9194_p1 }
  0x13   : > { %p6684_p13 = pneg %p6930_p11 }
  0x15   : > { %p6685_p0 = pnand %p6684_p13, %p6683_p12 }
  0x17   : > { %p6686_p3 = pneg %p6685_p0 }
  0x19   : > { %p6691_p7 = pnand %p6689_p5, %p6686_p3 }
  0x1b   : > { %6694 = shalt.err (!%p6691_p7)
}
  0x1c   : > { %s6695_s14 = scalar_lea.vmem %s6923_s28, 18432  ;;  %p6703_p2 = scmp.lt.s32.totalorder %s6923_s28, %s6923_s28 }
  0x1d   : > { %p6696_p9 = scmp.ne.s32.totalorder %s6923_s28, %s6695_s14  ;;  %p6704_p12 = scmp.lt.s32.totalorder %s6695_s14, %s6695_s14 }
  0x1f   : > { %p6698_p10 = pnand %p6696_p9, %p6684_p13  ;;  %p6705_p0 = por %p6704_p12, %p6703_p2 }
  0x21   : > { %p6699_p1 = pneg %p6698_p10 }
  0x23   : > { %p6706_p6 = pnand %p6705_p0, %p6699_p1 }
  0x25   : > { %6709 = shalt.err (!%p6706_p6)
}
  0x26   : > { %s6842_s15 = smov 128   ;;  %s6843_s16 = smov 8  }
  0x27   : > { %6596 = dma.hbm_to_vmem [thread:$0]  (!%p6930_p11), %s9189_s1, 18432, %s6923_s28, [#allocation8], %s6842_s15, %s6842_s15, %s6843_s16  }
  0x28   : > { %s6710_s7 = scalar_lea.hbm %s9191_s3, 18432 }
  0x29   : > { %p6711_p1 = scmp.ne.s32.totalorder %s9191_s3, %s6710_s7  ;;  %p6717_p10 = scmp.lt.u32.totalorder %s6710_s7, %s9191_s3 }
  0x2b   : > { %p6713_p2 = pnand %p6711_p1, %p6684_p13 }
  0x2d   : > { %p6714_p6 = pneg %p6713_p2 }
  0x2f   : > { %p6719_p3 = pnand %p6717_p10, %p6714_p6 }
  0x31   : > { %6722 = shalt.err (!%p6719_p3)
}
  0x32   : > { %s6723_s28 = scalar_lea.vmem %s6934_s6, 18432  ;;  %p6731_p12 = scmp.lt.s32.totalorder %s6934_s6, %s6934_s6 }
  0x33   : > { %p6724_p5 = scmp.ne.s32.totalorder %s6934_s6, %s6723_s28  ;;  %p6732_p0 = scmp.lt.s32.totalorder %s6723_s28, %s6723_s28 }
  0x35   : > { %p6726_p7 = pnand %p6724_p5, %p6684_p13  ;;  %p6733_p1 = por %p6732_p0, %p6731_p12 }
  0x37   : > { %p6727_p9 = pneg %p6726_p7 }
  0x39   : > { %p6734_p2 = pnand %p6733_p1, %p6727_p9 }
  0x3b   : > { %6737 = shalt.err (!%p6734_p2)
}
  0x3c   : > { %6599 = dma.hbm_to_vmem [thread:$0]  (!%p6930_p11), %s9191_s3, 18432, %s6934_s6, [#allocation8], %s6842_s15, %s6842_s15, %s6843_s16  }
  0x3d   : > { %s6995_s29 = sadd.s32 1, %s6838_s21   ;;  %s29_s14 = sadd.s32 1, %s6834_s20 }
  0x3e   : > { %s26_s17 = ssub.s32 %s6838_s21, %s6995_s29  ;;  %p36_p13 = scmp.ne.s32.totalorder %s6834_s20, %s6830_s19 }
  0x3f   : > { %p27_p6 = scmp.eq.s32.totalorder %s26_s17, 0  ;;  %p37_p10 = scmp.eq.s32.totalorder %s6838_s21, 0 }
  0x40   : > { %p9244_p3 = scmp.eq.s32.totalorder %s6900_s22, 1  ;;  %p6610_p7 = scmp.lt.s32.totalorder %s6838_s21, 2 }
  0x41   : > { %s7011_s27 = scalar_select %p27_p6, %s6834_s20, %s29_s14  }
  0x42   : > { %p7005_p5 = por %p9244_p3, %p36_p13  ;;  %p38_p9 = por %p37_p10, %p36_p13 }
  0x43   : > { %s208_s30 = sand.u32 1, %s6834_s20   ;;  %s5411_s6 = sshll.u32 %s6838_s21, 12 }
  0x44   : > { %s9245_s23 = scalar_select %p7005_p5, 1, 0 }
  0x45   : > { %s5396_s7 = sshll.u32 %s208_s30, 8  ;;  %s7018_s10 = scalar_lea.hbm %s9188_s0, %s5411_s6 }
  0x46   : > { %s212_s11 = scalar_lea.vmem [#allocation4], %s5396_s7  ;;  %p7022_p11 = pnand %p6610_p7, %p38_p9 }
  0x47   : > { %s219_s28 = sshll.u32 %s212_s11, 4  ;;  %s7026_s13 = scalar_lea.sflag [#allocation5], %s208_s30  ;;  %s7020_s28 = int_to_ptr.vmem [resolvable:$true] %s219_s28 }
  0x48   : > { %s6738_s14 = scalar_lea.hbm %s7018_s10, 4096  ;;  %p6740_p0 = pneg %p7022_p11 }
  0x49   : > { %p6739_p12 = scmp.ne.s32.totalorder %s7018_s10, %s6738_s14  ;;  %s6743_s6 = scalar_lea.hbm %s9188_s0, 8192 }
  0x4a   : > { %p6744_p13 = scmp.lt.u32.totalorder %s7018_s10, %s9188_s0  ;;  %p6745_p6 = scmp.lt.u32.totalorder %s6743_s6, %s6738_s14 }
  0x4b   : > { %p6741_p1 = pnand %p6740_p0, %p6739_p12  ;;  %p6747_p3 = scmp.lt.u32.totalorder %s6738_s14, %s7018_s10 }
  0x4c   : > { %p6746_p10 = por %p6745_p6, %p6744_p13 }
  0x4d   : > { %p6742_p2 = pneg %p6741_p1 }
  0x4e   : > { %p6748_p7 = por %p6747_p3, %p6746_p10 }
  0x50   : > { %p6749_p9 = pnand %p6748_p7, %p6742_p2 }
  0x52   : > { %6752 = shalt.err (!%p6749_p9)
}
  0x53   : > { %s6753_s30 = scalar_lea.vmem %s7020_s28, 4096  ;;  %s6844_s11 = smov [#allocation4]  }
  0x54   : > { %p6754_p12 = scmp.ne.s32.totalorder %s7020_s28, %s6753_s30  ;;  %s6758_s17 = sshll.u32 %s6844_s11, 4  ;;  %s6759_s17 = int_to_ptr.vmem [resolvable:$false] %s6758_s17 }
  0x55   : > { %s6760_s7 = scalar_lea.vmem %s6759_s17, 8192  ;;  %p6761_p4 = scmp.lt.s32.totalorder %s7020_s28, %s6759_s17 }
  0x56   : > { %p6756_p1 = pnand %p6754_p12, %p6740_p0  ;;  %p6762_p13 = scmp.lt.s32.totalorder %s6760_s7, %s6753_s30 }
  0x58   : > { %p6757_p5 = pneg %p6756_p1  ;;  %p6763_p6 = por %p6762_p13, %p6761_p4 }
  0x5a   : > { %p6764_p10 = pnand %p6763_p6, %p6757_p5 }
  0x5c   : > { %6767 = shalt.err (!%p6764_p10)
}
  0x5d   : > { %6603 = dma.hbm_to_vmem [thread:$0]  (!%p7022_p11), %s7018_s10, 4096, %s7020_s28, %s7026_s13, %s6842_s15, %s6842_s15, %s6843_s16  }
  0x5e   : > { %231 = sbr.rel (%p6919_p8) target bundleno = 1785 (0x6f9), region = 40 }
  0x65   : > { %s7060_s14 = sand.u32 1, %s6830_s19   ;;  %p9247_p4 = scmp.ne.s32.totalorder %s9240_s24, 0 }
  0x66   : > { %s5400_s6 = sshll.u32 %s7060_s14, 8  ;;  %s234_s8 = scalar_lea.sflag [#allocation5], %s7060_s14 }
  0x67   : > { %s7066_s12 = scalar_lea.vmem [#allocation4], %s5400_s6 }
  0x68   : > { %6813 = dma.done.wait (%p9247_p4), %s234_s8, 4096  }
  0x69   : > { %6815 = vsyncadd (%p9247_p4), %s234_s8, 4294963200  ;;  %p9248_p5 = scmp.eq.s32.totalorder %s6900_s22, 0 }
  0x6b   : > { %6817 = dma.done.wait (%p9248_p5), [#allocation8], 36864   ;;  %p9249_p8 = pmov %p9248_p5 }
  0x6c   : > { %v9197_v0 = vmov 0.0|0.0   ;;  %v1279_v1 = vld [vmem:[#allocation7] sm:$0xff]  ;;  %v1280_v2 = vld [vmem:[#allocation7 + $0x8] sm:$0xff]  ;;  %v1281_v3 = vld [vmem:[#allocation7 + $0x10] sm:$0xff]  ;;  %s9003_s10 = scalar_lea.vmem [#allocation10], %s5400_s6  ;;  %s5412_s28 = sshll.u32 %s6900_s22, 12 }
  0x6d   : > { %6819 = vsyncadd (%p9249_p8), [#allocation8], 4294930432  ;;  %5669 = vmatprep.subr.bf16.mxu0 %v9197_v0  ;;  %v5670_v4 = vpack.c.bf16 %v1280_v2, %v1279_v1  ;;  %v1282_v5 = vld [vmem:[#allocation7 + $0x18] sm:$0xff]  ;;  %v1283_v7 = vld [vmem:[#allocation7 + $0x20] sm:$0xff]  ;;  %s5299_s13 = sshll.u32 %s9003_s10, 4  ;;  %s9124_s11 = scalar_lea.hbm %s9193_s5, %s5412_s28  ;;  %s9128_s13 = int_to_ptr.vmem [resolvable:$true] %s5299_s13 }
  0x6e   : > { %v5673_v6 = vpack.c.bf16 %v1282_v5, %v1281_v3  ;;  %v1284_v8 = vld [vmem:[#allocation7 + $0x28] sm:$0xff]  ;;  %v1285_v10 = vld [vmem:[#allocation7 + $0x30] sm:$0xff]  ;;  %v1286_v11 = vld [vmem:[#allocation7 + $0x38] sm:$0xff]  ;;  %s5286_s22 = scalar_lea.sflag [#allocation6], %s7060_s14  ;;  %s6768_s17 = scalar_lea.vmem %s9128_s13, 4096 }
  0x6f   : > { %5671 = vmatpush1.bf16.msra.mxu0 %v5670_v4  ;;  %v5676_v9 = vpack.c.bf16 %v1284_v8, %v1283_v7  ;;  %v7080_v12 = vld [vmem:[%s7066_s12 + $0x10] sm:$0xff]  ;;  %v5679_v13 = vpack.c.bf16 %v1286_v11, %v1285_v10  ;;  %v7086_v14 = vld [vmem:[%s7066_s12 + $0x18] sm:$0xff]  ;;  %v1287_v15 = vld [vmem:[#allocation7 + $0x40] sm:$0xff]  ;;  %p6769_p11 = scmp.ne.s32.totalorder %s9128_s13, %s6768_s17  ;;  %p9305_p0 = scmp.ne.s32.totalorder %s9245_s23, 0 }
  0x70   : > { %5672 = vmatprep.subr.bf16.mxu0 %v9197_v0  ;;  %337 = vst [vmem:[#allocation2 + $0x1] sm:$0xff] %v7080_v12  ;;  %1494 = vmatprep.mubr.f32.mxu0 %v7080_v12  ;;  %307 = vst [vmem:[#allocation2 + $0x31] sm:$0xff] %v7080_v12  ;;  %v1288_v16 = vld [vmem:[#allocation7 + $0x48] sm:$0xff]  ;;  %v7092_v17 = vld [vmem:[%s7066_s12] sm:$0xff]  ;;  %s6846_s7 = smov [#allocation10]  }
  0x71   : > { %338 = vst [vmem:[#allocation2 + $0x9] sm:$0xff] %v7086_v14  ;;  %308 = vst [vmem:[#allocation2 + $0x39] sm:$0xff] %v7086_v14  ;;  %v7096_v18 = vld [vmem:[%s7066_s12 + $0x8] sm:$0xff]  ;;  %v7100_v19 = vld [vmem:[%s7066_s12 + $0x20] sm:$0xff]  ;;  %v5682_v20 = vpack.c.bf16 %v1288_v16, %v1287_v15  ;;  %p6770_p2 = pnand %p6769_p11, %p9305_p0  ;;  %s6772_s6 = sshll.u32 %s6846_s7, 4  ;;  %s6773_s6 = int_to_ptr.vmem [resolvable:$false] %s6772_s6 }
  0x72   : > { %305 = vst [vmem:[#allocation2 + $0x19] sm:$0xff] %v7092_v17  ;;  %306 = vst [vmem:[#allocation2 + $0x21] sm:$0xff] %v7096_v18  ;;  %v1289_v21 = vld [vmem:[#allocation7 + $0x50] sm:$0xff]  ;;  %v7104_v22 = vld [vmem:[%s7066_s12 + $0x28] sm:$0xff]  ;;  %s6774_s8 = scalar_lea.vmem %s6773_s6, 8192  ;;  %p6775_p7 = scmp.lt.s32.totalorder %s9128_s13, %s6773_s6 }
  0x73   : > { %5674 = vmatpush1.bf16.msra.mxu0 %v5673_v6  ;;  %309 = vst [vmem:[#allocation2 + $0x49] sm:$0xff] %v7100_v19  ;;  %v7107_v23 = vld [vmem:[%s7066_s12 + $0x30] sm:$0xff]  ;;  %v1290_v24 = vld [vmem:[#allocation7 + $0x58] sm:$0xff]  ;;  %310 = vst [vmem:[#allocation2 + $0x51] sm:$0xff] %v7104_v22  ;;  %p6771_p3 = pneg %p6770_p2  ;;  %p6776_p9 = scmp.lt.s32.totalorder %s6774_s8, %s6768_s17 }
  0x74   : > { %5675 = vmatprep.subr.bf16.mxu0 %v9197_v0  ;;  %311 = vst [vmem:[#allocation2 + $0x61] sm:$0xff] %v7107_v23  ;;  %v7113_v25 = vld [vmem:[%s7066_s12 + $0x38] sm:$0xff]  ;;  %v7116_v26 = vld [vmem:[%s7066_s12 + $0x40] sm:$0xff]  ;;  %v7121_v27 = vld [vmem:[%s7066_s12 + $0x48] sm:$0xff]  ;;  %v5685_v31 = vpack.c.bf16 %v1290_v24, %v1289_v21 }
  0x75   : > { %312 = vst [vmem:[#allocation2 + $0x69] sm:$0xff] %v7113_v25  ;;  %313 = vst [vmem:[#allocation2 + $0x79] sm:$0xff] %v7116_v26  ;;  %v7125_v30 = vld [vmem:[%s7066_s12 + $0x50] sm:$0xff]  ;;  %v1291_v32 = vld [vmem:[#allocation7 + $0x60] sm:$0xff]  ;;  %p6777_p12 = por %p6776_p9, %p6775_p7 }
  0x76   : > { %314 = vst [vmem:[#allocation2 + $0x81] sm:$0xff] %v7121_v27  ;;  %315 = vst [vmem:[#allocation2 + $0x91] sm:$0xff] %v7125_v30  ;;  %v1292_v33 = vld [vmem:[#allocation7 + $0x68] sm:$0xff]  ;;  %v7130_v35 = vld [vmem:[%s7066_s12 + $0x58] sm:$0xff] }
  0x77   : > { %5677 = vmatpush1.bf16.msra.mxu0 %v5676_v9  ;;  %v342_v28 = vld [vmem:[#allocation2 + $0x2] sm:$0x1]  ;;  %v344_v29 = vld [vmem:[#allocation2 + $0x32] sm:$0x1]  ;;  %316 = vst [vmem:[#allocation2 + $0x99] sm:$0xff] %v7130_v35  ;;  %v7138_v38 = vld [vmem:[%s7066_s12 + $0x68] sm:$0xff]  ;;  %v5688_v39 = vpack.c.bf16 %v1292_v33, %v1291_v32  ;;  %p6778_p1 = pnand %p6777_p12, %p6771_p3 }
  0x78   : > { %5678 = vmatprep.subr.bf16.mxu0 %v9197_v0  ;;  %360 = vst [vmem:[#allocation2] sm:$0x1] %v342_v28  ;;  %362 = vst [vmem:[#allocation2 + $0x30] sm:$0x1] %v344_v29  ;;  %v7134_v36 = vld [vmem:[%s7066_s12 + $0x60] sm:$0xff]  ;;  %v7142_v41 = vld [vmem:[%s7066_s12 + $0x70] sm:$0xff] }
  0x79   : > { %v343_v34 = vld [vmem:[#allocation2 + $0x1a] sm:$0x1]  ;;  %317 = vst [vmem:[#allocation2 + $0xa9] sm:$0xff] %v7134_v36  ;;  %318 = vst [vmem:[#allocation2 + $0xb1] sm:$0xff] %v7138_v38  ;;  %v1293_v42 = vld [vmem:[#allocation7 + $0x70] sm:$0xff] }
  0x7a   : > { %361 = vst [vmem:[#allocation2 + $0x18] sm:$0x1] %v343_v34  ;;  %v345_v37 = vld [vmem:[#allocation2 + $0x4a] sm:$0x1]  ;;  %319 = vst [vmem:[#allocation2 + $0xc1] sm:$0xff] %v7142_v41  ;;  %v7151_v48 = vld [vmem:[%s7066_s12 + $0x80] sm:$0xff] }
  0x7b   : > { %5680 = vmatpush1.bf16.msra.mxu0 %v5679_v13  ;;  %363 = vst [vmem:[#allocation2 + $0x48] sm:$0x1] %v345_v37  ;;  %v346_v40 = vld [vmem:[#allocation2 + $0x62] sm:$0x1]  ;;  %v1294_v43 = vld [vmem:[#allocation7 + $0x78] sm:$0xff]  ;;  %v1295_v49 = vld [vmem:[#allocation7 + $0x80] sm:$0xff] }
  0x7c   : > { %5681 = vmatprep.subr.bf16.mxu0 %v9197_v0  ;;  %364 = vst [vmem:[#allocation2 + $0x60] sm:$0x1] %v346_v40  ;;  %v347_v44 = vld [vmem:[#allocation2 + $0x7a] sm:$0x1]  ;;  %v7147_v45 = vld [vmem:[%s7066_s12 + $0x78] sm:$0xff]  ;;  %v5691_v47 = vpack.c.bf16 %v1294_v43, %v1293_v42  ;;  %321 = vst [vmem:[#allocation2 + $0xd9] sm:$0xff] %v7151_v48 }
  0x7d   : > { %365 = vst [vmem:[#allocation2 + $0x78] sm:$0x1] %v347_v44  ;;  %v348_v46 = vld [vmem:[#allocation2 + $0x92] sm:$0x1]  ;;  %320 = vst [vmem:[#allocation2 + $0xc9] sm:$0xff] %v7147_v45  ;;  %v1296_v50 = vld [vmem:[#allocation7 + $0x88] sm:$0xff] }
  0x7e   : > { %366 = vst [vmem:[#allocation2 + $0x90] sm:$0x1] %v348_v46  ;;  %v7156_v51 = vld [vmem:[%s7066_s12 + $0x88] sm:$0xff]  ;;  %v7160_v53 = vld [vmem:[%s7066_s12 + $0x90] sm:$0xff]  ;;  %v5694_v54 = vpack.c.bf16 %v1296_v50, %v1295_v49  ;;  %v7164_v56 = vld [vmem:[%s7066_s12 + $0x98] sm:$0xff] }
  0x7f   : > { %5683 = vmatpush1.bf16.msra.mxu0 %v5682_v20  ;;  %322 = vst [vmem:[#allocation2 + $0xe1] sm:$0xff] %v7156_v51  ;;  %323 = vst [vmem:[#allocation2 + $0xf1] sm:$0xff] %v7160_v53  ;;  %v1297_v57 = vld [vmem:[#allocation7 + $0x90] sm:$0xff]  ;;  %v1298_v58 = vld [vmem:[#allocation7 + $0x98] sm:$0xff] }
  0x80   : > { %5684 = vmatprep.subr.bf16.mxu0 %v9197_v0  ;;  %v349_v52 = vld [vmem:[#allocation2 + $0xaa] sm:$0x1]  ;;  %324 = vst [vmem:[#allocation2 + $0xf9] sm:$0xff] %v7164_v56  ;;  %v7169_v59 = vld [vmem:[%s7066_s12 + $0xa0] sm:$0xff]  ;;  %v7173_v60 = vld [vmem:[%s7066_s12 + $0xa8] sm:$0xff]  ;;  %v5697_v62 = vpack.c.bf16 %v1298_v58, %v1297_v57 }
  0x81   : > { %367 = vst [vmem:[#allocation2 + $0xa8] sm:$0x1] %v349_v52  ;;  %v350_v55 = vld [vmem:[#allocation2 + $0xc2] sm:$0x1]  ;;  %325 = vst [vmem:[#allocation2 + $0x109] sm:$0xff] %v7169_v59  ;;  %v1299_v63 = vld [vmem:[#allocation7 + $0xa0] sm:$0xff] }
  0x82   : > { %368 = vst [vmem:[#allocation2 + $0xc0] sm:$0x1] %v350_v55  ;;  %326 = vst [vmem:[#allocation2 + $0x111] sm:$0xff] %v7173_v60  ;;  %v7177_v61 = vld [vmem:[%s7066_s12 + $0xb0] sm:$0xff]  ;;  %v7181_v2 = vld [vmem:[%s7066_s12 + $0xb8] sm:$0xff] }
  0x83   : > { %5686 = vmatpush1.bf16.msra.mxu0 %v5685_v31  ;;  %v351_v1 = vld [vmem:[#allocation2 + $0xda] sm:$0x1]  ;;  %327 = vst [vmem:[#allocation2 + $0x121] sm:$0xff] %v7177_v61  ;;  %328 = vst [vmem:[#allocation2 + $0x129] sm:$0xff] %v7181_v2  ;;  %v7186_v4 = vld [vmem:[%s7066_s12 + $0xc0] sm:$0xff] }
  0x84   : > { %5687 = vmatprep.subr.bf16.mxu0 %v9197_v0  ;;  %v1300_v3 = vld [vmem:[#allocation7 + $0xa8] sm:$0xff]  ;;  %369 = vst [vmem:[#allocation2 + $0xd8] sm:$0x1] %v351_v1  ;;  %v7189_v5 = vld [vmem:[%s7066_s12 + $0xd0] sm:$0xff]  ;;  %329 = vst [vmem:[#allocation2 + $0x139] sm:$0xff] %v7186_v4 }
  0x85   : > { %v7193_v7 = vld [vmem:[%s7066_s12 + $0xc8] sm:$0xff]  ;;  %331 = vst [vmem:[#allocation2 + $0x151] sm:$0xff] %v7189_v5  ;;  %v5700_v8 = vpack.c.bf16 %v1300_v3, %v1299_v63  ;;  %v1301_v9 = vld [vmem:[#allocation7 + $0xb0] sm:$0xff]  ;;  %v1302_v10 = vld [vmem:[#allocation7 + $0xb8] sm:$0xff] }
  0x86   : > { %v352_v6 = vld [vmem:[#allocation2 + $0xf2] sm:$0x1]  ;;  %330 = vst [vmem:[#allocation2 + $0x141] sm:$0xff] %v7193_v7  ;;  %v5703_v16 = vpack.c.bf16 %v1302_v10, %v1301_v9  ;;  %v1304_v21 = vld [vmem:[#allocation7 + $0xc8] sm:$0xff]  ;;  %v7205_v29 = vld [vmem:[%s7066_s12 + $0xd8] sm:$0xff] }
  0x87   : > { %5689 = vmatpush1.bf16.msra.mxu0 %v5688_v39  ;;  %370 = vst [vmem:[#allocation2 + $0xf0] sm:$0x1] %v352_v6  ;;  %v7199_v13 = vld [vmem:[%s7066_s12 + $0xe0] sm:$0xff]  ;;  %332 = vst [vmem:[#allocation2 + $0x159] sm:$0xff] %v7205_v29  ;;  %v1305_v32 = vld [vmem:[#allocation7 + $0xd0] sm:$0xff] }
  0x88   : > { %5690 = vmatprep.subr.bf16.mxu0 %v9197_v0  ;;  %v353_v11 = vld [vmem:[#allocation2 + $0x10a] sm:$0x1]  ;;  %333 = vst [vmem:[#allocation2 + $0x169] sm:$0xff] %v7199_v13  ;;  %340 = vst [vmem:[#allocation2 + $0x199] sm:$0xff] %v7199_v13  ;;  %v1303_v20 = vld [vmem:[#allocation7 + $0xc0] sm:$0xff] }
  0x89   : > { %371 = vst [vmem:[#allocation2 + $0x108] sm:$0x1] %v353_v11  ;;  %v5706_v31 = vpack.c.bf16 %v1304_v21, %v1303_v20  ;;  %v1306_v33 = vld [vmem:[#allocation7 + $0xd8] sm:$0xff]  ;;  %v1307_v39 = vld [vmem:[#allocation7 + $0xe0] sm:$0xff]  ;;  %v1308_v40 = vld [vmem:[#allocation7 + $0xe8] sm:$0xff] }
  0x8a   : > { %v354_v15 = vld [vmem:[#allocation2 + $0x122] sm:$0x1]  ;;  %v5709_v37 = vpack.c.bf16 %v1306_v33, %v1305_v32  ;;  %v7211_v42 = vld [vmem:[%s7066_s12 + $0xe8] sm:$0xff]  ;;  %v5712_v43 = vpack.c.bf16 %v1308_v40, %v1307_v39  ;;  %v1310_v46 = vld [vmem:[#allocation7 + $0xf8] sm:$0xff] }
  0x8b   : > { %5692 = vmatpush1.bf16.msra.mxu0 %v5691_v47  ;;  %372 = vst [vmem:[#allocation2 + $0x120] sm:$0x1] %v354_v15  ;;  %v355_v24 = vld [vmem:[#allocation2 + $0x13a] sm:$0x1]  ;;  %334 = vst [vmem:[#allocation2 + $0x171] sm:$0xff] %v7211_v42  ;;  %v1309_v44 = vld [vmem:[#allocation7 + $0xf0] sm:$0xff] }
  0x8c   : > { %5693 = vmatprep.subr.bf16.mxu0 %v9197_v0  ;;  %v356_v28 = vld [vmem:[#allocation2 + $0x152] sm:$0x1]  ;;  %373 = vst [vmem:[#allocation2 + $0x138] sm:$0x1] %v355_v24  ;;  %341 = vst [vmem:[#allocation2 + $0x1a1] sm:$0xff] %v7211_v42  ;;  %v5715_v47 = vpack.c.bf16 %v1310_v46, %v1309_v44  ;;  %v1312_v50 = vld [vmem:[#allocation7 + $0x108] sm:$0xff] }
  0x8d   : > { %374 = vst [vmem:[#allocation2 + $0x150] sm:$0x1] %v356_v28  ;;  %v1311_v49 = vld [vmem:[#allocation7 + $0x100] sm:$0xff]  ;;  %v378_v52 = vld [vmem:[#allocation2 + $0xf] sm:$0x1]  ;;  %v1313_v57 = vld [vmem:[#allocation7 + $0x110] sm:$0xff] }
  0x8e   : > { %396 = vst [vmem:[#allocation2 + $0x11] sm:$0x1] %v378_v52  ;;  %v5718_v55 = vpack.c.bf16 %v1312_v50, %v1311_v49  ;;  %v1314_v58 = vld [vmem:[#allocation7 + $0x118] sm:$0xff]  ;;  %v1315_v1 = vld [vmem:[#allocation7 + $0x120] sm:$0xff]  ;;  %v1316_v3 = vld [vmem:[#allocation7 + $0x128] sm:$0xff] }
  0x8f   : > { %5695 = vmatpush1.bf16.msra.mxu0 %v5694_v54  ;;  %v357_v34 = vld [vmem:[#allocation2 + $0x16a] sm:$0x1]  ;;  %v414_v54 = vld [vmem:[#allocation2] sm:$0xff]  ;;  %v5721_v63 = vpack.c.bf16 %v1314_v58, %v1313_v57  ;;  %v5724_v9 = vpack.c.bf16 %v1316_v3, %v1315_v1  ;;  %v1319_v20 = vld [vmem:[#allocation7 + $0x140] sm:$0xff] }
  0x90   : > { %5696 = vmatprep.subr.bf16.mxu0 %v9197_v0  ;;  %375 = vst [vmem:[#allocation2 + $0x168] sm:$0x1] %v357_v34  ;;  %v379_v6 = vld [vmem:[#allocation2 + $0x27] sm:$0x1]  ;;  %v1318_v11 = vld [vmem:[#allocation7 + $0x138] sm:$0xff]  ;;  %v7231_v24 = vld [vmem:[#allocation2 + $0x30] sm:$0xff] }
  0x91   : > { %397 = vst [vmem:[#allocation2 + $0x29] sm:$0x1] %v379_v6  ;;  %v1317_v10 = vld [vmem:[#allocation7 + $0x130] sm:$0xff]  ;;  %v380_v21 = vld [vmem:[#allocation2 + $0x3f] sm:$0x1]  ;;  %v1322_v32 = vld [vmem:[#allocation7 + $0x158] sm:$0xff] }
  0x92   : > { %v7226_v15 = vld [vmem:[#allocation2 + $0x20] sm:$0xff]  ;;  %398 = vst [vmem:[#allocation2 + $0x41] sm:$0x1] %v380_v21  ;;  %v7239_v33 = vld [vmem:[#allocation2 + $0x38] sm:$0xff]  ;;  %v1323_v34 = vld [vmem:[#allocation7 + $0x160] sm:$0xff] }
  0x93   : > { %5698 = vmatpush1.bf16.msra.mxu0 %v5697_v62  ;;  %v415_v62 = vld [vmem:[#allocation2 + $0x8] sm:$0xff]  ;;  %v381_v39 = vld [vmem:[#allocation2 + $0x57] sm:$0x1]  ;;  %v7254_v52 = vld [vmem:[#allocation2 + $0x60] sm:$0xff] }
  0x94   : > { %5699 = vmatprep.subr.bf16.mxu0 %v9197_v0  ;;  %399 = vst [vmem:[#allocation2 + $0x59] sm:$0x1] %v381_v39  ;;  %v7244_v40 = vld [vmem:[#allocation2 + $0x48] sm:$0xff]  ;;  %v7249_v46 = vld [vmem:[#allocation2 + $0x50] sm:$0xff]  ;;  %v7264_v1 = vld [vmem:[#allocation2 + $0x78] sm:$0xff] }
  0x95   : > { %v1326_v44 = vld [vmem:[#allocation7 + $0x178] sm:$0xff]  ;;  %v1327_v49 = vld [vmem:[#allocation7 + $0x180] sm:$0xff] }
  0x96   : > { %v382_v50 = vld [vmem:[#allocation2 + $0x6f] sm:$0x1] }
  0x97   : > { %5701 = vmatpush1.bf16.msra.mxu0 %v5700_v8  ;;  %v7221_v8 = vld [vmem:[#allocation2 + $0x18] sm:$0xff]  ;;  %400 = vst [vmem:[#allocation2 + $0x71] sm:$0x1] %v382_v50  ;;  %v7259_v57 = vld [vmem:[#allocation2 + $0x68] sm:$0xff]  ;;  %v389_v50 = vld [vmem:[#allocation2 + $0x117] sm:$0x1] }
  0x98   : > { %5702 = vmatprep.subr.bf16.mxu0 %v9197_v0  ;;  %v1334_v6 = vld [vmem:[#allocation7 + $0x1b8] sm:$0xff]  ;;  %407 = vst [vmem:[#allocation2 + $0x119] sm:$0x1] %v389_v50 }
  0x99   : > { %v1338_v21 = vld [vmem:[#allocation7 + $0x1d8] sm:$0xff] }
  0x9a   : > { %v1342_v39 = vld [vmem:[#allocation7 + $0x1f8] sm:$0xff] }
  0x9b   : > { %5704 = vmatpush1.bf16.msra.mxu0 %v5703_v16  ;;  %v5727_v16 = vpack.c.bf16 %v1318_v11, %v1317_v10  ;;  %v1335_v11 = vld [vmem:[#allocation7 + $0x1c0] sm:$0xff] }
  0x9c   : > { %5705 = vmatprep.subr.bf16.mxu0 %v9197_v0 }
  0x9f   : > { %5707 = vmatpush1.bf16.msra.mxu0 %v5706_v31  ;;  %v7233_v31 = vld [vmem:[#allocation2 + $0x32] sm:$0xff] }
  0xa0   : > { %5708 = vmatprep.subr.bf16.mxu0 %v9197_v0  ;;  %5541 = vmatprep.mubr.f32.mxu1 %v7233_v31 }
  0xa3   : > { %5710 = vmatpush1.bf16.msra.mxu0 %v5709_v37  ;;  %v1324_v37 = vld [vmem:[#allocation7 + $0x168] sm:$0xff] }
  0xa4   : > { %5711 = vmatprep.subr.bf16.mxu0 %v9197_v0 }
  0xa7   : > { %5713 = vmatpush1.bf16.msra.mxu0 %v5712_v43  ;;  %v5736_v43 = vpack.c.bf16 %v1324_v37, %v1323_v34  ;;  %v7284_v34 = vld [vmem:[#allocation2 + $0xa8] sm:$0xff] }
  0xa8   : > { %5714 = vmatprep.subr.bf16.mxu0 %v9197_v0 }
  0xab   : > { %5716 = vmatpush1.bf16.msra.mxu0 %v5715_v47 }
  0xac   : > { %5717 = vmatprep.subr.bf16.mxu0 %v9197_v0 }
  0xae   : > { %1495 = vmatmul.mubr.f32.vlgmr.msra.gmra.mrb[0].mxu0 %v414_v54 }
  0xaf   : > { %5719 = vmatpush1.bf16.msra.mxu0 %v5718_v55  ;;  %1499 = vmatprep.mubr.f32.mxu0 %v7086_v14  ;;  %v1330_v55 = vld [vmem:[#allocation7 + $0x198] sm:$0xff] }
  0xb0   : > { %5720 = vmatprep.subr.bf16.mxu0 %v9197_v0 }
  0xb2   : > { %1500 = vmatmul.mubr.f32.gmra.mrb[2].mxu0 %v415_v62  ;;  %v1331_v62 = vld [vmem:[#allocation7 + $0x1a0] sm:$0xff] }
  0xb3   : > { %1504 = vmatprep.mubr.f32.mxu0 %v7092_v17  ;;  %5722 = vmatpush1.bf16.msra.mxu0 %v5721_v63  ;;  %v1320_v17 = vld [vmem:[#allocation7 + $0x148] sm:$0xff]  ;;  %v383_v63 = vld [vmem:[#allocation2 + $0x87] sm:$0x1] }
  0xb4   : > { %5723 = vmatprep.subr.bf16.mxu0 %v9197_v0  ;;  %v5730_v28 = vpack.c.bf16 %v1320_v17, %v1319_v20  ;;  %401 = vst [vmem:[#allocation2 + $0x89] sm:$0x1] %v383_v63  ;;  %v7274_v20 = vld [vmem:[#allocation2 + $0x90] sm:$0xff] }
  0xb5   : > { %v7363_v63 = vld [vmem:[#allocation2 + $0x170] sm:$0xff] }
  0xb6   : > { %1505 = vmatmul.mubr.f32.gmra.mrb[4].mxu0 %v7221_v8 }
  0xb7   : > { %1509 = vmatprep.mubr.f32.mxu0 %v7096_v18  ;;  %5725 = vmatpush1.bf16.msra.mxu0 %v5724_v9  ;;  %v1321_v18 = vld [vmem:[#allocation7 + $0x150] sm:$0xff] }
  0xb8   : > { %5726 = vmatprep.subr.bf16.mxu0 %v9197_v0  ;;  %v7269_v9 = vld [vmem:[#allocation2 + $0x80] sm:$0xff] }
  0xba   : > { %1510 = vmatmul.mubr.f32.gmra.mrb[6].mxu0 %v7226_v15 }
  0xbb   : > { %1514 = vmatprep.mubr.f32.mxu0 %v7080_v12  ;;  %5728 = vmatpush1.bf16.msra.mxu0 %v5727_v16  ;;  %v5733_v12 = vpack.c.bf16 %v1322_v32, %v1321_v18  ;;  %v384_v16 = vld [vmem:[#allocation2 + $0x9f] sm:$0x1]  ;;  %v1339_v32 = vld [vmem:[#allocation7 + $0x1e0] sm:$0xff] }
  0xbc   : > { %5729 = vmatprep.subr.bf16.mxu0 %v9197_v0  ;;  %402 = vst [vmem:[#allocation2 + $0xa1] sm:$0x1] %v384_v16  ;;  %v1348_v16 = vld [vmem:[#allocation7 + $0x228] sm:$0xff] }
  0xbe   : > { %1515 = vmatmul.mubr.f32.gmra.mrb[8].mxu0 %v7231_v24 }
  0xbf   : > { %1519 = vmatprep.mubr.f32.mxu0 %v7086_v14  ;;  %5731 = vmatpush1.bf16.msra.mxu0 %v5730_v28  ;;  %v1325_v14 = vld [vmem:[#allocation7 + $0x170] sm:$0xff]  ;;  %v7279_v28 = vld [vmem:[#allocation2 + $0x98] sm:$0xff] }
  0xc0   : > { %5732 = vmatprep.subr.bf16.mxu0 %v9197_v0  ;;  %v5739_v47 = vpack.c.bf16 %v1326_v44, %v1325_v14  ;;  %v386_v44 = vld [vmem:[#allocation2 + $0xcf] sm:$0x1] }
  0xc1   : > { %404 = vst [vmem:[#allocation2 + $0xd1] sm:$0x1] %v386_v44 }
  0xc2   : > { %1520 = vmatmul.mubr.f32.gmra.mrb[10].mxu0 %v7239_v33 }
  0xc3   : > { %1524 = vmatprep.mubr.f32.mxu0 %v7100_v19  ;;  %5734 = vmatpush1.bf16.msra.mxu0 %v5733_v12  ;;  %v1328_v19 = vld [vmem:[#allocation7 + $0x188] sm:$0xff]  ;;  %v385_v12 = vld [vmem:[#allocation2 + $0xb7] sm:$0x1] }
  0xc4   : > { %5735 = vmatprep.subr.bf16.mxu0 %v9197_v0  ;;  %v5742_v54 = vpack.c.bf16 %v1328_v19, %v1327_v49  ;;  %403 = vst [vmem:[#allocation2 + $0xb9] sm:$0x1] %v385_v12  ;;  %v7303_v49 = vld [vmem:[#allocation2 + $0xd8] sm:$0xff]  ;;  %v1353_v12 = vld [vmem:[#allocation7 + $0x250] sm:$0xff] }
  0xc5   : > { %v388_v19 = vld [vmem:[#allocation2 + $0xff] sm:$0x1] }
  0xc6   : > { %1525 = vmatmul.mubr.f32.gmra.mrb[12].mxu0 %v7244_v40  ;;  %406 = vst [vmem:[#allocation2 + $0x101] sm:$0x1] %v388_v19  ;;  %v7393_v19 = vld [vmem:[#allocation2 + $0x52] sm:$0xff] }
  0xc7   : > { %1529 = vmatprep.mubr.f32.mxu0 %v7104_v22  ;;  %5737 = vmatpush1.bf16.msra.mxu0 %v5736_v43  ;;  %v1329_v22 = vld [vmem:[#allocation7 + $0x190] sm:$0xff]  ;;  %v7289_v43 = vld [vmem:[#allocation2 + $0xb0] sm:$0xff] }
  0xc8   : > { %5738 = vmatprep.subr.bf16.mxu0 %v9197_v0  ;;  %v5745_v58 = vpack.c.bf16 %v1330_v55, %v1329_v22  ;;  %v391_v22 = vld [vmem:[#allocation2 + $0x147] sm:$0x1] }
  0xc9   : > { %409 = vst [vmem:[#allocation2 + $0x149] sm:$0x1] %v391_v22  ;;  %v7338_v55 = vld [vmem:[%s7066_s12 + $0xf0] sm:$0xff] }
  0xca   : > { %1530 = vmatmul.mubr.f32.gmra.mrb[14].mxu0 %v7249_v46  ;;  %335 = vst [vmem:[#allocation2 + $0x181] sm:$0xff] %v7338_v55  ;;  %v7398_v22 = vld [vmem:[#allocation2 + $0x62] sm:$0xff] }
  0xcb   : > { %1534 = vmatprep.mubr.f32.mxu0 %v7107_v23  ;;  %5740 = vmatpush1.bf16.msra.mxu0 %v5739_v47  ;;  %v1332_v23 = vld [vmem:[#allocation7 + $0x1a8] sm:$0xff]  ;;  %v387_v47 = vld [vmem:[#allocation2 + $0xe7] sm:$0x1] }
  0xcc   : > { %5741 = vmatprep.subr.bf16.mxu0 %v9197_v0  ;;  %v5748_v3 = vpack.c.bf16 %v1332_v23, %v1331_v62  ;;  %405 = vst [vmem:[#allocation2 + $0xe9] sm:$0x1] %v387_v47  ;;  %v7351_v62 = vld [vmem:[#allocation2 + $0x158] sm:$0xff]  ;;  %v7354_v23 = vld [vmem:[%s7066_s12 + $0xf8] sm:$0xff]  ;;  %v1357_v47 = vld [vmem:[#allocation7 + $0x270] sm:$0xff] }
  0xcd   : > { %336 = vst [vmem:[#allocation2 + $0x189] sm:$0xff] %v7354_v23 }
  0xce   : > { %1535 = vmatmul.mubr.f32.gmra.mrb[16].mxu0 %v7254_v52 }
  0xcf   : > { %1539 = vmatprep.mubr.f32.mxu0 %v7113_v25  ;;  %5743 = vmatpush1.bf16.msra.mxu0 %v5742_v54  ;;  %v1333_v25 = vld [vmem:[#allocation7 + $0x1b0] sm:$0xff]  ;;  %v390_v54 = vld [vmem:[#allocation2 + $0x12f] sm:$0x1] }
  0xd0   : > { %5744 = vmatprep.subr.bf16.mxu0 %v9197_v0  ;;  %v5751_v10 = vpack.c.bf16 %v1334_v6, %v1333_v25  ;;  %408 = vst [vmem:[#allocation2 + $0x131] sm:$0x1] %v390_v54  ;;  %v542_v25 = vld [vmem:[#allocation2 + $0x2] sm:$0xff]  ;;  %v1359_v54 = vld [vmem:[#allocation7 + $0x280] sm:$0xff] }
  0xd2   : > { %1540 = vmatmul.mubr.f32.gmra.mrb[18].mxu0 %v7259_v57 }
  0xd3   : > { %1544 = vmatprep.mubr.f32.mxu0 %v7116_v26  ;;  %5746 = vmatpush1.bf16.msra.mxu0 %v5745_v58  ;;  %v1336_v26 = vld [vmem:[#allocation7 + $0x1c8] sm:$0xff]  ;;  %v358_v58 = vld [vmem:[#allocation2 + $0x182] sm:$0x1] }
  0xd4   : > { %5747 = vmatprep.subr.bf16.mxu0 %v9197_v0  ;;  %v5754_v17 = vpack.c.bf16 %v1336_v26, %v1335_v11  ;;  %376 = vst [vmem:[#allocation2 + $0x180] sm:$0x1] %v358_v58  ;;  %v1346_v11 = vld [vmem:[#allocation7 + $0x218] sm:$0xff]  ;;  %v1361_v58 = vld [vmem:[#allocation7 + $0x290] sm:$0xff] }
  0xd6   : > { %1545 = vmatmul.mubr.f32.gmra.mrb[20].mxu0 %v7264_v1 }
  0xd7   : > { %1549 = vmatprep.mubr.f32.mxu0 %v7121_v27  ;;  %5749 = vmatpush1.bf16.msra.mxu0 %v5748_v3  ;;  %v1337_v27 = vld [vmem:[#allocation7 + $0x1d0] sm:$0xff]  ;;  %v1344_v3 = vld [vmem:[#allocation7 + $0x208] sm:$0xff] }
  0xd8   : > { %5750 = vmatprep.subr.bf16.mxu0 %v9197_v0  ;;  %v5757_v18 = vpack.c.bf16 %v1338_v21, %v1337_v27  ;;  %v1349_v27 = vld [vmem:[#allocation7 + $0x230] sm:$0xff]  ;;  %v1350_v21 = vld [vmem:[#allocation7 + $0x238] sm:$0xff] }
  0xda   : > { %1550 = vmatmul.mubr.f32.gmra.mrb[22].mxu0 %v7269_v9 }
  0xdb   : > { %1554 = vmatprep.mubr.f32.mxu0 %v7125_v30  ;;  %5752 = vmatpush1.bf16.msra.mxu0 %v5751_v10  ;;  %v1340_v30 = vld [vmem:[#allocation7 + $0x1e8] sm:$0xff]  ;;  %v1345_v10 = vld [vmem:[#allocation7 + $0x210] sm:$0xff] }
  0xdc   : > { %5753 = vmatprep.subr.bf16.mxu0 %v9197_v0  ;;  %v5760_v37 = vpack.c.bf16 %v1340_v30, %v1339_v32  ;;  %v5769_v26 = vpack.c.bf16 %v1346_v11, %v1345_v10  ;;  %v1351_v32 = vld [vmem:[#allocation7 + $0x240] sm:$0xff]  ;;  %v1365_v10 = vld [vmem:[#allocation7 + $0x2b0] sm:$0xff] }
  0xdd   : > { %v7413_v11 = vld [vmem:[#allocation2 + $0x82] sm:$0xff] }
  0xde   : > { %1555 = vmatmul.mubr.f32.gmra.mrb[24].mxu0 %v7274_v20 }
  0xdf   : > { %1559 = vmatprep.mubr.f32.mxu0 %v7130_v35  ;;  %5755 = vmatpush1.bf16.msra.mxu0 %v5754_v17  ;;  %v1341_v35 = vld [vmem:[#allocation7 + $0x1f0] sm:$0xff] }
  0xe0   : > { %5756 = vmatprep.subr.bf16.mxu0 %v9197_v0  ;;  %v5763_v14 = vpack.c.bf16 %v1342_v39, %v1341_v35  ;;  %v7370_v17 = vld [vmem:[#allocation2 + $0x1a] sm:$0xff]  ;;  %v1355_v39 = vld [vmem:[#allocation7 + $0x260] sm:$0xff] }
  0xe2   : > { %1560 = vmatmul.mubr.f32.gmra.mrb[26].mxu0 %v7279_v28 }
  0xe3   : > { %1564 = vmatprep.mubr.f32.mxu0 %v7134_v36  ;;  %5758 = vmatpush1.bf16.msra.mxu0 %v5757_v18  ;;  %v7294_v36 = vld [vmem:[#allocation2 + $0xc0] sm:$0xff]  ;;  %v5775_v18 = vpack.c.bf16 %v1350_v21, %v1349_v27 }
  0xe4   : > { %5759 = vmatprep.subr.bf16.mxu0 %v9197_v0  ;;  %v7423_v27 = vld [vmem:[#allocation2 + $0x9a] sm:$0xff] }
  0xe6   : > { %1565 = vmatmul.mubr.f32.gmra.mrb[28].mxu0 %v7284_v34 }
  0xe7   : > { %1569 = vmatprep.mubr.f32.mxu0 %v7138_v38  ;;  %5761 = vmatpush1.bf16.msra.mxu0 %v5760_v37  ;;  %v7299_v38 = vld [vmem:[#allocation2 + $0xc8] sm:$0xff] }
  0xe8   : > { %5762 = vmatprep.subr.bf16.mxu0 %v9197_v0  ;;  %v1354_v37 = vld [vmem:[#allocation7 + $0x258] sm:$0xff] }
  0xe9   : > { %v5781_v35 = vpack.c.bf16 %v1354_v37, %v1353_v12  ;;  %v7433_v12 = vld [vmem:[#allocation2 + $0xb2] sm:$0xff] }
  0xea   : > { %1570 = vmatmul.mubr.f32.gmra.mrb[30].mxu0 %v7289_v43 }
  0xeb   : > { %1574 = vmatprep.mubr.f32.mxu0 %v7142_v41  ;;  %5764 = vmatpush1.bf16.msra.mxu0 %v5763_v14  ;;  %v7307_v41 = vld [vmem:[#allocation2 + $0xe0] sm:$0xff]  ;;  %v1356_v14 = vld [vmem:[#allocation7 + $0x268] sm:$0xff] }
  0xec   : > { %5765 = vmatprep.subr.bf16.mxu0 %v9197_v0  ;;  %v5784_v44 = vpack.c.bf16 %v1356_v14, %v1355_v39  ;;  %v7455_v39 = vld [vmem:[#allocation2 + $0xf2] sm:$0xff] }
  0xed   : > { %v1408_v14 = vld [vmem:[#allocation7 + $0x408] sm:$0xff] }
  0xee   : > { %1575 = vmatmul.mubr.f32.gmra.mrb[32].mxu0 %v7294_v36 }
  0xef   : > { %1579 = vmatprep.mubr.f32.mxu0 %v7147_v45  ;;  %v7311_v45 = vld [vmem:[#allocation2 + $0xf0] sm:$0xff] }
  0xf2   : > { %1580 = vmatmul.mubr.f32.gmra.mrb[34].mxu0 %v7299_v38 }
  0xf3   : > { %1584 = vmatprep.mubr.f32.mxu0 %v7151_v48  ;;  %v7315_v48 = vld [vmem:[#allocation2 + $0xf8] sm:$0xff] }
  0xf6   : > { %1585 = vmatmul.mubr.f32.gmra.mrb[36].mxu0 %v7303_v49 }
  0xf7   : > { %1589 = vmatprep.mubr.f32.mxu0 %v7156_v51  ;;  %v7319_v51 = vld [vmem:[#allocation2 + $0x108] sm:$0xff] }
  0xfa   : > { %1590 = vmatmul.mubr.f32.gmra.mrb[38].mxu0 %v7307_v41 }
  0xfb   : > { %1594 = vmatprep.mubr.f32.mxu0 %v7160_v53  ;;  %v7323_v53 = vld [vmem:[#allocation2 + $0x110] sm:$0xff] }
  0xfe   : > { %1595 = vmatmul.mubr.f32.gmra.mrb[40].mxu0 %v7311_v45 }
  0xff   : > { %1599 = vmatprep.mubr.f32.mxu0 %v7164_v56  ;;  %v7327_v56 = vld [vmem:[#allocation2 + $0x120] sm:$0xff] }
 0x102   : > { %1600 = vmatmul.mubr.f32.gmra.mrb[42].mxu0 %v7315_v48 }
 0x103   : > { %1604 = vmatprep.mubr.f32.mxu0 %v7169_v59  ;;  %v7331_v59 = vld [vmem:[#allocation2 + $0x128] sm:$0xff] }
 0x106   : > { %1605 = vmatmul.mubr.f32.gmra.mrb[44].mxu0 %v7319_v51 }
 0x107   : > { %1609 = vmatprep.mubr.f32.mxu0 %v7173_v60  ;;  %v7335_v60 = vld [vmem:[#allocation2 + $0x138] sm:$0xff] }
 0x10a   : > { %1610 = vmatmul.mubr.f32.gmra.mrb[46].mxu0 %v7323_v53 }
 0x10b   : > { %1614 = vmatprep.mubr.f32.mxu0 %v7177_v61  ;;  %v7343_v61 = vld [vmem:[#allocation2 + $0x140] sm:$0xff] }
 0x10e   : > { %1615 = vmatmul.mubr.f32.gmra.mrb[48].mxu0 %v7327_v56 }
 0x10f   : > { %1619 = vmatprep.mubr.f32.mxu0 %v7181_v2  ;;  %v392_v2 = vld [vmem:[#allocation2 + $0x15f] sm:$0x1] }
 0x110   : > { %410 = vst [vmem:[#allocation2 + $0x161] sm:$0x1] %v392_v2 }
 0x112   : > { %1620 = vmatmul.mubr.f32.gmra.mrb[50].mxu0 %v7331_v59 }
 0x113   : > { %1624 = vmatprep.mubr.f32.mxu0 %v7186_v4  ;;  %v7347_v4 = vld [vmem:[#allocation2 + $0x150] sm:$0xff] }
 0x116   : > { %1625 = vmatmul.mubr.f32.gmra.mrb[52].mxu0 %v7335_v60 }
 0x117   : > { %1629 = vmatprep.mubr.f32.mxu0 %v7193_v7  ;;  %v393_v7 = vld [vmem:[#allocation2 + $0x177] sm:$0x1] }
 0x118   : > { %411 = vst [vmem:[#allocation2 + $0x179] sm:$0x1] %v393_v7  ;;  %v7403_v7 = vld [vmem:[#allocation2 + $0x6a] sm:$0xff] }
 0x11a   : > { %1630 = vmatmul.mubr.f32.gmra.mrb[54].mxu0 %v7343_v61 }
 0x11b   : > { %1634 = vmatprep.mubr.f32.mxu0 %v7189_v5  ;;  %v7359_v5 = vld [vmem:[#allocation2 + $0x168] sm:$0xff] }
 0x11e   : > { %1635 = vmatmul.mubr.f32.gmra.mrb[56].mxu0 %v7347_v4 }
 0x11f   : > { %1639 = vmatprep.mubr.f32.mxu0 %v7205_v29  ;;  %v1343_v29 = vld [vmem:[#allocation7 + $0x200] sm:$0xff] }
 0x120   : > { %v5766_v6 = vpack.c.bf16 %v1344_v3, %v1343_v29  ;;  %v1363_v3 = vld [vmem:[#allocation7 + $0x2a0] sm:$0xff] }
 0x122   : > { %1640 = vmatmul.mubr.f32.gmra.mrb[58].mxu0 %v7351_v62 }
 0x123   : > { %1644 = vmatprep.mubr.f32.mxu0 %v7199_v13  ;;  %v543_v13 = vld [vmem:[#allocation2 + $0xa] sm:$0xff] }
 0x126   : > { %1645 = vmatmul.mubr.f32.gmra.mrb[60].mxu0 %v7359_v5 }
 0x127   : > { %1649 = vmatprep.mubr.f32.mxu0 %v7211_v42  ;;  %v1347_v42 = vld [vmem:[#allocation7 + $0x220] sm:$0xff] }
 0x12a   : > { %1650 = vmatmul.mubr.f32.gmra.mrb[62].mxu0 %v7363_v63 }
 0x12b   : > { %1719 = vmatprep.mubr.f32.mxu0 %v7221_v8  ;;  %v5772_v8 = vpack.c.bf16 %v1348_v16, %v1347_v42  ;;  %v7418_v42 = vld [vmem:[#allocation2 + $0x92] sm:$0xff] }
 0x12e   : > { %1720 = vmatmul.mubr.f32.vlgmr.msra.gmra.mrb[0].mxu0 %v542_v25  ;;  %v7408_v25 = vld [vmem:[#allocation2 + $0x7a] sm:$0xff] }
 0x12f   : > { %5767 = vmatpush1.bf16.msra.mxu0 %v5766_v6  ;;  %1724 = vmatprep.mubr.f32.mxu0 %v7226_v15  ;;  %v7375_v15 = vld [vmem:[#allocation2 + $0x22] sm:$0xff] }
 0x130   : > { %5768 = vmatprep.subr.bf16.mxu0 %v9197_v0 }
 0x132   : > { %1725 = vmatmul.mubr.f32.gmra.mrb[2].mxu0 %v543_v13 }
 0x133   : > { %1729 = vmatprep.mubr.f32.mxu0 %v7231_v24  ;;  %5770 = vmatpush1.bf16.msra.mxu0 %v5769_v26  ;;  %v1352_v24 = vld [vmem:[#allocation7 + $0x248] sm:$0xff]  ;;  %v1367_v26 = vld [vmem:[#allocation7 + $0x2c0] sm:$0xff] }
 0x134   : > { %5771 = vmatprep.subr.bf16.mxu0 %v9197_v0  ;;  %v5778_v30 = vpack.c.bf16 %v1352_v24, %v1351_v32  ;;  %v7428_v32 = vld [vmem:[#allocation2 + $0xaa] sm:$0xff] }
 0x136   : > { %1730 = vmatmul.mubr.f32.gmra.mrb[4].mxu0 %v7370_v17 }
 0x137   : > { %1734 = vmatprep.mubr.f32.mxu0 %v7239_v33  ;;  %5773 = vmatpush1.bf16.msra.mxu0 %v5772_v8  ;;  %v7383_v33 = vld [vmem:[#allocation2 + $0x3a] sm:$0xff] }
 0x138   : > { %5774 = vmatprep.subr.bf16.mxu0 %v9197_v0  ;;  %v1369_v8 = vld [vmem:[#allocation7 + $0x2d0] sm:$0xff] }
 0x13a   : > { %1735 = vmatmul.mubr.f32.gmra.mrb[6].mxu0 %v7375_v15 }
 0x13b   : > { %1739 = vmatprep.mubr.f32.mxu0 %v7244_v40  ;;  %5776 = vmatpush1.bf16.msra.mxu0 %v5775_v18  ;;  %v7388_v40 = vld [vmem:[#allocation2 + $0x4a] sm:$0xff] }
 0x13c   : > { %5777 = vmatprep.subr.bf16.mxu0 %v9197_v0  ;;  %v1371_v18 = vld [vmem:[#allocation7 + $0x2e0] sm:$0xff] }
 0x13e   : > { %1740 = vmatmul.mubr.f32.gmra.mrb[8].mxu0 %v7233_v31 }
 0x13f   : > { %1744 = vmatprep.mubr.f32.mxu0 %v7249_v46  ;;  %5779 = vmatpush1.bf16.msra.mxu0 %v5778_v30  ;;  %v1358_v46 = vld [vmem:[#allocation7 + $0x278] sm:$0xff]  ;;  %v1373_v30 = vld [vmem:[#allocation7 + $0x2f0] sm:$0xff] }
 0x140   : > { %5780 = vmatprep.subr.bf16.mxu0 %v9197_v0  ;;  %v5787_v50 = vpack.c.bf16 %v1358_v46, %v1357_v47  ;;  %v1410_v47 = vld [vmem:[#allocation7 + $0x418] sm:$0xff] }
 0x142   : > { %1745 = vmatmul.mubr.f32.gmra.mrb[10].mxu0 %v7383_v33 }
 0x143   : > { %1749 = vmatprep.mubr.f32.mxu0 %v7254_v52  ;;  %5782 = vmatpush1.bf16.msra.mxu0 %v5781_v35  ;;  %v1360_v52 = vld [vmem:[#allocation7 + $0x288] sm:$0xff] }
 0x144   : > { %5783 = vmatprep.subr.bf16.mxu0 %v9197_v0  ;;  %v5790_v2 = vpack.c.bf16 %v1360_v52, %v1359_v54  ;;  %v7447_v35 = vld [vmem:[#allocation2 + $0xda] sm:$0xff] }
 0x145   : > { %v1412_v54 = vld [vmem:[#allocation7 + $0x428] sm:$0xff] }
 0x146   : > { %1750 = vmatmul.mubr.f32.gmra.mrb[12].mxu0 %v7388_v40 }
 0x147   : > { %1754 = vmatprep.mubr.f32.mxu0 %v7259_v57  ;;  %5785 = vmatpush1.bf16.msra.mxu0 %v5784_v44  ;;  %v1362_v57 = vld [vmem:[#allocation7 + $0x298] sm:$0xff] }
 0x148   : > { %5786 = vmatprep.subr.bf16.mxu0 %v9197_v0  ;;  %v5793_v29 = vpack.c.bf16 %v1362_v57, %v1361_v58  ;;  %v1414_v58 = vld [vmem:[#allocation7 + $0x438] sm:$0xff] }
 0x14a   : > { %1755 = vmatmul.mubr.f32.gmra.mrb[14].mxu0 %v7393_v19 }
 0x14b   : > { %1759 = vmatprep.mubr.f32.mxu0 %v7264_v1  ;;  %5788 = vmatpush1.bf16.msra.mxu0 %v5787_v50  ;;  %v1364_v1 = vld [vmem:[#allocation7 + $0x2a8] sm:$0xff]  ;;  %v1411_v50 = vld [vmem:[#allocation7 + $0x420] sm:$0xff] }
 0x14c   : > { %5789 = vmatprep.subr.bf16.mxu0 %v9197_v0  ;;  %v5796_v6 = vpack.c.bf16 %v1364_v1, %v1363_v3  ;;  %v5869_v52 = vpack.c.bf16 %v1412_v54, %v1411_v50  ;;  %v1416_v3 = vld [vmem:[#allocation7 + $0x448] sm:$0xff]  ;;  %v1382_v54 = vld [vmem:[#allocation7 + $0x338] sm:$0xff] }
 0x14e   : > { %1760 = vmatmul.mubr.f32.gmra.mrb[16].mxu0 %v7398_v22 }
 0x14f   : > { %1764 = vmatprep.mubr.f32.mxu0 %v7269_v9  ;;  %5791 = vmatpush1.bf16.msra.mxu0 %v5790_v2  ;;  %v1366_v9 = vld [vmem:[#allocation7 + $0x2b8] sm:$0xff]  ;;  %v1413_v2 = vld [vmem:[#allocation7 + $0x430] sm:$0xff] }
 0x150   : > { %5792 = vmatprep.subr.bf16.mxu0 %v9197_v0  ;;  %v5799_v13 = vpack.c.bf16 %v1366_v9, %v1365_v10  ;;  %v5873_v57 = vpack.c.bf16 %v1414_v58, %v1413_v2  ;;  %v1417_v10 = vld [vmem:[#allocation7 + $0x450] sm:$0xff]  ;;  %v1418_v9 = vld [vmem:[#allocation7 + $0x458] sm:$0xff]  ;;  %v1383_v2 = vld [vmem:[#allocation7 + $0x340] sm:$0xff] }
 0x151   : > { %v1384_v58 = vld [vmem:[#allocation7 + $0x348] sm:$0xff] }
 0x152   : > { %1765 = vmatmul.mubr.f32.gmra.mrb[18].mxu0 %v7403_v7 }
 0x153   : > { %1769 = vmatprep.mubr.f32.mxu0 %v7274_v20  ;;  %5794 = vmatpush1.bf16.msra.mxu0 %v5793_v29  ;;  %v1368_v20 = vld [vmem:[#allocation7 + $0x2c8] sm:$0xff]  ;;  %v1415_v29 = vld [vmem:[#allocation7 + $0x440] sm:$0xff] }
 0x154   : > { %5795 = vmatprep.subr.bf16.mxu0 %v9197_v0  ;;  %v5802_v16 = vpack.c.bf16 %v1368_v20, %v1367_v26  ;;  %v5877_v1 = vpack.c.bf16 %v1416_v3, %v1415_v29  ;;  %v7497_v26 = vld [vmem:[#allocation2 + $0x16a] sm:$0xff]  ;;  %v1385_v29 = vld [vmem:[#allocation7 + $0x350] sm:$0xff] }
 0x155   : > { %v7499_v20 = vld [vmem:[#allocation2 + $0x188] sm:$0xff] }
 0x156   : > { %1770 = vmatmul.mubr.f32.gmra.mrb[20].mxu0 %v7408_v25  ;;  %v1386_v3 = vld [vmem:[#allocation7 + $0x358] sm:$0xff] }
 0x157   : > { %1774 = vmatprep.mubr.f32.mxu0 %v7279_v28  ;;  %5797 = vmatpush1.bf16.msra.mxu0 %v5796_v6  ;;  %v1370_v28 = vld [vmem:[#allocation7 + $0x2d8] sm:$0xff]  ;;  %v7493_v6 = vld [vmem:[#allocation2 + $0x180] sm:$0xff] }
 0x158   : > { %5798 = vmatprep.subr.bf16.mxu0 %v9197_v0  ;;  %v5805_v21 = vpack.c.bf16 %v1370_v28, %v1369_v8  ;;  %v7503_v28 = vld [vmem:[#allocation2 + $0x172] sm:$0xff] }
 0x15a   : > { %1775 = vmatmul.mubr.f32.gmra.mrb[22].mxu0 %v7413_v11 }
 0x15b   : > { %1779 = vmatprep.mubr.f32.mxu0 %v7284_v34  ;;  %5800 = vmatpush1.bf16.msra.mxu0 %v5799_v13  ;;  %v1372_v34 = vld [vmem:[#allocation7 + $0x2e8] sm:$0xff]  ;;  %v5881_v13 = vpack.c.bf16 %v1418_v9, %v1417_v10  ;;  %v1387_v10 = vld [vmem:[#allocation7 + $0x360] sm:$0xff] }
 0x15c   : > { %5801 = vmatprep.subr.bf16.mxu0 %v9197_v0  ;;  %v5808_v24 = vpack.c.bf16 %v1372_v34, %v1371_v18  ;;  %v1376_v18 = vld [vmem:[#allocation7 + $0x308] sm:$0xff]  ;;  %v1421_v34 = vld [vmem:[#allocation7 + $0x470] sm:$0xff] }
 0x15d   : > { %v1388_v9 = vld [vmem:[#allocation7 + $0x368] sm:$0xff] }
 0x15e   : > { %1780 = vmatmul.mubr.f32.gmra.mrb[24].mxu0 %v7418_v42 }
 0x15f   : > { %1784 = vmatprep.mubr.f32.mxu0 %v7289_v43  ;;  %5803 = vmatpush1.bf16.msra.mxu0 %v5802_v16  ;;  %v1374_v43 = vld [vmem:[#allocation7 + $0x2f8] sm:$0xff]  ;;  %v1420_v16 = vld [vmem:[#allocation7 + $0x468] sm:$0xff] }
 0x160   : > { %5804 = vmatprep.subr.bf16.mxu0 %v9197_v0  ;;  %v5811_v37 = vpack.c.bf16 %v1374_v43, %v1373_v30  ;;  %v670_v43 = vld [vmem:[#allocation2 + $0x19] sm:$0xff] }
 0x162   : > { %1785 = vmatmul.mubr.f32.gmra.mrb[26].mxu0 %v7423_v27 }
 0x163   : > { %1789 = vmatprep.mubr.f32.mxu0 %v7294_v36  ;;  %5806 = vmatpush1.bf16.msra.mxu0 %v5805_v21  ;;  %v7438_v36 = vld [vmem:[#allocation2 + $0xc2] sm:$0xff]  ;;  %v1375_v21 = vld [vmem:[#allocation7 + $0x300] sm:$0xff] }
 0x164   : > { %5807 = vmatprep.subr.bf16.mxu0 %v9197_v0 }
 0x166   : > { %1790 = vmatmul.mubr.f32.gmra.mrb[28].mxu0 %v7428_v32 }
 0x167   : > { %1794 = vmatprep.mubr.f32.mxu0 %v7299_v38  ;;  %5809 = vmatpush1.bf16.msra.mxu0 %v5808_v24  ;;  %v7443_v38 = vld [vmem:[#allocation2 + $0xca] sm:$0xff] }
 0x168   : > { %5810 = vmatprep.subr.bf16.mxu0 %v9197_v0  ;;  %v1422_v24 = vld [vmem:[#allocation7 + $0x478] sm:$0xff] }
 0x169   : > { %v5889_v30 = vpack.c.bf16 %v1422_v24, %v1421_v34  ;;  %v1393_v34 = vld [vmem:[#allocation7 + $0x390] sm:$0xff] }
 0x16a   : > { %1795 = vmatmul.mubr.f32.gmra.mrb[30].mxu0 %v7433_v12  ;;  %v6658_v24 = vld [vmem:[#allocation2 + $0x79] sm:$0xff] }
 0x16b   : > { %1799 = vmatprep.mubr.f32.mxu0 %v7303_v49  ;;  %5812 = vmatpush1.bf16.msra.mxu0 %v5811_v37  ;;  %v7451_v49 = vld [vmem:[#allocation2 + $0xe2] sm:$0xff]  ;;  %v5814_v37 = vpack.c.bf16 %v1376_v18, %v1375_v21 }
 0x16c   : > { %5813 = vmatprep.subr.bf16.mxu0 %v9197_v0  ;;  %v6657_v21 = vld [vmem:[#allocation2 + $0x69] sm:$0xff] }
 0x16e   : > { %1800 = vmatmul.mubr.f32.gmra.mrb[32].mxu0 %v7438_v36 }
 0x16f   : > { %1804 = vmatprep.mubr.f32.mxu0 %v7307_v41  ;;  %v7459_v41 = vld [vmem:[#allocation2 + $0xfa] sm:$0xff] }
 0x172   : > { %1805 = vmatmul.mubr.f32.gmra.mrb[34].mxu0 %v7443_v38 }
 0x173   : > { %1809 = vmatprep.mubr.f32.mxu0 %v7311_v45  ;;  %v7463_v45 = vld [vmem:[#allocation2 + $0x10a] sm:$0xff] }
 0x176   : > { %1810 = vmatmul.mubr.f32.gmra.mrb[36].mxu0 %v7447_v35 }
 0x177   : > { %1814 = vmatprep.mubr.f32.mxu0 %v7315_v48  ;;  %v7467_v48 = vld [vmem:[#allocation2 + $0x112] sm:$0xff] }
 0x17a   : > { %1815 = vmatmul.mubr.f32.gmra.mrb[38].mxu0 %v7451_v49 }
 0x17b   : > { %1819 = vmatprep.mubr.f32.mxu0 %v7319_v51  ;;  %v7471_v51 = vld [vmem:[#allocation2 + $0x122] sm:$0xff] }
 0x17e   : > { %1820 = vmatmul.mubr.f32.gmra.mrb[40].mxu0 %v7455_v39 }
 0x17f   : > { %1824 = vmatprep.mubr.f32.mxu0 %v7323_v53  ;;  %v1407_v53 = vld [vmem:[#allocation7 + $0x400] sm:$0xff] }
 0x180   : > { %v5861_v44 = vpack.c.bf16 %v1408_v14, %v1407_v53  ;;  %v1377_v53 = vld [vmem:[#allocation7 + $0x310] sm:$0xff]  ;;  %v1378_v14 = vld [vmem:[#allocation7 + $0x318] sm:$0xff] }
 0x182   : > { %1825 = vmatmul.mubr.f32.gmra.mrb[42].mxu0 %v7459_v41  ;;  %5862 = vmatprep.subr.bf16.mxu1 %v5861_v44 }
 0x183   : > { %1829 = vmatprep.mubr.f32.mxu0 %v7327_v56  ;;  %v7475_v56 = vld [vmem:[#allocation2 + $0x12a] sm:$0xff]  ;;  %5864 = vmatpush3.bf16.msra.mxu1 %v5861_v44  ;;  %v671_v44 = vld [vmem:[#allocation2 + $0x21] sm:$0xff] }
 0x186   : > { %1830 = vmatmul.mubr.f32.gmra.mrb[44].mxu0 %v7463_v45 }
 0x187   : > { %1834 = vmatprep.mubr.f32.mxu0 %v7331_v59  ;;  %v1409_v59 = vld [vmem:[#allocation7 + $0x410] sm:$0xff] }
 0x188   : > { %v5865_v46 = vpack.c.bf16 %v1410_v47, %v1409_v59  ;;  %v5817_v59 = vpack.c.bf16 %v1378_v14, %v1377_v53  ;;  %v1379_v47 = vld [vmem:[#allocation7 + $0x320] sm:$0xff]  ;;  %v1397_v14 = vld [vmem:[#allocation7 + $0x3b0] sm:$0xff] }
 0x18a   : > { %1835 = vmatmul.mubr.f32.gmra.mrb[46].mxu0 %v7467_v48  ;;  %5866 = vmatprep.subr.bf16.mxu1 %v5865_v46 }
 0x18b   : > { %1839 = vmatprep.mubr.f32.mxu0 %v7335_v60  ;;  %v7479_v60 = vld [vmem:[#allocation2 + $0x13a] sm:$0xff]  ;;  %5868 = vmatpush3.bf16.msra.mxu1 %v5865_v46 }
 0x18c   : > { %5870 = vmatprep.subr.bf16.mxu1 %v5869_v52  ;;  %v1380_v46 = vld [vmem:[#allocation7 + $0x328] sm:$0xff] }
 0x18d   : > { %v5820_v50 = vpack.c.bf16 %v1380_v46, %v1379_v47  ;;  %v1399_v47 = vld [vmem:[#allocation7 + $0x3c0] sm:$0xff]  ;;  %v6661_v46 = vld [vmem:[#allocation2 + $0x99] sm:$0xff] }
 0x18e   : > { %1840 = vmatmul.mubr.f32.gmra.mrb[48].mxu0 %v7471_v51 }
 0x18f   : > { %1844 = vmatprep.mubr.f32.mxu0 %v7343_v61  ;;  %v7483_v61 = vld [vmem:[#allocation2 + $0x142] sm:$0xff]  ;;  %5872 = vmatpush3.bf16.msra.mxu1 %v5869_v52  ;;  %v7520_v52 = vld [vmem:[#allocation2 + $0x39] sm:$0xff] }
 0x190   : > { %5874 = vmatprep.subr.bf16.mxu1 %v5873_v57 }
 0x192   : > { %1845 = vmatmul.mubr.f32.gmra.mrb[50].mxu0 %v7475_v56 }
 0x193   : > { %1849 = vmatprep.mubr.f32.mxu0 %v7347_v4  ;;  %v7487_v4 = vld [vmem:[#allocation2 + $0x152] sm:$0xff]  ;;  %5876 = vmatpush3.bf16.msra.mxu1 %v5873_v57  ;;  %v7527_v57 = vld [vmem:[#allocation2 + $0x49] sm:$0xff] }
 0x194   : > { %5878 = vmatprep.subr.bf16.mxu1 %v5877_v1 }
 0x196   : > { %1850 = vmatmul.mubr.f32.gmra.mrb[52].mxu0 %v7479_v60 }
 0x197   : > { %1854 = vmatprep.mubr.f32.mxu0 %v7351_v62  ;;  %v7491_v62 = vld [vmem:[#allocation2 + $0x15a] sm:$0xff]  ;;  %5880 = vmatpush3.bf16.msra.mxu1 %v5877_v1  ;;  %v7534_v1 = vld [vmem:[#allocation2 + $0x51] sm:$0xff] }
 0x198   : > { %5882 = vmatprep.subr.bf16.mxu1 %v5881_v13 }
 0x19a   : > { %1855 = vmatmul.mubr.f32.gmra.mrb[54].mxu0 %v7483_v61 }
 0x19b   : > { %1859 = vmatprep.mubr.f32.mxu0 %v7359_v5  ;;  %v394_v5 = vld [vmem:[#allocation2 + $0x18f] sm:$0x1]  ;;  %5884 = vmatpush3.bf16.msra.mxu1 %v5881_v13  ;;  %v1389_v13 = vld [vmem:[#allocation7 + $0x370] sm:$0xff] }
 0x19c   : > { %412 = vst [vmem:[#allocation2 + $0x191] sm:$0x1] %v394_v5  ;;  %v7541_v5 = vld [vmem:[#allocation2 + $0x61] sm:$0xff] }
 0x19e   : > { %1860 = vmatmul.mubr.f32.gmra.mrb[56].mxu0 %v7487_v4 }
 0x19f   : > { %1864 = vmatprep.mubr.f32.mxu0 %v7363_v63  ;;  %v1419_v63 = vld [vmem:[#allocation7 + $0x460] sm:$0xff] }
 0x1a0   : > { %v5885_v8 = vpack.c.bf16 %v1420_v16, %v1419_v63  ;;  %v1390_v63 = vld [vmem:[#allocation7 + $0x378] sm:$0xff] }
 0x1a1   : > { %v5835_v16 = vpack.c.bf16 %v1390_v63, %v1389_v13  ;;  %v6667_v13 = vld [vmem:[#allocation2 + $0xe1] sm:$0xff]  ;;  %v6669_v63 = vld [vmem:[#allocation2 + $0xf9] sm:$0xff] }
 0x1a2   : > { %1865 = vmatmul.mubr.f32.gmra.mrb[58].mxu0 %v7491_v62  ;;  %5886 = vmatprep.subr.bf16.mxu1 %v5885_v8 }
 0x1a3   : > { %1869 = vmatprep.mubr.f32.mxu0 %v7493_v6  ;;  %5888 = vmatpush3.bf16.msra.mxu1 %v5885_v8  ;;  %v1392_v8 = vld [vmem:[#allocation7 + $0x388] sm:$0xff] }
 0x1a4   : > { %5890 = vmatprep.subr.bf16.mxu1 %v5889_v30 }
 0x1a6   : > { %1870 = vmatmul.mubr.f32.gmra.mrb[60].mxu0 %v7497_v26 }
 0x1a7   : > { %1874 = vmatprep.mubr.f32.mxu0 %v7499_v20  ;;  %5892 = vmatpush3.bf16.msra.mxu1 %v5889_v30 }
 0x1a8   : > { %5893 = vmatprep.subr.bf16.mxu1 %v9197_v0 }
 0x1aa   : > { %1875 = vmatmul.mubr.f32.gmra.mrb[62].mxu0 %v7503_v28  ;;  %5542 = vmatmul.mubr.f32.vlgmr.msra.gmra.mrb[0].mxu1 %v7383_v33 }
 0x1ab   : > { %1944 = vmatprep.mubr.f32.mxu0 %v7370_v17  ;;  %5544 = vmatprep.mubr.f32.mxu1 %v7388_v40  ;;  %v7513_v17 = vld [vmem:[#allocation2 + $0x31] sm:$0xff] }
 0x1ae   : > { %1945 = vmatmul.mubr.f32.vlgmr.msra.gmra.mrb[0].mxu0 %v670_v43  ;;  %5545 = vmatmul.mubr.f32.gmra.mrb[2].mxu1 %v7393_v19  ;;  %v1395_v43 = vld [vmem:[#allocation7 + $0x3a0] sm:$0xff] }
 0x1af   : > { %5815 = vmatpush1.bf16.msra.mxu0 %v5814_v37  ;;  %1949 = vmatprep.mubr.f32.mxu0 %v7375_v15  ;;  %v1381_v15 = vld [vmem:[#allocation7 + $0x330] sm:$0xff] }
 0x1b0   : > { %5816 = vmatprep.subr.bf16.mxu0 %v9197_v0  ;;  %5547 = vmatprep.mubr.f32.mxu1 %v7398_v22  ;;  %v6659_v37 = vld [vmem:[#allocation2 + $0x81] sm:$0xff] }
 0x1b2   : > { %1950 = vmatmul.mubr.f32.gmra.mrb[2].mxu0 %v671_v44  ;;  %5548 = vmatmul.mubr.f32.gmra.mrb[4].mxu1 %v7403_v7  ;;  %v6660_v44 = vld [vmem:[#allocation2 + $0x91] sm:$0xff] }
 0x1b3   : > { %1954 = vmatprep.mubr.f32.mxu0 %v7233_v31  ;;  %5818 = vmatpush1.bf16.msra.mxu0 %v5817_v59  ;;  %v5823_v31 = vpack.c.bf16 %v1382_v54, %v1381_v15  ;;  %v1401_v15 = vld [vmem:[#allocation7 + $0x3d0] sm:$0xff]  ;;  %v6662_v54 = vld [vmem:[#allocation2 + $0xa9] sm:$0xff] }
 0x1b4   : > { %5819 = vmatprep.subr.bf16.mxu0 %v9197_v0  ;;  %5550 = vmatprep.mubr.f32.mxu1 %v7408_v25 }
 0x1b6   : > { %1955 = vmatmul.mubr.f32.gmra.mrb[4].mxu0 %v7513_v17  ;;  %5551 = vmatmul.mubr.f32.gmra.mrb[6].mxu1 %v7413_v11 }
 0x1b7   : > { %1959 = vmatprep.mubr.f32.mxu0 %v7383_v33  ;;  %5821 = vmatpush1.bf16.msra.mxu0 %v5820_v50  ;;  %v5826_v33 = vpack.c.bf16 %v1384_v58, %v1383_v2  ;;  %v1403_v2 = vld [vmem:[#allocation7 + $0x3e0] sm:$0xff] }
 0x1b8   : > { %5822 = vmatprep.subr.bf16.mxu0 %v9197_v0  ;;  %5553 = vmatprep.mubr.f32.mxu1 %v7418_v42  ;;  %v6663_v58 = vld [vmem:[#allocation2 + $0xb1] sm:$0xff] }
 0x1ba   : > { %1960 = vmatmul.mubr.f32.gmra.mrb[6].mxu0 %v7520_v52  ;;  %5554 = vmatmul.mubr.f32.gmra.mrb[8].mxu1 %v7423_v27 }
 0x1bb   : > { %1964 = vmatprep.mubr.f32.mxu0 %v7388_v40  ;;  %5824 = vmatpush1.bf16.msra.mxu0 %v5823_v31  ;;  %v5829_v40 = vpack.c.bf16 %v1386_v3, %v1385_v29  ;;  %v764_v29 = vld [vmem:[#allocation2 + $0x182] sm:$0xff] }
 0x1bc   : > { %5825 = vmatprep.subr.bf16.mxu0 %v9197_v0  ;;  %5556 = vmatprep.mubr.f32.mxu1 %v7428_v32  ;;  %v1406_v3 = vld [vmem:[#allocation7 + $0x3f8] sm:$0xff] }
 0x1be   : > { %1965 = vmatmul.mubr.f32.gmra.mrb[8].mxu0 %v7527_v57  ;;  %5557 = vmatmul.mubr.f32.gmra.mrb[10].mxu1 %v7433_v12 }
 0x1bf   : > { %1969 = vmatprep.mubr.f32.mxu0 %v7393_v19  ;;  %5827 = vmatpush1.bf16.msra.mxu0 %v5826_v33  ;;  %v5832_v19 = vpack.c.bf16 %v1388_v9, %v1387_v10  ;;  %v765_v9 = vld [vmem:[#allocation2 + $0x18a] sm:$0xff] }
 0x1c0   : > { %5828 = vmatprep.subr.bf16.mxu0 %v9197_v0  ;;  %5559 = vmatprep.mubr.f32.mxu1 %v7438_v36 }
 0x1c2   : > { %1970 = vmatmul.mubr.f32.gmra.mrb[10].mxu0 %v7534_v1  ;;  %5560 = vmatmul.mubr.f32.gmra.mrb[12].mxu1 %v7443_v38 }
 0x1c3   : > { %1974 = vmatprep.mubr.f32.mxu0 %v7398_v22  ;;  %5830 = vmatpush1.bf16.msra.mxu0 %v5829_v40  ;;  %v1391_v22 = vld [vmem:[#allocation7 + $0x380] sm:$0xff]  ;;  %v6664_v40 = vld [vmem:[#allocation2 + $0xc1] sm:$0xff] }
 0x1c4   : > { %5831 = vmatprep.subr.bf16.mxu0 %v9197_v0  ;;  %5562 = vmatprep.mubr.f32.mxu1 %v7447_v35  ;;  %v5838_v18 = vpack.c.bf16 %v1392_v8, %v1391_v22  ;;  %v6678_v22 = vld [vmem:[#allocation2 + $0x169] sm:$0xff] }
 0x1c5   : > { %v801_v8 = vld [vmem:[#allocation2 + $0x48] sm:$0xff] }
 0x1c6   : > { %1975 = vmatmul.mubr.f32.gmra.mrb[12].mxu0 %v7541_v5  ;;  %5563 = vmatmul.mubr.f32.gmra.mrb[14].mxu1 %v7451_v49 }
 0x1c7   : > { %1979 = vmatprep.mubr.f32.mxu0 %v7403_v7  ;;  %5833 = vmatpush1.bf16.msra.mxu0 %v5832_v19  ;;  %v1394_v7 = vld [vmem:[#allocation7 + $0x398] sm:$0xff]  ;;  %v6666_v19 = vld [vmem:[#allocation2 + $0xd9] sm:$0xff] }
 0x1c8   : > { %5834 = vmatprep.subr.bf16.mxu0 %v9197_v0  ;;  %5565 = vmatprep.mubr.f32.mxu1 %v7455_v39  ;;  %v5841_v30 = vpack.c.bf16 %v1394_v7, %v1393_v34  ;;  %v870_v34 = vld [vmem:[#allocation2 + $0x81] sm:$0xff]  ;;  %v871_v7 = vld [vmem:[#allocation2 + $0x91] sm:$0xff] }
 0x1ca   : > { %1980 = vmatmul.mubr.f32.gmra.mrb[14].mxu0 %v6657_v21  ;;  %5566 = vmatmul.mubr.f32.gmra.mrb[16].mxu1 %v7459_v41  ;;  %v803_v21 = vld [vmem:[#allocation2 + $0x60] sm:$0xff] }
 0x1cb   : > { %1984 = vmatprep.mubr.f32.mxu0 %v7408_v25  ;;  %5836 = vmatpush1.bf16.msra.mxu0 %v5835_v16  ;;  %v1396_v25 = vld [vmem:[#allocation7 + $0x3a8] sm:$0xff]  ;;  %v6670_v16 = vld [vmem:[#allocation2 + $0x109] sm:$0xff] }
 0x1cc   : > { %5837 = vmatprep.subr.bf16.mxu0 %v9197_v0  ;;  %5568 = vmatprep.mubr.f32.mxu1 %v7463_v45  ;;  %v5844_v53 = vpack.c.bf16 %v1396_v25, %v1395_v43  ;;  %v809_v43 = vld [vmem:[#allocation2 + $0xa8] sm:$0xff]  ;;  %v874_v25 = vld [vmem:[#allocation2 + $0xb1] sm:$0xff] }
 0x1ce   : > { %1985 = vmatmul.mubr.f32.gmra.mrb[16].mxu0 %v6658_v24  ;;  %5569 = vmatmul.mubr.f32.gmra.mrb[18].mxu1 %v7467_v48  ;;  %v872_v24 = vld [vmem:[#allocation2 + $0x99] sm:$0xff] }
 0x1cf   : > { %1989 = vmatprep.mubr.f32.mxu0 %v7413_v11  ;;  %5839 = vmatpush1.bf16.msra.mxu0 %v5838_v18  ;;  %v1398_v11 = vld [vmem:[#allocation7 + $0x3b8] sm:$0xff]  ;;  %v869_v18 = vld [vmem:[#allocation2 + $0x79] sm:$0xff] }
 0x1d0   : > { %5840 = vmatprep.subr.bf16.mxu0 %v9197_v0  ;;  %5571 = vmatprep.mubr.f32.mxu1 %v7471_v51  ;;  %v5847_v59 = vpack.c.bf16 %v1398_v11, %v1397_v14  ;;  %v811_v14 = vld [vmem:[#allocation2 + $0xc0] sm:$0xff]  ;;  %v876_v11 = vld [vmem:[#allocation2 + $0xc9] sm:$0xff] }
 0x1d2   : > { %1990 = vmatmul.mubr.f32.gmra.mrb[18].mxu0 %v6659_v37  ;;  %5572 = vmatmul.mubr.f32.gmra.mrb[20].mxu1 %v7475_v56  ;;  %v810_v37 = vld [vmem:[#allocation2 + $0xb0] sm:$0xff] }
 0x1d3   : > { %1994 = vmatprep.mubr.f32.mxu0 %v7418_v42  ;;  %5842 = vmatpush1.bf16.msra.mxu0 %v5841_v30  ;;  %v1400_v42 = vld [vmem:[#allocation7 + $0x3c8] sm:$0xff]  ;;  %v873_v30 = vld [vmem:[#allocation2 + $0xa9] sm:$0xff] }
 0x1d4   : > { %5843 = vmatprep.subr.bf16.mxu0 %v9197_v0  ;;  %5574 = vmatprep.mubr.f32.mxu1 %v7479_v60  ;;  %v5850_v50 = vpack.c.bf16 %v1400_v42, %v1399_v47  ;;  %v813_v47 = vld [vmem:[#allocation2 + $0xd8] sm:$0xff]  ;;  %v878_v42 = vld [vmem:[#allocation2 + $0xe1] sm:$0xff] }
 0x1d6   : > { %1995 = vmatmul.mubr.f32.gmra.mrb[20].mxu0 %v6660_v44  ;;  %5575 = vmatmul.mubr.f32.gmra.mrb[22].mxu1 %v7483_v61  ;;  %v812_v44 = vld [vmem:[#allocation2 + $0xc8] sm:$0xff] }
 0x1d7   : > { %1999 = vmatprep.mubr.f32.mxu0 %v7423_v27  ;;  %5845 = vmatpush1.bf16.msra.mxu0 %v5844_v53  ;;  %v1402_v27 = vld [vmem:[#allocation7 + $0x3d8] sm:$0xff] }
 0x1d8   : > { %5846 = vmatprep.subr.bf16.mxu0 %v9197_v0  ;;  %5577 = vmatprep.mubr.f32.mxu1 %v7487_v4  ;;  %v5853_v31 = vpack.c.bf16 %v1402_v27, %v1401_v15  ;;  %v875_v53 = vld [vmem:[#allocation2 + $0xc1] sm:$0xff]  ;;  %v815_v15 = vld [vmem:[#allocation2 + $0xf0] sm:$0xff]  ;;  %v880_v27 = vld [vmem:[#allocation2 + $0xf9] sm:$0xff] }
 0x1da   : > { %2000 = vmatmul.mubr.f32.gmra.mrb[22].mxu0 %v6661_v46  ;;  %5578 = vmatmul.mubr.f32.gmra.mrb[24].mxu1 %v7491_v62  ;;  %v814_v46 = vld [vmem:[#allocation2 + $0xe0] sm:$0xff] }
 0x1db   : > { %2004 = vmatprep.mubr.f32.mxu0 %v7428_v32  ;;  %5848 = vmatpush1.bf16.msra.mxu0 %v5847_v59  ;;  %v1404_v32 = vld [vmem:[#allocation7 + $0x3e8] sm:$0xff] }
 0x1dc   : > { %5849 = vmatprep.subr.bf16.mxu0 %v9197_v0  ;;  %5580 = vmatprep.mubr.f32.mxu1 %v7497_v26  ;;  %v5856_v33 = vpack.c.bf16 %v1404_v32, %v1403_v2  ;;  %v877_v59 = vld [vmem:[#allocation2 + $0xd9] sm:$0xff]  ;;  %v817_v2 = vld [vmem:[#allocation2 + $0x108] sm:$0xff]  ;;  %v882_v32 = vld [vmem:[#allocation2 + $0x111] sm:$0xff] }
 0x1de   : > { %2005 = vmatmul.mubr.f32.gmra.mrb[24].mxu0 %v6662_v54  ;;  %5581 = vmatmul.mubr.f32.gmra.mrb[26].mxu1 %v7503_v28  ;;  %v816_v54 = vld [vmem:[#allocation2 + $0xf8] sm:$0xff] }
 0x1df   : > { %2009 = vmatprep.mubr.f32.mxu0 %v7433_v12  ;;  %5851 = vmatpush1.bf16.msra.mxu0 %v5850_v50  ;;  %v1405_v12 = vld [vmem:[#allocation7 + $0x3f0] sm:$0xff]  ;;  %v879_v50 = vld [vmem:[#allocation2 + $0xf1] sm:$0xff] }
 0x1e0   : > { %5852 = vmatprep.subr.bf16.mxu0 %v9197_v0  ;;  %5583 = vmatprep.mubr.f32.mxu1 %v764_v29  ;;  %v5859_v10 = vpack.c.bf16 %v1406_v3, %v1405_v12  ;;  %v884_v12 = vld [vmem:[#allocation2 + $0x129] sm:$0xff] }
 0x1e1   : > { %v820_v3 = vld [vmem:[#allocation2 + $0x128] sm:$0xff] }
 0x1e2   : > { %2010 = vmatmul.mubr.f32.gmra.mrb[26].mxu0 %v6663_v58  ;;  %5584 = vmatmul.mubr.f32.gmra.mrb[28].mxu1 %v765_v9  ;;  %v818_v58 = vld [vmem:[#allocation2 + $0x110] sm:$0xff] }
 0x1e3   : > { %2014 = vmatprep.mubr.f32.mxu0 %v7438_v36  ;;  %5854 = vmatpush1.bf16.msra.mxu0 %v5853_v31  ;;  %v6665_v36 = vld [vmem:[#allocation2 + $0xc9] sm:$0xff] }
 0x1e4   : > { %5855 = vmatprep.subr.bf16.mxu0 %v9197_v0  ;;  %v881_v31 = vld [vmem:[#allocation2 + $0x109] sm:$0xff] }
 0x1e6   : > { %2015 = vmatmul.mubr.f32.gmra.mrb[28].mxu0 %v6664_v40  ;;  %v885_v40 = vld [vmem:[#allocation2 + $0x139] sm:$0xff] }
 0x1e7   : > { %2019 = vmatprep.mubr.f32.mxu0 %v7443_v38  ;;  %5857 = vmatpush1.bf16.msra.mxu0 %v5856_v33  ;;  %v6668_v38 = vld [vmem:[#allocation2 + $0xf1] sm:$0xff]  ;;  %v883_v33 = vld [vmem:[#allocation2 + $0x121] sm:$0xff] }
 0x1e8   : > { %5858 = vmatprep.subr.bf16.mxu0 %v9197_v0 }
 0x1ea   : > { %2020 = vmatmul.mubr.f32.gmra.mrb[30].mxu0 %v6665_v36  ;;  %v886_v36 = vld [vmem:[#allocation2 + $0x141] sm:$0xff] }
 0x1eb   : > { %2024 = vmatprep.mubr.f32.mxu0 %v7447_v35  ;;  %5860 = vmatpush1.bf16.msra.mxu0 %v5859_v10  ;;  %v6671_v35 = vld [vmem:[#allocation2 + $0x111] sm:$0xff] }
 0x1ec   : > { %v821_v10 = vld [vmem:[#allocation2 + $0x138] sm:$0xff] }
 0x1ee   : > { %2025 = vmatmul.mubr.f32.gmra.mrb[32].mxu0 %v6666_v19 }
 0x1ef   : > { %2029 = vmatprep.mubr.f32.mxu0 %v7451_v49  ;;  %v6672_v49 = vld [vmem:[#allocation2 + $0x121] sm:$0xff] }
 0x1f2   : > { %2030 = vmatmul.mubr.f32.gmra.mrb[34].mxu0 %v6667_v13  ;;  %v822_v13 = vld [vmem:[#allocation2 + $0x140] sm:$0xff] }
 0x1f3   : > { %2034 = vmatprep.mubr.f32.mxu0 %v7455_v39  ;;  %v6673_v39 = vld [vmem:[#allocation2 + $0x129] sm:$0xff] }
 0x1f6   : > { %2035 = vmatmul.mubr.f32.gmra.mrb[36].mxu0 %v6668_v38  ;;  %v887_v38 = vld [vmem:[#allocation2 + $0x151] sm:$0xff] }
 0x1f7   : > { %2039 = vmatprep.mubr.f32.mxu0 %v7459_v41  ;;  %v6674_v41 = vld [vmem:[#allocation2 + $0x139] sm:$0xff] }
 0x1fa   : > { %2040 = vmatmul.mubr.f32.gmra.mrb[38].mxu0 %v6669_v63 }
 0x1fb   : > { %2044 = vmatprep.mubr.f32.mxu0 %v7463_v45  ;;  %v6675_v45 = vld [vmem:[#allocation2 + $0x141] sm:$0xff] }
 0x1fe   : > { %2045 = vmatmul.mubr.f32.gmra.mrb[40].mxu0 %v6670_v16  ;;  %v823_v16 = vld [vmem:[#allocation2 + $0x150] sm:$0xff] }
 0x1ff   : > { %2049 = vmatprep.mubr.f32.mxu0 %v7467_v48  ;;  %v6676_v48 = vld [vmem:[#allocation2 + $0x151] sm:$0xff] }
 0x202   : > { %2050 = vmatmul.mubr.f32.gmra.mrb[42].mxu0 %v6671_v35 }
 0x203   : > { %2054 = vmatprep.mubr.f32.mxu0 %v7471_v51  ;;  %v6677_v51 = vld [vmem:[#allocation2 + $0x159] sm:$0xff] }
 0x206   : > { %2055 = vmatmul.mubr.f32.gmra.mrb[44].mxu0 %v6672_v49  ;;  %v888_v49 = vld [vmem:[#allocation2 + $0x159] sm:$0xff] }
 0x207   : > { %2059 = vmatprep.mubr.f32.mxu0 %v7475_v56  ;;  %v359_v56 = vld [vmem:[#allocation2 + $0x19a] sm:$0x1] }
 0x208   : > { %377 = vst [vmem:[#allocation2 + $0x198] sm:$0x1] %v359_v56  ;;  %v890_v56 = vld [vmem:[#allocation2 + $0x171] sm:$0xff] }
 0x20a   : > { %2060 = vmatmul.mubr.f32.gmra.mrb[46].mxu0 %v6673_v39  ;;  %v824_v39 = vld [vmem:[#allocation2 + $0x158] sm:$0xff] }
 0x20b   : > { %2064 = vmatprep.mubr.f32.mxu0 %v7479_v60  ;;  %v395_v60 = vld [vmem:[#allocation2 + $0x1a7] sm:$0x1] }
 0x20c   : > { %413 = vst [vmem:[#allocation2 + $0x1a9] sm:$0x1] %v395_v60 }
 0x20e   : > { %2065 = vmatmul.mubr.f32.gmra.mrb[48].mxu0 %v6674_v41  ;;  %v889_v41 = vld [vmem:[#allocation2 + $0x169] sm:$0xff] }
 0x20f   : > { %2069 = vmatprep.mubr.f32.mxu0 %v7483_v61  ;;  %v6679_v61 = vld [vmem:[#allocation2 + $0x171] sm:$0xff] }
 0x212   : > { %2070 = vmatmul.mubr.f32.gmra.mrb[50].mxu0 %v6675_v45 }
 0x213   : > { %2074 = vmatprep.mubr.f32.mxu0 %v7487_v4  ;;  %v957_v4 = vld [vmem:[#allocation2 + $0x19a] sm:$0xff] }
 0x214   : > { %5586 = vmatprep.mubr.f32.mxu1 %v957_v4 }
 0x216   : > { %2075 = vmatmul.mubr.f32.gmra.mrb[52].mxu0 %v6676_v48  ;;  %v825_v48 = vld [vmem:[#allocation2 + $0x168] sm:$0xff] }
 0x217   : > { %2079 = vmatprep.mubr.f32.mxu0 %v7491_v62  ;;  %v958_v62 = vld [vmem:[#allocation2 + $0x1a2] sm:$0xff] }
 0x218   : > { %5587 = vmatmul.mubr.f32.gmra.mrb[30].mxu1 %v958_v62  ;;  %v6681_v62 = vld [vmem:[#allocation2 + $0x189] sm:$0xff] }
 0x21a   : > { %2080 = vmatmul.mubr.f32.gmra.mrb[54].mxu0 %v6677_v51 }
 0x21b   : > { %2084 = vmatprep.mubr.f32.mxu0 %v7497_v26  ;;  %v799_v26 = vld [vmem:[#allocation2 + $0x30] sm:$0xff] }
 0x21e   : > { %2085 = vmatmul.mubr.f32.gmra.mrb[56].mxu0 %v6678_v22  ;;  %v826_v22 = vld [vmem:[#allocation2 + $0x170] sm:$0xff] }
 0x21f   : > { %2089 = vmatprep.mubr.f32.mxu0 %v7503_v28  ;;  %v800_v28 = vld [vmem:[#allocation2 + $0x38] sm:$0xff] }
 0x222   : > { %2090 = vmatmul.mubr.f32.gmra.mrb[58].mxu0 %v6679_v61  ;;  %v6680_v61 = vld [vmem:[#allocation2 + $0x181] sm:$0xff] }
 0x223   : > { %2094 = vmatprep.mubr.f32.mxu0 %v764_v29  ;;  %v819_v29 = vld [vmem:[#allocation2 + $0x120] sm:$0xff] }
 0x226   : > { %2095 = vmatmul.mubr.f32.gmra.mrb[60].mxu0 %v7338_v55  ;;  %v802_v55 = vld [vmem:[#allocation2 + $0x50] sm:$0xff] }
 0x227   : > { %2099 = vmatprep.mubr.f32.mxu0 %v765_v9 }
 0x22a   : > { %2100 = vmatmul.mubr.f32.gmra.mrb[62].mxu0 %v7354_v23  ;;  %v868_v23 = vld [vmem:[#allocation2 + $0x69] sm:$0xff] }
 0x22b   : > { %2169 = vmatprep.mubr.f32.mxu0 %v7513_v17  ;;  %v804_v17 = vld [vmem:[#allocation2 + $0x68] sm:$0xff] }
 0x22e   : > { %2170 = vmatmul.mubr.f32.vlgmr.msra.gmra.mrb[0].mxu0 %v799_v26  ;;  %v893_v26 = vld [vmem:[#allocation2 + $0x199] sm:$0xff] }
 0x22f   : > { %2174 = vmatprep.mubr.f32.mxu0 %v7520_v52  ;;  %v805_v52 = vld [vmem:[#allocation2 + $0x78] sm:$0xff] }
 0x232   : > { %2175 = vmatmul.mubr.f32.gmra.mrb[2].mxu0 %v800_v28 }
 0x233   : > { %2179 = vmatprep.mubr.f32.mxu0 %v7527_v57  ;;  %v806_v57 = vld [vmem:[#allocation2 + $0x80] sm:$0xff] }
 0x236   : > { %2180 = vmatmul.mubr.f32.gmra.mrb[4].mxu0 %v801_v8  ;;  %v829_v8 = vld [vmem:[#allocation2 + $0x198] sm:$0xff] }
 0x237   : > { %2184 = vmatprep.mubr.f32.mxu0 %v7534_v1  ;;  %v807_v1 = vld [vmem:[#allocation2 + $0x90] sm:$0xff] }
 0x23a   : > { %2185 = vmatmul.mubr.f32.gmra.mrb[6].mxu0 %v802_v55 }
 0x23b   : > { %2189 = vmatprep.mubr.f32.mxu0 %v7541_v5  ;;  %v808_v5 = vld [vmem:[#allocation2 + $0x98] sm:$0xff] }
 0x23e   : > { %2190 = vmatmul.mubr.f32.gmra.mrb[8].mxu0 %v803_v21  ;;  %v894_v21 = vld [vmem:[#allocation2 + $0x1a1] sm:$0xff] }
 0x23f   : > { %2194 = vmatprep.mubr.f32.mxu0 %v868_v23  ;;  %v830_v23 = vld [vmem:[#allocation2 + $0x1a0] sm:$0xff] }
 0x242   : > { %2195 = vmatmul.mubr.f32.gmra.mrb[10].mxu0 %v804_v17 }
 0x243   : > { %2199 = vmatprep.mubr.f32.mxu0 %v869_v18 }
 0x246   : > { %2200 = vmatmul.mubr.f32.gmra.mrb[12].mxu0 %v805_v52 }
 0x247   : > { %2204 = vmatprep.mubr.f32.mxu0 %v870_v34 }
 0x24a   : > { %2205 = vmatmul.mubr.f32.gmra.mrb[14].mxu0 %v806_v57 }
 0x24b   : > { %2209 = vmatprep.mubr.f32.mxu0 %v871_v7 }
 0x24e   : > { %2210 = vmatmul.mubr.f32.gmra.mrb[16].mxu0 %v807_v1 }
 0x24f   : > { %2214 = vmatprep.mubr.f32.mxu0 %v872_v24 }
 0x252   : > { %2215 = vmatmul.mubr.f32.gmra.mrb[18].mxu0 %v808_v5 }
 0x253   : > { %2219 = vmatprep.mubr.f32.mxu0 %v873_v30 }
 0x256   : > { %2220 = vmatmul.mubr.f32.gmra.mrb[20].mxu0 %v809_v43 }
 0x257   : > { %2224 = vmatprep.mubr.f32.mxu0 %v874_v25 }
 0x25a   : > { %2225 = vmatmul.mubr.f32.gmra.mrb[22].mxu0 %v810_v37 }
 0x25b   : > { %2229 = vmatprep.mubr.f32.mxu0 %v875_v53 }
 0x25e   : > { %2230 = vmatmul.mubr.f32.gmra.mrb[24].mxu0 %v811_v14 }
 0x25f   : > { %2234 = vmatprep.mubr.f32.mxu0 %v876_v11 }
 0x262   : > { %2235 = vmatmul.mubr.f32.gmra.mrb[26].mxu0 %v812_v44 }
 0x263   : > { %2239 = vmatprep.mubr.f32.mxu0 %v877_v59 }
 0x266   : > { %2240 = vmatmul.mubr.f32.gmra.mrb[28].mxu0 %v813_v47  ;;  %v3736_v47 = vld [vmem:[#allocation9] sm:$0xff] }
 0x267   : > { %2244 = vmatprep.mubr.f32.mxu0 %v878_v42  ;;  %v3737_v42 = vld [vmem:[#allocation9 + $0x8] sm:$0xff] }
 0x26a   : > { %2245 = vmatmul.mubr.f32.gmra.mrb[30].mxu0 %v814_v46  ;;  %v5894_v46 = vpack.c.bf16 %v3737_v42, %v3736_v47  ;;  %v3745_v47 = vld [vmem:[#allocation9 + $0x48] sm:$0xff] }
 0x26b   : > { %2249 = vmatprep.mubr.f32.mxu0 %v879_v50 }
 0x26c   : > { %5895 = vmatpush1.bf16.msra.mxu1 %v5894_v46 }
 0x26d   : > { %5896 = vmatprep.subr.bf16.mxu1 %v9197_v0 }
 0x26e   : > { %2250 = vmatmul.mubr.f32.gmra.mrb[32].mxu0 %v815_v15 }
 0x26f   : > { %2254 = vmatprep.mubr.f32.mxu0 %v880_v27  ;;  %v7671_v27 = vld [vmem:[%s9190_s2] ss:$0 sm:$0xff] }
 0x272   : > { %2255 = vmatmul.mubr.f32.gmra.mrb[34].mxu0 %v816_v54 }
 0x273   : > { %2259 = vmatprep.mubr.f32.mxu0 %v881_v31 }
 0x276   : > { %2260 = vmatmul.mubr.f32.gmra.mrb[36].mxu0 %v817_v2 }
 0x277   : > { %2264 = vmatprep.mubr.f32.mxu0 %v882_v32 }
 0x27a   : > { %2265 = vmatmul.mubr.f32.gmra.mrb[38].mxu0 %v818_v58 }
 0x27b   : > { %2269 = vmatprep.mubr.f32.mxu0 %v883_v33 }
 0x27d   : > { %v7601_v9 = vpop.f32.mrb[0].mxu1 }
 0x27e   : > { %2270 = vmatmul.mubr.f32.gmra.mrb[40].mxu0 %v819_v29  ;;  %v7603_v19 = vpop.f32.mrb[1].mxu1 }
 0x27f   : > { %2274 = vmatprep.mubr.f32.mxu0 %v884_v12 }
 0x281   : > { %v7605_v63 = vpop.f32.mrb[2].mxu1 }
 0x282   : > { %2275 = vmatmul.mubr.f32.gmra.mrb[42].mxu0 %v820_v3  ;;  %v7607_v35 = vpop.f32.mrb[3].mxu1  ;;  %v3738_v3 = vld [vmem:[#allocation9 + $0x10] sm:$0xff] }
 0x283   : > { %2279 = vmatprep.mubr.f32.mxu0 %v885_v40  ;;  %v3739_v40 = vld [vmem:[#allocation9 + $0x18] sm:$0xff] }
 0x285   : > { %v7609_v45 = vpop.f32.mrb[4].mxu1 }
 0x286   : > { %2280 = vmatmul.mubr.f32.gmra.mrb[44].mxu0 %v821_v10  ;;  %v7611_v51 = vpop.f32.mrb[5].mxu1 }
 0x287   : > { %2284 = vmatprep.mubr.f32.mxu0 %v886_v36  ;;  %v5897_v36 = vpack.c.bf16 %v3739_v40, %v3738_v3 }
 0x289   : > { %v7613_v60 = vpop.f32.mrb[6].mxu1  ;;  %5898 = vmatpush1.bf16.msra.mxu1 %v5897_v36  ;;  %v3749_v36 = vld [vmem:[#allocation9 + $0x68] sm:$0xff] }
 0x28a   : > { %2285 = vmatmul.mubr.f32.gmra.mrb[46].mxu0 %v822_v13  ;;  %v7615_v4 = vpop.f32.mrb[7].mxu1  ;;  %5899 = vmatprep.subr.bf16.mxu1 %v9197_v0 }
 0x28b   : > { %2289 = vmatprep.mubr.f32.mxu0 %v887_v38 }
 0x28d   : > { %v7619_v28 = vpop.f32.mrb[8].mxu1 }
 0x28e   : > { %2290 = vmatmul.mubr.f32.gmra.mrb[48].mxu0 %v823_v16  ;;  %v7621_v55 = vpop.f32.mrb[9].mxu1 }
 0x28f   : > { %2294 = vmatprep.mubr.f32.mxu0 %v888_v49  ;;  %v3741_v49 = vld [vmem:[#allocation9 + $0x28] sm:$0xff] }
 0x291   : > { %v7623_v17 = vpop.f32.mrb[10].mxu1 }
 0x292   : > { %2295 = vmatmul.mubr.f32.gmra.mrb[50].mxu0 %v824_v39  ;;  %v7625_v18 = vpop.f32.mrb[11].mxu1 }
 0x293   : > { %2299 = vmatprep.mubr.f32.mxu0 %v889_v41 }
 0x296   : > { %2300 = vmatmul.mubr.f32.gmra.mrb[52].mxu0 %v825_v48 }
 0x297   : > { %2304 = vmatprep.mubr.f32.mxu0 %v890_v56 }
 0x29a   : > { %2305 = vmatmul.mubr.f32.gmra.mrb[54].mxu0 %v826_v22  ;;  %v3742_v22 = vld [vmem:[#allocation9 + $0x30] sm:$0xff] }
 0x29b   : > { %2309 = vmatprep.mubr.f32.mxu0 %v6680_v61  ;;  %v3743_v61 = vld [vmem:[#allocation9 + $0x38] sm:$0xff] }
 0x29e   : > { %2310 = vmatmul.mubr.f32.gmra.mrb[56].mxu0 %v7493_v6  ;;  %v7627_v6 = vpop.f32.mrb[12].mxu1 }
 0x29f   : > { %2314 = vmatprep.mubr.f32.mxu0 %v6681_v62  ;;  %v7629_v52 = vpop.f32.mrb[13].mxu1 }
 0x2a2   : > { %2315 = vmatmul.mubr.f32.gmra.mrb[58].mxu0 %v7499_v20  ;;  %v7631_v20 = vpop.f32.mrb[14].mxu1 }
 0x2a3   : > { %2319 = vmatprep.mubr.f32.mxu0 %v893_v26  ;;  %v7633_v34 = vpop.f32.mrb[15].mxu1 }
 0x2a4   : > { %v7635_v57 = vpop.f32.mrb[16].mxu1 }
 0x2a5   : > { %v7637_v7 = vpop.f32.mrb[17].mxu1 }
 0x2a6   : > { %2320 = vmatmul.mubr.f32.gmra.mrb[60].mxu0 %v829_v8  ;;  %v7639_v1 = vpop.f32.mrb[18].mxu1 }
 0x2a7   : > { %2324 = vmatprep.mubr.f32.mxu0 %v894_v21  ;;  %v7641_v24 = vpop.f32.mrb[19].mxu1 }
 0x2a8   : > { %v7643_v5 = vpop.f32.mrb[20].mxu1 }
 0x2a9   : > { %v7645_v30 = vpop.f32.mrb[21].mxu1 }
 0x2aa   : > { %2325 = vmatmul.mubr.f32.gmra.mrb[62].mxu0 %v830_v23  ;;  %v7647_v43 = vpop.f32.mrb[22].mxu1  ;;  %v3744_v23 = vld [vmem:[#allocation9 + $0x40] sm:$0xff] }
 0x2ab   : > { %v7649_v25 = vpop.f32.mrb[23].mxu1 }
 0x2ad   : > { %v7651_v37 = vpop.f32.mrb[24].mxu1 }
 0x2ae   : > { %v7653_v53 = vpop.f32.mrb[25].mxu1 }
 0x2b1   : > { %v7655_v14 = vpop.f32.mrb[26].mxu1 }
 0x2b2   : > { %v7657_v11 = vpop.f32.mrb[27].mxu1 }
 0x2b5   : > { %v7659_v44 = vpop.f32.mrb[28].mxu1 }
 0x2b6   : > { %v7661_v59 = vpop.f32.mrb[29].mxu1 }
 0x2eb   : > { %v7663_v50 = vpop.f32.mrb[30].mxu1 }
 0x2ec   : > { %v7665_v15 = vpop.f32.mrb[31].mxu1 }
 0x301   : > { %v2171_v54 = vpop.f32.mrb[0].mxu0 }
 0x302   : > { %v6133_v31 = vadd.f32 %v7671_v27, %v2171_v54  ;;  %v2173_v2 = vpop.f32.mrb[1].mxu0 }
 0x303   : > { %v3746_v2 = vld [vmem:[#allocation9 + $0x50] sm:$0xff] }
 0x304   : > { %v7675_v32 = vadd.f32 %v6133_v31, %v7603_v19  ;;  %v3740_v19 = vld [vmem:[#allocation9 + $0x20] sm:$0xff] }
 0x305   : > { %v2176_v58 = vpop.f32.mrb[2].mxu0  ;;  %v5900_v41 = vpack.c.bf16 %v3741_v49, %v3740_v19 }
 0x306   : > { %v6134_v33 = vadd.f32 %v7671_v27, %v2176_v58  ;;  %v2178_v29 = vpop.f32.mrb[3].mxu0  ;;  %v3747_v58 = vld [vmem:[#allocation9 + $0x58] sm:$0xff] }
 0x307   : > { %5901 = vmatpush1.bf16.msra.mxu1 %v5900_v41  ;;  %v3751_v41 = vld [vmem:[#allocation9 + $0x78] sm:$0xff] }
 0x308   : > { %v7679_v12 = vadd.f32 %v6134_v33, %v7601_v9  ;;  %5902 = vmatprep.subr.bf16.mxu1 %v9197_v0 }
 0x309   : > { %v2181_v10 = vpop.f32.mrb[4].mxu0 }
 0x30a   : > { %v6135_v13 = vadd.f32 %v7671_v27, %v2181_v10  ;;  %v2183_v38 = vpop.f32.mrb[5].mxu0  ;;  %v3748_v10 = vld [vmem:[#allocation9 + $0x60] sm:$0xff] }
 0x30c   : > { %v7683_v16 = vadd.f32 %v6135_v13, %v7607_v35  ;;  %v5903_v35 = vpack.c.bf16 %v3743_v61, %v3742_v22  ;;  %v3864_v61 = vld [vmem:[#allocation9 + $0x400] sm:$0xff] }
 0x30d   : > { %v2186_v39 = vpop.f32.mrb[6].mxu0 }
 0x30e   : > { %v6136_v9 = vadd.f32 %v7671_v27, %v2186_v39  ;;  %v2188_v48 = vpop.f32.mrb[7].mxu0  ;;  %5904 = vmatpush1.bf16.msra.mxu1 %v5903_v35  ;;  %v3750_v39 = vld [vmem:[#allocation9 + $0x70] sm:$0xff] }
 0x30f   : > { %5905 = vmatprep.subr.bf16.mxu1 %v9197_v0 }
 0x310   : > { %v7688_v56 = vadd.f32 %v6136_v9, %v7605_v63  ;;  %v5906_v63 = vpack.c.bf16 %v3745_v47, %v3744_v23 }
 0x311   : > { %v2191_v62 = vpop.f32.mrb[8].mxu0 }
 0x312   : > { %v6137_v26 = vadd.f32 %v7671_v27, %v2191_v62  ;;  %v2193_v8 = vpop.f32.mrb[9].mxu0  ;;  %5907 = vmatpush1.bf16.msra.mxu1 %v5906_v63  ;;  %v3865_v62 = vld [vmem:[#allocation9 + $0x408] sm:$0xff] }
 0x313   : > { %5908 = vmatprep.subr.bf16.mxu1 %v9197_v0  ;;  %v3753_v8 = vld [vmem:[#allocation9 + $0x88] sm:$0xff] }
 0x314   : > { %v7693_v21 = vadd.f32 %v6137_v26, %v7611_v51  ;;  %v5909_v51 = vpack.c.bf16 %v3747_v58, %v3746_v2  ;;  %v7716_v26 = vpack.c.bf16 %v3865_v62, %v3864_v61  ;;  %v3754_v58 = vld [vmem:[#allocation9 + $0x90] sm:$0xff] }
 0x315   : > { %v2196_v42 = vpop.f32.mrb[10].mxu0  ;;  %v3758_v62 = vld [vmem:[#allocation9 + $0xb0] sm:$0xff] }
 0x316   : > { %v6138_v46 = vadd.f32 %v7671_v27, %v2196_v42  ;;  %v2198_v54 = vpop.f32.mrb[11].mxu0  ;;  %5910 = vmatpush1.bf16.msra.mxu1 %v5909_v51  ;;  %9250 = vst [vmem:[#allocation14_spill] sm:$0xff] %v7716_v26  ;;  %6086 = vmatprep.subr.bf16.mxu0 %v7716_v26 }
 0x317   : > { %5911 = vmatprep.subr.bf16.mxu1 %v9197_v0  ;;  %6088 = vmatpush3.bf16.msra.mxu0 %v7716_v26  ;;  %v3867_v54 = vld [vmem:[#allocation9 + $0x418] sm:$0xff] }
 0x318   : > { %v7698_v31 = vadd.f32 %v6138_v46, %v7609_v45  ;;  %v5912_v45 = vpack.c.bf16 %v3749_v36, %v3748_v10  ;;  %v3866_v46 = vld [vmem:[#allocation9 + $0x410] sm:$0xff]  ;;  %v3868_v36 = vld [vmem:[#allocation9 + $0x420] sm:$0xff] }
 0x319   : > { %v2201_v33 = vpop.f32.mrb[12].mxu0  ;;  %v7725_v2 = vpack.c.bf16 %v3867_v54, %v3866_v46  ;;  %v2594_v46 = vmul.f32 %v7683_v16, %v7683_v16  ;;  %v3872_v54 = vld [vmem:[#allocation9 + $0x440] sm:$0xff] }
 0x31a   : > { %v6139_v29 = vadd.f32 %v7671_v27, %v2201_v33  ;;  %v2203_v3 = vpop.f32.mrb[13].mxu0  ;;  %5913 = vmatpush1.bf16.msra.mxu1 %v5912_v45  ;;  %v3755_v33 = vld [vmem:[#allocation9 + $0x98] sm:$0xff] }
 0x31b   : > { %5914 = vmatprep.subr.bf16.mxu1 %v9197_v0  ;;  %9251 = vst [vmem:[#allocation15_spill] sm:$0xff] %v7725_v2  ;;  %6090 = vmatprep.subr.bf16.mxu0 %v7725_v2 }
 0x31c   : > { %v7703_v40 = vadd.f32 %v6139_v29, %v7615_v4  ;;  %v5915_v4 = vpack.c.bf16 %v3751_v41, %v3750_v39  ;;  %v5921_v29 = vpack.c.bf16 %v3755_v33, %v3754_v58  ;;  %6092 = vmatpush3.bf16.msra.mxu0 %v7725_v2  ;;  %v3873_v58 = vld [vmem:[#allocation9 + $0x448] sm:$0xff]  ;;  %v2555_v33 = vadd.f32 %v7679_v12, %v7675_v32 }
 0x31d   : > { %v2206_v13 = vpop.f32.mrb[14].mxu0 }
 0x31e   : > { %v6140_v38 = vadd.f32 %v7671_v27, %v2206_v13  ;;  %v2208_v19 = vpop.f32.mrb[15].mxu0  ;;  %5916 = vmatpush1.bf16.msra.mxu1 %v5915_v4  ;;  %v3869_v13 = vld [vmem:[#allocation9 + $0x428] sm:$0xff] }
 0x31f   : > { %5917 = vmatprep.subr.bf16.mxu1 %v9197_v0  ;;  %v7734_v45 = vpack.c.bf16 %v3869_v13, %v3868_v36  ;;  %v3757_v19 = vld [vmem:[#allocation9 + $0xa8] sm:$0xff]  ;;  %v2595_v13 = vmul.f32 %v7688_v56, %v7688_v56 }
 0x320   : > { %v7708_v49 = vadd.f32 %v6140_v38, %v7613_v60  ;;  %v3752_v60 = vld [vmem:[#allocation9 + $0x80] sm:$0xff] }
 0x321   : > { %v2211_v9 = vpop.f32.mrb[16].mxu0  ;;  %v5918_v47 = vpack.c.bf16 %v3753_v8, %v3752_v60  ;;  %9252 = vst [vmem:[#allocation16_spill] sm:$0xff] %v7734_v45  ;;  %v3756_v38 = vld [vmem:[#allocation9 + $0xa0] sm:$0xff]  ;;  %6094 = vmatprep.subr.bf16.mxu0 %v7734_v45  ;;  %v3759_v60 = vld [vmem:[#allocation9 + $0xb8] sm:$0xff]  ;;  %v2593_v8 = vmul.f32 %v7679_v12, %v7679_v12 }
 0x322   : > { %v6141_v48 = vadd.f32 %v7671_v27, %v2211_v9  ;;  %v2213_v22 = vpop.f32.mrb[17].mxu0  ;;  %v5924_v41 = vpack.c.bf16 %v3757_v19, %v3756_v38  ;;  %6096 = vmatpush3.bf16.msra.mxu0 %v7734_v45  ;;  %v3793_v45 = vld [vmem:[#allocation9 + $0x1c8] sm:$0xff] }
 0x323   : > { %5919 = vmatpush1.bf16.msra.mxu1 %v5918_v47  ;;  %v3871_v22 = vld [vmem:[#allocation9 + $0x438] sm:$0xff]  ;;  %v5927_v47 = vpack.c.bf16 %v3759_v60, %v3758_v62  ;;  %v2596_v62 = vmul.f32 %v7693_v21, %v7693_v21 }
 0x324   : > { %v7713_v35 = vadd.f32 %v6141_v48, %v7621_v55  ;;  %5920 = vmatprep.subr.bf16.mxu1 %v9197_v0  ;;  %v3870_v48 = vld [vmem:[#allocation9 + $0x430] sm:$0xff] }
 0x325   : > { %v2216_v23 = vpop.f32.mrb[18].mxu0  ;;  %v7743_v61 = vpack.c.bf16 %v3871_v22, %v3870_v48  ;;  %v3762_v48 = vld [vmem:[#allocation9 + $0xd0] sm:$0xff] }
 0x326   : > { %v6142_v42 = vadd.f32 %v7671_v27, %v2216_v23  ;;  %v2218_v63 = vpop.f32.mrb[19].mxu0 }
 0x327   : > { %5922 = vmatpush1.bf16.msra.mxu1 %v5921_v29  ;;  %9253 = vst [vmem:[#allocation17_spill] sm:$0xff] %v7743_v61  ;;  %6098 = vmatprep.subr.bf16.mxu0 %v7743_v61  ;;  %v7760_v29 = vpack.c.bf16 %v3873_v58, %v3872_v54  ;;  %v3764_v54 = vld [vmem:[#allocation9 + $0xe0] sm:$0xff]  ;;  %v3765_v58 = vld [vmem:[#allocation9 + $0xe8] sm:$0xff] }
 0x328   : > { %v7722_v55 = vadd.f32 %v6142_v42, %v7619_v28  ;;  %5923 = vmatprep.subr.bf16.mxu1 %v9197_v0  ;;  %6100 = vmatpush3.bf16.msra.mxu0 %v7743_v61 }
 0x329   : > { %v2221_v51 = vpop.f32.mrb[20].mxu0  ;;  %9254 = vst [vmem:[#allocation18_spill] sm:$0xff] %v7760_v29  ;;  %6102 = vmatprep.subr.bf16.mxu0 %v7760_v29 }
 0x32a   : > { %v6143_v3 = vadd.f32 %v7671_v27, %v2221_v51  ;;  %v2223_v10 = vpop.f32.mrb[21].mxu0 }
 0x32b   : > { %5925 = vmatpush1.bf16.msra.mxu1 %v5924_v41  ;;  %v3761_v10 = vld [vmem:[#allocation9 + $0xc8] sm:$0xff] }
 0x32c   : > { %v7731_v28 = vadd.f32 %v6143_v3, %v7625_v18  ;;  %5926 = vmatprep.subr.bf16.mxu1 %v9197_v0  ;;  %v3760_v3 = vld [vmem:[#allocation9 + $0xc0] sm:$0xff]  ;;  %6104 = vmatpush3.bf16.msra.mxu0 %v7760_v29  ;;  %v3791_v29 = vld [vmem:[#allocation9 + $0x1b8] sm:$0xff] }
 0x32d   : > { %v2226_v39 = vpop.f32.mrb[22].mxu0  ;;  %v5930_v19 = vpack.c.bf16 %v3761_v10, %v3760_v3  ;;  %v2597_v3 = vmul.f32 %v7698_v31, %v7698_v31 }
 0x32e   : > { %v6144_v9 = vadd.f32 %v7671_v27, %v2226_v39  ;;  %v2228_v4 = vpop.f32.mrb[23].mxu0  ;;  %v2556_v39 = vadd.f32 %v2555_v33, %v7683_v16 }
 0x32f   : > { %5928 = vmatpush1.bf16.msra.mxu1 %v5927_v47  ;;  %v3875_v4 = vld [vmem:[#allocation9 + $0x458] sm:$0xff]  ;;  %v3877_v47 = vld [vmem:[#allocation9 + $0x468] sm:$0xff] }
 0x330   : > { %v7740_v18 = vadd.f32 %v6144_v9, %v7623_v17  ;;  %v2592_v17 = vmul.f32 %v7675_v32, %v7675_v32  ;;  %5929 = vmatprep.subr.bf16.mxu1 %v9197_v0 }
 0x331   : > { %v2231_v23 = vpop.f32.mrb[24].mxu0 }
 0x332   : > { %v6145_v42 = vadd.f32 %v7671_v27, %v2231_v23  ;;  %v2233_v63 = vpop.f32.mrb[25].mxu0  ;;  %v2624_v36 = vadd.f32 %v2593_v8, %v2592_v17  ;;  %v3763_v8 = vld [vmem:[#allocation9 + $0xd8] sm:$0xff]  ;;  %v3876_v23 = vld [vmem:[#allocation9 + $0x460] sm:$0xff] }
 0x333   : > { %5931 = vmatpush1.bf16.msra.mxu1 %v5930_v19  ;;  %v5933_v17 = vpack.c.bf16 %v3763_v8, %v3762_v48 }
 0x334   : > { %v7757_v51 = vadd.f32 %v6145_v42, %v7629_v52  ;;  %v3874_v52 = vld [vmem:[#allocation9 + $0x450] sm:$0xff]  ;;  %v2625_v22 = vadd.f32 %v2624_v36, %v2594_v46  ;;  %v2557_v42 = vadd.f32 %v2556_v39, %v7688_v56  ;;  %5932 = vmatprep.subr.bf16.mxu1 %v9197_v0  ;;  %v7777_v46 = vpack.c.bf16 %v3877_v47, %v3876_v23 }
 0x335   : > { %v2236_v38 = vpop.f32.mrb[26].mxu0  ;;  %v7770_v60 = vpack.c.bf16 %v3875_v4, %v3874_v52  ;;  %v3878_v36 = vld [vmem:[#allocation9 + $0x470] sm:$0xff] }
 0x336   : > { %v6146_v41 = vadd.f32 %v7671_v27, %v2236_v38  ;;  %v2238_v9 = vpop.f32.mrb[27].mxu0  ;;  %9256 = vst [vmem:[#allocation20_spill] sm:$0xff] %v7777_v46  ;;  %v2626_v33 = vadd.f32 %v2625_v22, %v2595_v13  ;;  %v3879_v38 = vld [vmem:[#allocation9 + $0x478] sm:$0xff]  ;;  %v2558_v19 = vadd.f32 %v2557_v42, %v7693_v21  ;;  %v5936_v13 = vpack.c.bf16 %v3765_v58, %v3764_v54  ;;  %v3766_v22 = vld [vmem:[#allocation9 + $0xf0] sm:$0xff] }
 0x337   : > { %9255 = vst [vmem:[#allocation19_spill] sm:$0xff] %v7770_v60  ;;  %6106 = vmatprep.subr.bf16.mxu0 %v7770_v60  ;;  %v2598_v9 = vmul.f32 %v7703_v40, %v7703_v40  ;;  %5934 = vmatpush1.bf16.msra.mxu1 %v5933_v17  ;;  %v7793_v48 = vpack.c.bf16 %v3879_v38, %v3878_v36 }
 0x338   : > { %v7774_v63 = vadd.f32 %v6146_v41, %v7627_v6  ;;  %v2627_v41 = vadd.f32 %v2626_v33, %v2596_v62  ;;  %6108 = vmatpush3.bf16.msra.mxu0 %v7770_v60  ;;  %v2559_v52 = vadd.f32 %v2558_v19, %v7698_v31  ;;  %5935 = vmatprep.subr.bf16.mxu1 %v9197_v0  ;;  %v3767_v62 = vld [vmem:[#allocation9 + $0xf8] sm:$0xff] }
 0x339   : > { %v2241_v10 = vpop.f32.mrb[28].mxu0  ;;  %6110 = vmatprep.subr.bf16.mxu0 %v7777_v46  ;;  %9257 = vst [vmem:[#allocation21_spill] sm:$0xff] %v7793_v48  ;;  %v2599_v42 = vmul.f32 %v7708_v49, %v7708_v49  ;;  %v5939_v58 = vpack.c.bf16 %v3767_v62, %v3766_v22 }
 0x33a   : > { %v6147_v6 = vadd.f32 %v7671_v27, %v2241_v10  ;;  %v2243_v39 = vpop.f32.mrb[29].mxu0  ;;  %v2628_v8 = vadd.f32 %v2627_v41, %v2597_v3  ;;  %v2560_v47 = vadd.f32 %v2559_v52, %v7703_v40  ;;  %v2600_v10 = vmul.f32 %v7713_v35, %v7713_v35 }
 0x33b   : > { %5937 = vmatpush1.bf16.msra.mxu1 %v5936_v13  ;;  %v2602_v13 = vmul.f32 %v7731_v28, %v7731_v28 }
 0x33c   : > { %v7789_v4 = vadd.f32 %v6147_v6, %v7633_v34  ;;  %v2629_v34 = vadd.f32 %v2628_v8, %v2598_v9  ;;  %6112 = vmatpush3.bf16.msra.mxu0 %v7777_v46  ;;  %v2561_v33 = vadd.f32 %v2560_v47, %v7708_v49  ;;  %5938 = vmatprep.subr.bf16.mxu1 %v9197_v0  ;;  %v3789_v46 = vld [vmem:[#allocation9 + $0x1a8] sm:$0xff] }
 0x33d   : > { %v2246_v23 = vpop.f32.mrb[30].mxu0  ;;  %6114 = vmatprep.subr.bf16.mxu0 %v7793_v48  ;;  %v2601_v6 = vmul.f32 %v7722_v55, %v7722_v55 }
 0x33e   : > { %v6148_v17 = vadd.f32 %v7671_v27, %v2246_v23  ;;  %v2248_v54 = vpop.f32.mrb[31].mxu0  ;;  %v2562_v38 = vadd.f32 %v2561_v33, %v7713_v35  ;;  %v2630_v19 = vadd.f32 %v2629_v34, %v2599_v42  ;;  %v2603_v23 = vmul.f32 %v7740_v18, %v7740_v18 }
 0x33f   : > { %5940 = vmatpush1.bf16.msra.mxu1 %v5939_v58  ;;  %v2604_v34 = vmul.f32 %v7757_v51, %v7757_v51 }
 0x340   : > { %v7804_v3 = vadd.f32 %v6148_v17, %v7631_v20  ;;  %6116 = vmatpush3.bf16.msra.mxu0 %v7793_v48  ;;  %v2631_v9 = vadd.f32 %v2630_v19, %v2600_v10  ;;  %v2563_v20 = vadd.f32 %v2562_v38, %v7722_v55  ;;  %5941 = vmatprep.subr.bf16.mxu1 %v9197_v0 }
 0x341   : > { %v2251_v36 = vpop.f32.mrb[32].mxu0 }
 0x342   : > { %v6149_v39 = vadd.f32 %v7671_v27, %v2251_v36  ;;  %v2253_v41 = vpop.f32.mrb[33].mxu0  ;;  %v2564_v62 = vadd.f32 %v2563_v20, %v7731_v28  ;;  %v2632_v8 = vadd.f32 %v2631_v9, %v2601_v6  ;;  %v2605_v36 = vmul.f32 %v7774_v63, %v7774_v63 }
 0x343   : > { %v2606_v41 = vmul.f32 %v7789_v4, %v7789_v4 }
 0x344   : > { %v7817_v52 = vadd.f32 %v6149_v39, %v7637_v7  ;;  %v2633_v17 = vadd.f32 %v2632_v8, %v2602_v13  ;;  %v2565_v54 = vadd.f32 %v2564_v62, %v7740_v18 }
 0x345   : > { %v2256_v22 = vpop.f32.mrb[34].mxu0 }
 0x346   : > { %v6150_v47 = vadd.f32 %v7671_v27, %v2256_v22  ;;  %v2258_v42 = vpop.f32.mrb[35].mxu0  ;;  %v2566_v33 = vadd.f32 %v2565_v54, %v7757_v51  ;;  %v2634_v10 = vadd.f32 %v2633_v17, %v2603_v23  ;;  %v2607_v22 = vmul.f32 %v7804_v3, %v7804_v3 }
 0x347   : > { %v2608_v42 = vmul.f32 %v7817_v52, %v7817_v52 }
 0x348   : > { %v7828_v7 = vadd.f32 %v6150_v47, %v7635_v57  ;;  %v2635_v6 = vadd.f32 %v2634_v10, %v2604_v34  ;;  %v2567_v39 = vadd.f32 %v2566_v33, %v7774_v63 }
 0x349   : > { %v2261_v58 = vpop.f32.mrb[36].mxu0 }
 0x34a   : > { %v6151_v38 = vadd.f32 %v7671_v27, %v2261_v58  ;;  %v2263_v19 = vpop.f32.mrb[37].mxu0  ;;  %v2568_v20 = vadd.f32 %v2567_v39, %v7789_v4  ;;  %v2636_v13 = vadd.f32 %v2635_v6, %v2605_v36  ;;  %v2609_v58 = vmul.f32 %v7828_v7, %v7828_v7 }
 0x34c   : > { %v7838_v9 = vadd.f32 %v6151_v38, %v7641_v24  ;;  %v2637_v23 = vadd.f32 %v2636_v13, %v2606_v41  ;;  %v2569_v47 = vadd.f32 %v2568_v20, %v7804_v3 }
 0x34d   : > { %v2266_v57 = vpop.f32.mrb[38].mxu0 }
 0x34e   : > { %v6152_v62 = vadd.f32 %v7671_v27, %v2266_v57  ;;  %v2268_v8 = vpop.f32.mrb[39].mxu0  ;;  %v2570_v54 = vadd.f32 %v2569_v47, %v7817_v52  ;;  %v2638_v34 = vadd.f32 %v2637_v23, %v2607_v22  ;;  %v2610_v19 = vmul.f32 %v7838_v9, %v7838_v9 }
 0x350   : > { %v7848_v17 = vadd.f32 %v6152_v62, %v7639_v1  ;;  %v2639_v36 = vadd.f32 %v2638_v34, %v2608_v42  ;;  %v2571_v38 = vadd.f32 %v2570_v54, %v7828_v7 }
 0x351   : > { %v2271_v24 = vpop.f32.mrb[40].mxu0 }
 0x352   : > { %v6153_v33 = vadd.f32 %v7671_v27, %v2271_v24  ;;  %v2273_v10 = vpop.f32.mrb[41].mxu0  ;;  %v2572_v39 = vadd.f32 %v2571_v38, %v7838_v9  ;;  %v2640_v41 = vadd.f32 %v2639_v36, %v2609_v58  ;;  %v2611_v57 = vmul.f32 %v7848_v17, %v7848_v17 }
 0x354   : > { %v7858_v6 = vadd.f32 %v6153_v33, %v7645_v30  ;;  %v2641_v22 = vadd.f32 %v2640_v41, %v2610_v19  ;;  %v2573_v62 = vadd.f32 %v2572_v39, %v7848_v17 }
 0x355   : > { %v2276_v1 = vpop.f32.mrb[42].mxu0 }
 0x356   : > { %v6154_v20 = vadd.f32 %v7671_v27, %v2276_v1  ;;  %v2278_v13 = vpop.f32.mrb[43].mxu0  ;;  %v2612_v8 = vmul.f32 %v7858_v6, %v7858_v6  ;;  %v2574_v47 = vadd.f32 %v2573_v62, %v7858_v6  ;;  %v2642_v42 = vadd.f32 %v2641_v22, %v2611_v57 }
 0x358   : > { %v7868_v23 = vadd.f32 %v6154_v20, %v7643_v5  ;;  %v2643_v58 = vadd.f32 %v2642_v42, %v2612_v8 }
 0x359   : > { %v2281_v30 = vpop.f32.mrb[44].mxu0 }
 0x35a   : > { %v2613_v24 = vmul.f32 %v7868_v23, %v7868_v23  ;;  %v6155_v54 = vadd.f32 %v7671_v27, %v2281_v30  ;;  %v2283_v34 = vpop.f32.mrb[45].mxu0  ;;  %v2575_v10 = vadd.f32 %v2574_v47, %v7868_v23 }
 0x35c   : > { %v7875_v33 = vadd.f32 %v6155_v54, %v7649_v25  ;;  %v2644_v19 = vadd.f32 %v2643_v58, %v2613_v24 }
 0x35d   : > { %v2286_v36 = vpop.f32.mrb[46].mxu0 }
 0x35e   : > { %v2576_v5 = vadd.f32 %v2575_v10, %v7875_v33  ;;  %v2614_v38 = vmul.f32 %v7875_v33, %v7875_v33  ;;  %v6156_v1 = vadd.f32 %v7671_v27, %v2286_v36  ;;  %v2288_v39 = vpop.f32.mrb[47].mxu0 }
 0x360   : > { %v2645_v41 = vadd.f32 %v2644_v19, %v2614_v38  ;;  %v7883_v57 = vadd.f32 %v6156_v1, %v7647_v43 }
 0x361   : > { %v2291_v20 = vpop.f32.mrb[48].mxu0 }
 0x362   : > { %v2615_v25 = vmul.f32 %v7883_v57, %v7883_v57  ;;  %v6157_v13 = vadd.f32 %v7671_v27, %v2291_v20  ;;  %v2293_v22 = vpop.f32.mrb[49].mxu0  ;;  %v2577_v62 = vadd.f32 %v2576_v5, %v7883_v57 }
 0x364   : > { %v7890_v8 = vadd.f32 %v6157_v13, %v7653_v53  ;;  %v2646_v30 = vadd.f32 %v2645_v41, %v2615_v25 }
 0x365   : > { %v2296_v47 = vpop.f32.mrb[50].mxu0 }
 0x366   : > { %v2578_v42 = vadd.f32 %v2577_v62, %v7890_v8  ;;  %v2616_v43 = vmul.f32 %v7890_v8, %v7890_v8  ;;  %v6158_v24 = vadd.f32 %v7671_v27, %v2296_v47  ;;  %v2298_v54 = vpop.f32.mrb[51].mxu0 }
 0x368   : > { %v2647_v34 = vadd.f32 %v2646_v30, %v2616_v43  ;;  %v7897_v58 = vadd.f32 %v6158_v24, %v7651_v37 }
 0x369   : > { %v2301_v10 = vpop.f32.mrb[52].mxu0 }
 0x36a   : > { %v2617_v36 = vmul.f32 %v7897_v58, %v7897_v58  ;;  %v6159_v53 = vadd.f32 %v7671_v27, %v2301_v10  ;;  %v2303_v5 = vpop.f32.mrb[53].mxu0  ;;  %v2579_v38 = vadd.f32 %v2578_v42, %v7897_v58 }
 0x36c   : > { %v7904_v19 = vadd.f32 %v6159_v53, %v7657_v11  ;;  %v2648_v1 = vadd.f32 %v2647_v34, %v2617_v36 }
 0x36d   : > { %v2306_v39 = vpop.f32.mrb[54].mxu0 }
 0x36e   : > { %v2580_v41 = vadd.f32 %v2579_v38, %v7904_v19  ;;  %v2618_v37 = vmul.f32 %v7904_v19, %v7904_v19  ;;  %v6160_v20 = vadd.f32 %v7671_v27, %v2306_v39  ;;  %v2308_v25 = vpop.f32.mrb[55].mxu0 }
 0x370   : > { %v2649_v13 = vadd.f32 %v2648_v1, %v2618_v37  ;;  %v7911_v22 = vadd.f32 %v6160_v20, %v7655_v14 }
 0x371   : > { %v2311_v62 = vpop.f32.mrb[56].mxu0 }
 0x372   : > { %v2619_v30 = vmul.f32 %v7911_v22, %v7911_v22  ;;  %v6161_v11 = vadd.f32 %v7671_v27, %v2311_v62  ;;  %v2313_v47 = vpop.f32.mrb[57].mxu0  ;;  %v2581_v42 = vadd.f32 %v2580_v41, %v7911_v22 }
 0x374   : > { %v7918_v43 = vadd.f32 %v6161_v11, %v7661_v59  ;;  %v2650_v24 = vadd.f32 %v2649_v13, %v2619_v30 }
 0x375   : > { %v2316_v54 = vpop.f32.mrb[58].mxu0 }
 0x376   : > { %v2582_v34 = vadd.f32 %v2581_v42, %v7918_v43  ;;  %v2620_v14 = vmul.f32 %v7918_v43, %v7918_v43  ;;  %v6162_v10 = vadd.f32 %v7671_v27, %v2316_v54  ;;  %v2318_v36 = vpop.f32.mrb[59].mxu0 }
 0x378   : > { %v2651_v53 = vadd.f32 %v2650_v24, %v2620_v14  ;;  %v7925_v5 = vadd.f32 %v6162_v10, %v7659_v44 }
 0x379   : > { %v2321_v38 = vpop.f32.mrb[60].mxu0 }
 0x37a   : > { %v2621_v1 = vmul.f32 %v7925_v5, %v7925_v5  ;;  %v6163_v59 = vadd.f32 %v7671_v27, %v2321_v38  ;;  %v2323_v39 = vpop.f32.mrb[61].mxu0  ;;  %v2583_v41 = vadd.f32 %v2582_v34, %v7925_v5 }
 0x37c   : > { %v7932_v37 = vadd.f32 %v6163_v59, %v7665_v15  ;;  %v2652_v20 = vadd.f32 %v2651_v53, %v2621_v1 }
 0x37d   : > { %v2326_v25 = vpop.f32.mrb[62].mxu0 }
 0x37e   : > { %v2584_v13 = vadd.f32 %v2583_v41, %v7932_v37  ;;  %v2622_v44 = vmul.f32 %v7932_v37, %v7932_v37  ;;  %v6164_v62 = vadd.f32 %v7671_v27, %v2326_v25  ;;  %v2328_v30 = vpop.f32.mrb[63].mxu0 }
 0x380   : > { %v2653_v11 = vadd.f32 %v2652_v20, %v2622_v44  ;;  %v2552_v47 = vadd.f32 %v6164_v62, %v7663_v50 }
 0x382   : > { %v2585_v42 = vadd.f32 %v2584_v13, %v2552_v47  ;;  %v2623_v24 = vmul.f32 %v2552_v47, %v2552_v47 }
 0x384   : > { %v2586_v54 = vrot.slane %v2585_v42, 4  ;;  %v2654_v34 = vadd.f32 %v2653_v11, %v2623_v24 }
 0x386   : > { %v2587_v14 = vadd.f32 %v2586_v54, %v2585_v42  ;;  %v2655_v15 = vrot.slane %v2654_v34, 4 }
 0x388   : > { %v2588_v10 = vrot.slane %v2587_v14, 2  ;;  %v2656_v36 = vadd.f32 %v2655_v15, %v2654_v34 }
 0x38a   : > { %v2589_v53 = vadd.f32 %v2588_v10, %v2587_v14  ;;  %v2657_v38 = vrot.slane %v2656_v36, 2 }
 0x38c   : > { %v2590_v1 = vrot.slane %v2589_v53, 1  ;;  %v2658_v59 = vadd.f32 %v2657_v38, %v2656_v36 }
 0x38e   : > { %v2591_v39 = vadd.f32 %v2590_v1, %v2589_v53  ;;  %v2659_v41 = vrot.slane %v2658_v59, 1 }
 0x390   : > { %v2660_v0 = vadd.f32 %v2659_v41, %v2658_v59  ;;  %v7939_v27 = vmul.f32 0.00390625, %v2591_v39 }
 0x392   : > { %v2662_v20 = vmul.f32 0.00390625, %v2660_v0  ;;  %v2663_v50 = vmul.f32 %v7939_v27, %v7939_v27  ;;  %v2697_v25 = vsub.f32 %v2552_v47, %v7939_v27  ;;  %v2687_v30 = vsub.f32 %v7868_v23, %v7939_v27 }
 0x393   : > { %v2688_v11 = vsub.f32 %v7875_v33, %v7939_v27  ;;  %v2689_v42 = vsub.f32 %v7883_v57, %v7939_v27  ;;  %v2690_v0 = vsub.f32 %v7890_v8, %v7939_v27  ;;  %v2691_v24 = vsub.f32 %v7897_v58, %v7939_v27 }
 0x394   : > { %v2664_v13 = vsub.f32 %v2662_v20, %v2663_v50  ;;  %v2692_v47 = vsub.f32 %v7904_v19, %v7939_v27  ;;  %v2693_v54 = vsub.f32 %v7911_v22, %v7939_v27  ;;  %v2694_v23 = vsub.f32 %v7918_v43, %v7939_v27 }
 0x395   : > { %v2695_v33 = vsub.f32 %v7925_v5, %v7939_v27  ;;  %v2696_v57 = vsub.f32 %v7932_v37, %v7939_v27  ;;  %v2666_v8 = vsub.f32 %v7675_v32, %v7939_v27  ;;  %v2667_v58 = vsub.f32 %v7679_v12, %v7939_v27 }
 0x396   : > { %v2665_v44 = vmax.f32 %v2664_v13, 0.0  ;;  %v2668_v19 = vsub.f32 %v7683_v16, %v7939_v27  ;;  %v2669_v22 = vsub.f32 %v7688_v56, %v7939_v27  ;;  %v2670_v43 = vsub.f32 %v7693_v21, %v7939_v27 }
 0x397   : > { %v2671_v5 = vsub.f32 %v7698_v31, %v7939_v27  ;;  %v2672_v37 = vsub.f32 %v7703_v40, %v7939_v27  ;;  %v2673_v32 = vsub.f32 %v7708_v49, %v7939_v27  ;;  %v2674_v12 = vsub.f32 %v7713_v35, %v7939_v27 }
 0x398   : > { %v2698_v62 = vadd.f32 1e-05, %v2665_v44  ;;  %v2675_v16 = vsub.f32 %v7722_v55, %v7939_v27  ;;  %v2676_v56 = vsub.f32 %v7731_v28, %v7939_v27  ;;  %v2677_v21 = vsub.f32 %v7740_v18, %v7939_v27 }
 0x399   : > { %v2678_v31 = vsub.f32 %v7757_v51, %v7939_v27  ;;  %v2679_v40 = vsub.f32 %v7774_v63, %v7939_v27  ;;  %v2680_v49 = vsub.f32 %v7789_v4, %v7939_v27  ;;  %v2681_v35 = vsub.f32 %v7804_v3, %v7939_v27 }
 0x39a   : > { %6653 = vrsqrt.f32 %v2698_v62  ;;  %v2682_v55 = vsub.f32 %v7817_v52, %v7939_v27  ;;  %v2683_v28 = vsub.f32 %v7828_v7, %v7939_v27  ;;  %v2684_v18 = vsub.f32 %v7838_v9, %v7939_v27 }
 0x39b   : > { %v2685_v51 = vsub.f32 %v7848_v17, %v7939_v27  ;;  %v2686_v63 = vsub.f32 %v7858_v6, %v7939_v27 }
 0x3a4   : > { %v6654_v34 = vpop.eup %6653 }
 0x3a5   : > { %v2731_v4 = vmul.f32 %v6654_v34, %v2697_v25  ;;  %v8006_v14 = vmul.f32 %v6654_v34, %v2666_v8  ;;  %v8008_v3 = vmul.f32 %v6654_v34, %v2667_v58  ;;  %v2702_v15 = vmul.f32 %v6654_v34, %v2668_v19 }
 0x3a6   : > { %v2703_v52 = vmul.f32 %v6654_v34, %v2669_v22  ;;  %v8010_v10 = vmul.f32 %v6654_v34, %v2670_v43  ;;  %v8012_v36 = vmul.f32 %v6654_v34, %v2671_v5  ;;  %v8014_v7 = vmul.f32 %v6654_v34, %v2672_v37 }
 0x3a7   : > { %v2763_v9 = vmax.f32 %v2731_v4, 0.0  ;;  %v8016_v53 = vmul.f32 %v6654_v34, %v2673_v32  ;;  %v8018_v17 = vmul.f32 %v6654_v34, %v2674_v12  ;;  %v8020_v38 = vmul.f32 %v6654_v34, %v2675_v16 }
 0x3a8   : > { %v8022_v6 = vmul.f32 %v6654_v34, %v2676_v56  ;;  %v8024_v1 = vmul.f32 %v6654_v34, %v2677_v21  ;;  %v8026_v59 = vmul.f32 %v6654_v34, %v2678_v31  ;;  %v8028_v39 = vmul.f32 %v6654_v34, %v2679_v40 }
 0x3a9   : > { %2795 = vst [vmem:[#allocation2 + $0x189] sm:$0xff] %v2763_v9  ;;  %v8030_v41 = vmul.f32 %v6654_v34, %v2680_v49  ;;  %v8032_v27 = vmul.f32 %v6654_v34, %v2681_v35  ;;  %v8034_v20 = vmul.f32 %v6654_v34, %v2682_v55  ;;  %v8036_v50 = vmul.f32 %v6654_v34, %v2683_v28 }
 0x3aa   : > { %v8038_v25 = vmul.f32 %v6654_v34, %v2684_v18  ;;  %v8040_v13 = vmul.f32 %v6654_v34, %v2685_v51  ;;  %v8042_v44 = vmul.f32 %v6654_v34, %v2686_v63  ;;  %v8044_v62 = vmul.f32 %v6654_v34, %v2687_v30 }
 0x3ab   : > { %v8046_v8 = vmul.f32 %v6654_v34, %v2688_v11  ;;  %v8048_v58 = vmul.f32 %v6654_v34, %v2689_v42  ;;  %v8050_v19 = vmul.f32 %v6654_v34, %v2690_v0  ;;  %v8052_v22 = vmul.f32 %v6654_v34, %v2691_v24 }
 0x3ac   : > { %v8054_v43 = vmul.f32 %v6654_v34, %v2692_v47  ;;  %v8056_v5 = vmul.f32 %v6654_v34, %v2693_v54  ;;  %v2728_v37 = vmul.f32 %v6654_v34, %v2694_v23  ;;  %v2729_v32 = vmul.f32 %v6654_v34, %v2695_v33 }
 0x3ad   : > { %v8058_v12 = vmul.f32 %v6654_v34, %v2696_v57  ;;  %v2732_v16 = vmax.f32 %v8006_v14, 0.0  ;;  %v2733_v30 = vmax.f32 %v8008_v3, 0.0  ;;  %v8062_v11 = vmax.f32 %v2702_v15, 0.0 }
 0x3ae   : > { %v8064_v42 = vmax.f32 %v2703_v52, 0.0  ;;  %v2736_v0 = vmax.f32 %v8010_v10, 0.0  ;;  %v2737_v24 = vmax.f32 %v8012_v36, 0.0  ;;  %v9220_v47 = vmax.f32 %v8014_v7, 0.0 }
 0x3af   : > { %v9219_v54 = vmax.f32 %v8016_v53, 0.0  ;;  %v9218_v23 = vmax.f32 %v8018_v17, 0.0  ;;  %v9217_v33 = vmax.f32 %v8020_v38, 0.0  ;;  %v9199_v57 = vmax.f32 %v8022_v6, 0.0  ;;  %2764 = vst [vmem:[#allocation2 + $0x19] sm:$0xff] %v2732_v16  ;;  %2765 = vst [vmem:[#allocation2 + $0x21] sm:$0xff] %v2733_v30  ;;  %3951 = vmatprep.mubr.f32.mxu1 %v8062_v11 }
 0x3b0   : > { %2766 = vst [vmem:[#allocation2 + $0x31] sm:$0xff] %v8062_v11  ;;  %2796 = vst [vmem:[#allocation2 + $0x1] sm:$0xff] %v8062_v11  ;;  %v9216_v56 = vmax.f32 %v8024_v1, 0.0  ;;  %v9202_v21 = vmax.f32 %v8026_v59, 0.0  ;;  %v9201_v31 = vmax.f32 %v8028_v39, 0.0  ;;  %v9200_v40 = vmax.f32 %v8030_v41, 0.0 }
 0x3b1   : > { %2767 = vst [vmem:[#allocation2 + $0x39] sm:$0xff] %v8064_v42  ;;  %2768 = vst [vmem:[#allocation2 + $0x49] sm:$0xff] %v2736_v0  ;;  %v9215_v49 = vmax.f32 %v8032_v27, 0.0  ;;  %v9214_v35 = vmax.f32 %v8034_v20, 0.0  ;;  %v9213_v55 = vmax.f32 %v8036_v50, 0.0  ;;  %v9212_v34 = vmax.f32 %v8038_v25, 0.0 }
 0x3b2   : > { %2769 = vst [vmem:[#allocation2 + $0x51] sm:$0xff] %v2737_v24  ;;  %2770 = vst [vmem:[#allocation2 + $0x61] sm:$0xff] %v9220_v47  ;;  %v2852_v28 = vld [vmem:[#allocation2 + $0x18f] sm:$0x1]  ;;  %v9211_v18 = vmax.f32 %v8040_v13, 0.0  ;;  %v9210_v51 = vmax.f32 %v8042_v44, 0.0 }
 0x3b3   : > { %2797 = vst [vmem:[#allocation2 + $0x9] sm:$0xff] %v8064_v42  ;;  %2771 = vst [vmem:[#allocation2 + $0x69] sm:$0xff] %v9219_v54  ;;  %v9209_v63 = vmax.f32 %v8044_v62, 0.0  ;;  %v9208_v4 = vmax.f32 %v8046_v8, 0.0  ;;  %v9207_v15 = vmax.f32 %v8048_v58, 0.0  ;;  %v9206_v52 = vmax.f32 %v8050_v19, 0.0 }
 0x3b4   : > { %2772 = vst [vmem:[#allocation2 + $0x79] sm:$0xff] %v9218_v23  ;;  %2773 = vst [vmem:[#allocation2 + $0x81] sm:$0xff] %v9217_v33  ;;  %v9203_v9 = vmax.f32 %v8052_v22, 0.0  ;;  %v3783_v23 = vld [vmem:[#allocation9 + $0x178] sm:$0xff]  ;;  %v9259_v36 = vmax.f32 %v8014_v7, 0.0  ;;  %v9260_v7 = vmax.f32 %v8016_v53, 0.0 }
 0x3b5   : > { %2774 = vst [vmem:[#allocation2 + $0x91] sm:$0xff] %v9199_v57  ;;  %2775 = vst [vmem:[#allocation2 + $0x99] sm:$0xff] %v9216_v56  ;;  %v9205_v57 = vmax.f32 %v8054_v43, 0.0  ;;  %v9261_v53 = vmax.f32 %v8018_v17, 0.0  ;;  %v9263_v17 = vmax.f32 %v8020_v38, 0.0  ;;  %v9266_v38 = vmax.f32 %v8022_v6, 0.0 }
 0x3b6   : > { %2776 = vst [vmem:[#allocation2 + $0xa9] sm:$0xff] %v9202_v21  ;;  %2777 = vst [vmem:[#allocation2 + $0xb1] sm:$0xff] %v9201_v31  ;;  %v8131_v31 = vmax.f32 %v2729_v32, 0.0  ;;  %v2762_v21 = vmax.f32 %v8058_v12, 0.0  ;;  %v2801_v32 = vld [vmem:[#allocation2 + $0x1a] sm:$0x1] }
 0x3b7   : > { %2778 = vst [vmem:[#allocation2 + $0xc1] sm:$0xff] %v9200_v40  ;;  %2870 = vst [vmem:[#allocation2 + $0x191] sm:$0x1] %v2852_v28  ;;  %v9204_v28 = vmax.f32 %v8056_v5, 0.0  ;;  %v8129_v40 = vmax.f32 %v2728_v37, 0.0  ;;  %v3796_v6 = vld [vmem:[#allocation9 + $0x1e0] sm:$0xff] }
 0x3b8   : > { %2779 = vst [vmem:[#allocation2 + $0xc9] sm:$0xff] %v9215_v49  ;;  %2780 = vst [vmem:[#allocation2 + $0xd9] sm:$0xff] %v9214_v35  ;;  %v2800_v37 = vld [vmem:[#allocation2 + $0x2] sm:$0x1]  ;;  %v8156_v12 = vld [vmem:[#allocation2 + $0x32] sm:$0xff] }
 0x3b9   : > { %2781 = vst [vmem:[#allocation2 + $0xe1] sm:$0xff] %v9213_v55  ;;  %2782 = vst [vmem:[#allocation2 + $0xf1] sm:$0xff] %v9212_v34  ;;  %5621 = vmatprep.mubr.f32.mxu0 %v8156_v12  ;;  %v3770_v55 = vld [vmem:[#allocation9 + $0x110] sm:$0xff] }
 0x3ba   : > { %2783 = vst [vmem:[#allocation2 + $0xf9] sm:$0xff] %v9211_v18  ;;  %2784 = vst [vmem:[#allocation2 + $0x109] sm:$0xff] %v9210_v51 }
 0x3bb   : > { %2785 = vst [vmem:[#allocation2 + $0x111] sm:$0xff] %v9209_v63  ;;  %2786 = vst [vmem:[#allocation2 + $0x121] sm:$0xff] %v9208_v4  ;;  %v2802_v4 = vld [vmem:[#allocation2 + $0x32] sm:$0x1] }
 0x3bc   : > { %2787 = vst [vmem:[#allocation2 + $0x129] sm:$0xff] %v9207_v15  ;;  %2788 = vst [vmem:[#allocation2 + $0x139] sm:$0xff] %v9206_v52  ;;  %v2840_v52 = vld [vmem:[#allocation2 + $0x6f] sm:$0x1]  ;;  %v2841_v15 = vld [vmem:[#allocation2 + $0x87] sm:$0x1] }
 0x3bd   : > { %2789 = vst [vmem:[#allocation2 + $0x141] sm:$0xff] %v9203_v9  ;;  %2790 = vst [vmem:[#allocation2 + $0x151] sm:$0xff] %v9205_v57  ;;  %v2838_v9 = vld [vmem:[#allocation2 + $0x3f] sm:$0x1]  ;;  %v3768_v57 = vld [vmem:[#allocation9 + $0x100] sm:$0xff] }
 0x3be   : > { %2791 = vst [vmem:[#allocation2 + $0x159] sm:$0xff] %v9204_v28  ;;  %2792 = vst [vmem:[#allocation2 + $0x169] sm:$0xff] %v8129_v40  ;;  %v2839_v28 = vld [vmem:[#allocation2 + $0x57] sm:$0x1]  ;;  %v2842_v63 = vld [vmem:[#allocation2 + $0x9f] sm:$0x1] }
 0x3bf   : > { %2793 = vst [vmem:[#allocation2 + $0x171] sm:$0xff] %v8131_v31  ;;  %2794 = vst [vmem:[#allocation2 + $0x181] sm:$0xff] %v2762_v21  ;;  %v3769_v21 = vld [vmem:[#allocation9 + $0x108] sm:$0xff]  ;;  %v2843_v51 = vld [vmem:[#allocation2 + $0xb7] sm:$0x1] }
 0x3c0   : > { %2798 = vst [vmem:[#allocation2 + $0x199] sm:$0xff] %v8129_v40  ;;  %2799 = vst [vmem:[#allocation2 + $0x1a1] sm:$0xff] %v8131_v31  ;;  %v2844_v18 = vld [vmem:[#allocation2 + $0xcf] sm:$0x1]  ;;  %v2807_v56 = vld [vmem:[#allocation2 + $0xaa] sm:$0x1] }
 0x3c1   : > { %2818 = vst [vmem:[#allocation2] sm:$0x1] %v2800_v37  ;;  %2819 = vst [vmem:[#allocation2 + $0x18] sm:$0x1] %v2801_v32  ;;  %v2803_v37 = vld [vmem:[#allocation2 + $0x4a] sm:$0x1]  ;;  %v5942_v32 = vpack.c.bf16 %v3769_v21, %v3768_v57 }
 0x3c2   : > { %2856 = vst [vmem:[#allocation2 + $0x41] sm:$0x1] %v2838_v9  ;;  %2857 = vst [vmem:[#allocation2 + $0x59] sm:$0x1] %v2839_v28  ;;  %v2845_v9 = vld [vmem:[#allocation2 + $0xe7] sm:$0x1] }
 0x3c3   : > { %2858 = vst [vmem:[#allocation2 + $0x71] sm:$0x1] %v2840_v52  ;;  %2859 = vst [vmem:[#allocation2 + $0x89] sm:$0x1] %v2841_v15  ;;  %v3771_v28 = vld [vmem:[#allocation9 + $0x118] sm:$0xff]  ;;  %v3773_v21 = vld [vmem:[#allocation9 + $0x128] sm:$0xff] }
 0x3c4   : > { %2820 = vst [vmem:[#allocation2 + $0x30] sm:$0x1] %v2802_v4  ;;  %2860 = vst [vmem:[#allocation2 + $0xa1] sm:$0x1] %v2842_v63  ;;  %v2804_v15 = vld [vmem:[#allocation2 + $0x62] sm:$0x1]  ;;  %v5945_v57 = vpack.c.bf16 %v3771_v28, %v3770_v55 }
 0x3c5   : > { %2861 = vst [vmem:[#allocation2 + $0xb9] sm:$0x1] %v2843_v51  ;;  %2821 = vst [vmem:[#allocation2 + $0x48] sm:$0x1] %v2803_v37  ;;  %v2846_v52 = vld [vmem:[#allocation2 + $0xff] sm:$0x1] }
 0x3c6   : > { %2862 = vst [vmem:[#allocation2 + $0xd1] sm:$0x1] %v2844_v18  ;;  %2863 = vst [vmem:[#allocation2 + $0xe9] sm:$0x1] %v2845_v9  ;;  %v8163_v51 = vld [vmem:[#allocation2 + $0x4a] sm:$0xff]  ;;  %v9258_v4 = vmov 0.0|0.0  }
 0x3c7   : > { %2822 = vst [vmem:[#allocation2 + $0x60] sm:$0x1] %v2804_v15  ;;  %2864 = vst [vmem:[#allocation2 + $0x101] sm:$0x1] %v2846_v52  ;;  %v2847_v18 = vld [vmem:[#allocation2 + $0x117] sm:$0x1] }
 0x3c8   : > { %v2872_v34 = vld [vmem:[#allocation2] sm:$0xff]  ;;  %v2873_v63 = vld [vmem:[#allocation2 + $0x8] sm:$0xff]  ;;  %2865 = vst [vmem:[#allocation2 + $0x119] sm:$0x1] %v2847_v18  ;;  %v2805_v9 = vld [vmem:[#allocation2 + $0x7a] sm:$0x1] }
 0x3c9   : > { %3952 = vmatmul.mubr.f32.vlgmr.msra.gmra.mrb[32].mxu1 %v2872_v34  ;;  %v8159_v35 = vld [vmem:[#allocation2 + $0x3a] sm:$0xff]  ;;  %v3772_v34 = vld [vmem:[#allocation9 + $0x120] sm:$0xff]  ;;  %v2848_v49 = vld [vmem:[#allocation2 + $0x12f] sm:$0x1]  ;;  %2823 = vst [vmem:[#allocation2 + $0x78] sm:$0x1] %v2805_v9 }
 0x3ca   : > { %5622 = vmatmul.mubr.f32.vlgmr.msra.gmra.mrb[64].mxu0 %v8159_v35  ;;  %3956 = vmatprep.mubr.f32.mxu1 %v8064_v42  ;;  %v8167_v37 = vld [vmem:[#allocation2 + $0x52] sm:$0xff]  ;;  %2866 = vst [vmem:[#allocation2 + $0x131] sm:$0x1] %v2848_v49  ;;  %v5948_v55 = vpack.c.bf16 %v3773_v21, %v3772_v34  ;;  %v3774_v28 = vld [vmem:[#allocation9 + $0x130] sm:$0xff]  ;;  %v3775_v15 = vld [vmem:[#allocation9 + $0x138] sm:$0xff] }
 0x3cb   : > { %5943 = vmatpush1.bf16.msra.mxu1 %v5942_v32  ;;  %5624 = vmatprep.mubr.f32.mxu0 %v8163_v51  ;;  %v8172_v32 = vld [vmem:[#allocation2 + $0x62] sm:$0xff]  ;;  %v8175_v18 = vld [vmem:[#allocation2 + $0x18] sm:$0xff]  ;;  %v8179_v14 = vld [vmem:[#allocation2 + $0x6a] sm:$0xff]  ;;  %2825 = vst [vmem:[#allocation2 + $0xa8] sm:$0x1] %v2807_v56  ;;  %v5951_v34 = vpack.c.bf16 %v3775_v15, %v3774_v28 }
 0x3cc   : > { %5944 = vmatprep.subr.bf16.mxu1 %v9258_v4  ;;  %v2849_v52 = vld [vmem:[#allocation2 + $0x147] sm:$0x1]  ;;  %v2808_v49 = vld [vmem:[#allocation2 + $0xc2] sm:$0x1]  ;;  %v3776_v21 = vld [vmem:[#allocation9 + $0x140] sm:$0xff] }
 0x3cd   : > { %3957 = vmatmul.mubr.f32.gmra.mrb[34].mxu1 %v2873_v63  ;;  %2867 = vst [vmem:[#allocation2 + $0x149] sm:$0x1] %v2849_v52  ;;  %v2806_v63 = vld [vmem:[#allocation2 + $0x92] sm:$0x1]  ;;  %2826 = vst [vmem:[#allocation2 + $0xc0] sm:$0x1] %v2808_v49 }
 0x3ce   : > { %5625 = vmatmul.mubr.f32.gmra.mrb[66].mxu0 %v8167_v37  ;;  %3961 = vmatprep.mubr.f32.mxu1 %v2732_v16  ;;  %2824 = vst [vmem:[#allocation2 + $0x90] sm:$0x1] %v2806_v63  ;;  %v8184_v16 = vld [vmem:[#allocation2 + $0x7a] sm:$0xff]  ;;  %v2810_v9 = vld [vmem:[#allocation2 + $0xf2] sm:$0x1]  ;;  %v8221_v54 = vld [vmem:[#allocation2 + $0x48] sm:$0xff] }
 0x3cf   : > { %5627 = vmatprep.mubr.f32.mxu0 %v8172_v32  ;;  %5946 = vmatpush1.bf16.msra.mxu1 %v5945_v57  ;;  %v2809_v57 = vld [vmem:[#allocation2 + $0xda] sm:$0x1]  ;;  %v8187_v52 = vld [vmem:[#allocation2 + $0x20] sm:$0xff]  ;;  %2828 = vst [vmem:[#allocation2 + $0xf0] sm:$0x1] %v2810_v9  ;;  %v8198_v9 = vld [vmem:[#allocation2 + $0x30] sm:$0xff] }
 0x3d0   : > { %5947 = vmatprep.subr.bf16.mxu1 %v9258_v4  ;;  %2827 = vst [vmem:[#allocation2 + $0xd8] sm:$0x1] %v2809_v57  ;;  %v3777_v56 = vld [vmem:[#allocation9 + $0x148] sm:$0xff]  ;;  %v2811_v3 = vld [vmem:[#allocation2 + $0x10a] sm:$0x1]  ;;  %v3778_v49 = vld [vmem:[#allocation9 + $0x150] sm:$0xff] }
 0x3d1   : > { %3962 = vmatmul.mubr.f32.gmra.mrb[36].mxu1 %v8175_v18  ;;  %2829 = vst [vmem:[#allocation2 + $0x108] sm:$0x1] %v2811_v3  ;;  %v2812_v63 = vld [vmem:[#allocation2 + $0x122] sm:$0x1]  ;;  %v2813_v28 = vld [vmem:[#allocation2 + $0x13a] sm:$0x1]  ;;  %v5954_v15 = vpack.c.bf16 %v3777_v56, %v3776_v21 }
 0x3d2   : > { %5628 = vmatmul.mubr.f32.gmra.mrb[68].mxu0 %v8179_v14  ;;  %3966 = vmatprep.mubr.f32.mxu1 %v2733_v30  ;;  %v8191_v30 = vld [vmem:[#allocation2 + $0x82] sm:$0xff]  ;;  %2830 = vst [vmem:[#allocation2 + $0x120] sm:$0x1] %v2812_v63  ;;  %2831 = vst [vmem:[#allocation2 + $0x138] sm:$0x1] %v2813_v28  ;;  %v3780_v56 = vld [vmem:[#allocation9 + $0x160] sm:$0xff] }
 0x3d3   : > { %5630 = vmatprep.mubr.f32.mxu0 %v8184_v16  ;;  %5949 = vmatpush1.bf16.msra.mxu1 %v5948_v55  ;;  %v8195_v55 = vld [vmem:[#allocation2 + $0x92] sm:$0xff]  ;;  %v3779_v3 = vld [vmem:[#allocation9 + $0x158] sm:$0xff]  ;;  %v2816_v47 = vld [vmem:[#allocation2 + $0x182] sm:$0x1] }
 0x3d4   : > { %5950 = vmatprep.subr.bf16.mxu1 %v9258_v4  ;;  %v2814_v57 = vld [vmem:[#allocation2 + $0x152] sm:$0x1]  ;;  %v2815_v33 = vld [vmem:[#allocation2 + $0x16a] sm:$0x1]  ;;  %v5957_v21 = vpack.c.bf16 %v3779_v3, %v3778_v49  ;;  %v8209_v63 = vld [vmem:[#allocation2 + $0x38] sm:$0xff] }
 0x3d5   : > { %3967 = vmatmul.mubr.f32.gmra.mrb[38].mxu1 %v8187_v52  ;;  %2832 = vst [vmem:[#allocation2 + $0x150] sm:$0x1] %v2814_v57  ;;  %2833 = vst [vmem:[#allocation2 + $0x168] sm:$0x1] %v2815_v33  ;;  %v3781_v28 = vld [vmem:[#allocation9 + $0x168] sm:$0xff]  ;;  %v3782_v3 = vld [vmem:[#allocation9 + $0x170] sm:$0xff] }
 0x3d6   : > { %5631 = vmatmul.mubr.f32.gmra.mrb[70].mxu0 %v8191_v30  ;;  %3971 = vmatprep.mubr.f32.mxu1 %v8062_v11  ;;  %v8202_v11 = vld [vmem:[#allocation2 + $0x9a] sm:$0xff]  ;;  %v2836_v57 = vld [vmem:[#allocation2 + $0xf] sm:$0x1]  ;;  %v8213_v33 = vld [vmem:[#allocation2 + $0xb2] sm:$0xff]  ;;  %v5960_v49 = vpack.c.bf16 %v3781_v28, %v3780_v56  ;;  %2834 = vst [vmem:[#allocation2 + $0x180] sm:$0x1] %v2816_v47  ;;  %v5963_v56 = vpack.c.bf16 %v3783_v23, %v3782_v3 }
 0x3d7   : > { %5633 = vmatprep.mubr.f32.mxu0 %v8195_v55  ;;  %5952 = vmatpush1.bf16.msra.mxu1 %v5951_v34  ;;  %v8206_v34 = vld [vmem:[#allocation2 + $0xaa] sm:$0xff]  ;;  %2854 = vst [vmem:[#allocation2 + $0x11] sm:$0x1] %v2836_v57  ;;  %v2850_v57 = vld [vmem:[#allocation2 + $0x15f] sm:$0x1]  ;;  %v8237_v47 = vld [vmem:[#allocation2 + $0xe2] sm:$0xff] }
 0x3d8   : > { %5953 = vmatprep.subr.bf16.mxu1 %v9258_v4  ;;  %v8225_v10 = vld [vmem:[#allocation2 + $0xca] sm:$0xff]  ;;  %2868 = vst [vmem:[#allocation2 + $0x161] sm:$0x1] %v2850_v57  ;;  %v3785_v57 = vld [vmem:[#allocation9 + $0x188] sm:$0xff]  ;;  %v3786_v3 = vld [vmem:[#allocation9 + $0x190] sm:$0xff] }
 0x3d9   : > { %3972 = vmatmul.mubr.f32.gmra.mrb[40].mxu1 %v8198_v9  ;;  %v8233_v28 = vld [vmem:[#allocation2 + $0x50] sm:$0xff]  ;;  %v8249_v48 = vld [vmem:[#allocation2 + $0xfa] sm:$0xff]  ;;  %v8285_v2 = vld [vmem:[#allocation2 + $0x142] sm:$0xff] }
 0x3da   : > { %5634 = vmatmul.mubr.f32.gmra.mrb[72].mxu0 %v8202_v11  ;;  %3976 = vmatprep.mubr.f32.mxu1 %v8064_v42  ;;  %v8218_v42 = vld [vmem:[#allocation2 + $0xc2] sm:$0xff]  ;;  %v8261_v60 = vld [vmem:[#allocation2 + $0x112] sm:$0xff]  ;;  %v8273_v61 = vld [vmem:[#allocation2 + $0x12a] sm:$0xff]  ;;  %9265 = vst [vmem:[#allocation24_spill] sm:$0xff] %v8285_v2 }
 0x3db   : > { %5636 = vmatprep.mubr.f32.mxu0 %v8206_v34  ;;  %5955 = vmatpush1.bf16.msra.mxu1 %v5954_v15  ;;  %v2837_v15 = vld [vmem:[#allocation2 + $0x27] sm:$0x1]  ;;  %9262 = vst [vmem:[#allocation22_spill] sm:$0xff] %v8273_v61  ;;  %v8290_v26 = vld [vmem:[#allocation2 + $0x90] sm:$0xff] }
 0x3dc   : > { %5956 = vmatprep.subr.bf16.mxu1 %v9258_v4  ;;  %2855 = vst [vmem:[#allocation2 + $0x29] sm:$0x1] %v2837_v15  ;;  %v3784_v15 = vld [vmem:[#allocation9 + $0x180] sm:$0xff] }
 0x3dd   : > { %3977 = vmatmul.mubr.f32.gmra.mrb[42].mxu1 %v8209_v63  ;;  %v5966_v23 = vpack.c.bf16 %v3785_v57, %v3784_v15  ;;  %v8257_v15 = vld [vmem:[#allocation2 + $0x68] sm:$0xff]  ;;  %v3788_v57 = vld [vmem:[#allocation9 + $0x1a0] sm:$0xff] }
 0x3de   : > { %5637 = vmatmul.mubr.f32.gmra.mrb[74].mxu0 %v8213_v33  ;;  %3981 = vmatprep.mubr.f32.mxu1 %v2736_v0  ;;  %v2851_v0 = vld [vmem:[#allocation2 + $0x177] sm:$0x1] }
 0x3df   : > { %5639 = vmatprep.mubr.f32.mxu0 %v8218_v42  ;;  %5958 = vmatpush1.bf16.msra.mxu1 %v5957_v21  ;;  %v8230_v21 = vld [vmem:[#allocation2 + $0xda] sm:$0xff]  ;;  %2869 = vst [vmem:[#allocation2 + $0x179] sm:$0x1] %v2851_v0  ;;  %v3787_v0 = vld [vmem:[#allocation9 + $0x198] sm:$0xff] }
 0x3e0   : > { %5959 = vmatprep.subr.bf16.mxu1 %v9258_v4 }
 0x3e1   : > { %3982 = vmatmul.mubr.f32.gmra.mrb[44].mxu1 %v8221_v54 }
 0x3e2   : > { %5640 = vmatmul.mubr.f32.gmra.mrb[76].mxu0 %v8225_v10  ;;  %3986 = vmatprep.mubr.f32.mxu1 %v2737_v24  ;;  %v8242_v24 = vld [vmem:[#allocation2 + $0xf2] sm:$0xff] }
 0x3e3   : > { %5642 = vmatprep.mubr.f32.mxu0 %v8230_v21  ;;  %5961 = vmatpush1.bf16.msra.mxu1 %v5960_v49  ;;  %v8245_v49 = vld [vmem:[#allocation2 + $0x60] sm:$0xff] }
 0x3e4   : > { %5962 = vmatprep.subr.bf16.mxu1 %v9258_v4 }
 0x3e5   : > { %3987 = vmatmul.mubr.f32.gmra.mrb[46].mxu1 %v8233_v28 }
 0x3e6   : > { %5643 = vmatmul.mubr.f32.gmra.mrb[78].mxu0 %v8237_v47  ;;  %3991 = vmatprep.mubr.f32.mxu1 %v9259_v36  ;;  %v8254_v36 = vld [vmem:[#allocation2 + $0x10a] sm:$0xff] }
 0x3e7   : > { %5645 = vmatprep.mubr.f32.mxu0 %v8242_v24  ;;  %5964 = vmatpush1.bf16.msra.mxu1 %v5963_v56  ;;  %v5969_v56 = vpack.c.bf16 %v3787_v0, %v3786_v3  ;;  %v8269_v3 = vld [vmem:[#allocation2 + $0x78] sm:$0xff]  ;;  %v3790_v0 = vld [vmem:[#allocation9 + $0x1b0] sm:$0xff] }
 0x3e8   : > { %5965 = vmatprep.subr.bf16.mxu1 %v9258_v4 }
 0x3e9   : > { %3992 = vmatmul.mubr.f32.gmra.mrb[48].mxu1 %v8245_v49 }
 0x3ea   : > { %5646 = vmatmul.mubr.f32.gmra.mrb[80].mxu0 %v8249_v48  ;;  %3996 = vmatprep.mubr.f32.mxu1 %v9260_v7  ;;  %v8266_v7 = vld [vmem:[#allocation2 + $0x122] sm:$0xff] }
 0x3eb   : > { %5648 = vmatprep.mubr.f32.mxu0 %v8254_v36  ;;  %5967 = vmatpush1.bf16.msra.mxu1 %v5966_v23  ;;  %v5972_v23 = vpack.c.bf16 %v3789_v46, %v3788_v57  ;;  %v5975_v46 = vpack.c.bf16 %v3791_v29, %v3790_v0  ;;  %v3792_v57 = vld [vmem:[#allocation9 + $0x1c0] sm:$0xff]  ;;  %v3794_v29 = vld [vmem:[#allocation9 + $0x1d0] sm:$0xff]  ;;  %v9267_v0 = vmax.f32 %v8024_v1, 0.0 }
 0x3ec   : > { %5968 = vmatprep.subr.bf16.mxu1 %v9258_v4  ;;  %v3798_v1 = vld [vmem:[#allocation9 + $0x1f0] sm:$0xff] }
 0x3ed   : > { %3997 = vmatmul.mubr.f32.gmra.mrb[50].mxu1 %v8257_v15 }
 0x3ee   : > { %5649 = vmatmul.mubr.f32.gmra.mrb[82].mxu0 %v8261_v60  ;;  %4001 = vmatprep.mubr.f32.mxu1 %v9261_v53  ;;  %v8278_v53 = vld [vmem:[#allocation2 + $0x13a] sm:$0xff] }
 0x3ef   : > { %5651 = vmatprep.mubr.f32.mxu0 %v8266_v7  ;;  %5970 = vmatpush1.bf16.msra.mxu1 %v5969_v56  ;;  %9264 = vst [vmem:[#allocation23_spill] sm:$0xff] %v8278_v53  ;;  %v8281_v56 = vld [vmem:[#allocation2 + $0x80] sm:$0xff] }
 0x3f0   : > { %5971 = vmatprep.subr.bf16.mxu1 %v9258_v4 }
 0x3f1   : > { %4002 = vmatmul.mubr.f32.gmra.mrb[52].mxu1 %v8269_v3 }
 0x3f2   : > { %5652 = vmatmul.mubr.f32.gmra.mrb[84].mxu0 %v8273_v61  ;;  %4006 = vmatprep.mubr.f32.mxu1 %v9263_v17  ;;  %v5978_v17 = vpack.c.bf16 %v3793_v45, %v3792_v57  ;;  %v8296_v61 = vld [vmem:[#allocation2 + $0x98] sm:$0xff]  ;;  %v9268_v45 = vmax.f32 %v8026_v59, 0.0  ;;  %v2853_v59 = vld [vmem:[#allocation2 + $0x1a7] sm:$0x1] }
 0x3f3   : > { %5654 = vmatprep.mubr.f32.mxu0 %v8278_v53  ;;  %5973 = vmatpush1.bf16.msra.mxu1 %v5972_v23  ;;  %v3795_v23 = vld [vmem:[#allocation9 + $0x1d8] sm:$0xff]  ;;  %2871 = vst [vmem:[#allocation2 + $0x1a9] sm:$0x1] %v2853_v59  ;;  %v8355_v59 = vld [vmem:[#allocation2 + $0x120] sm:$0xff] }
 0x3f4   : > { %5974 = vmatprep.subr.bf16.mxu1 %v9258_v4  ;;  %v5981_v53 = vpack.c.bf16 %v3795_v23, %v3794_v29  ;;  %v9269_v29 = vmax.f32 %v8028_v39, 0.0  ;;  %v9271_v39 = vmax.f32 %v8032_v27, 0.0  ;;  %v9274_v27 = vmax.f32 %v8038_v25, 0.0 }
 0x3f5   : > { %4007 = vmatmul.mubr.f32.gmra.mrb[54].mxu1 %v8281_v56  ;;  %v9277_v25 = vmax.f32 %v8044_v62, 0.0  ;;  %v9280_v62 = vmax.f32 %v8050_v19, 0.0  ;;  %v9283_v19 = vmax.f32 %v8056_v5, 0.0 }
 0x3f6   : > { %5655 = vmatmul.mubr.f32.gmra.mrb[86].mxu0 %v8285_v2  ;;  %4011 = vmatprep.mubr.f32.mxu1 %v9266_v38  ;;  %v8302_v38 = vld [vmem:[#allocation2 + $0xa8] sm:$0xff]  ;;  %v8308_v2 = vld [vmem:[#allocation2 + $0xb0] sm:$0xff] }
 0x3f7   : > { %5976 = vmatpush1.bf16.msra.mxu1 %v5975_v46  ;;  %v3797_v46 = vld [vmem:[#allocation9 + $0x1e8] sm:$0xff] }
 0x3f8   : > { %5977 = vmatprep.subr.bf16.mxu1 %v9258_v4  ;;  %v5984_v57 = vpack.c.bf16 %v3797_v46, %v3796_v6  ;;  %v8314_v6 = vld [vmem:[#allocation2 + $0xc0] sm:$0xff]  ;;  %v8320_v46 = vld [vmem:[#allocation2 + $0xc8] sm:$0xff] }
 0x3f9   : > { %4012 = vmatmul.mubr.f32.gmra.mrb[56].mxu1 %v8290_v26 }
 0x3fa   : > { %4016 = vmatprep.mubr.f32.mxu1 %v9267_v0  ;;  %v2817_v0 = vld [vmem:[#allocation2 + $0x19a] sm:$0x1] }
 0x3fb   : > { %5979 = vmatpush1.bf16.msra.mxu1 %v5978_v17  ;;  %v3799_v17 = vld [vmem:[#allocation9 + $0x1f8] sm:$0xff]  ;;  %2835 = vst [vmem:[#allocation2 + $0x198] sm:$0x1] %v2817_v0  ;;  %v8350_v0 = vld [vmem:[#allocation2 + $0x110] sm:$0xff] }
 0x3fc   : > { %5980 = vmatprep.subr.bf16.mxu1 %v9258_v4  ;;  %v5987_v23 = vpack.c.bf16 %v3799_v17, %v3798_v1  ;;  %v8330_v1 = vld [vmem:[#allocation2 + $0xe0] sm:$0xff]  ;;  %v8335_v17 = vld [vmem:[#allocation2 + $0xf0] sm:$0xff] }
 0x3fd   : > { %4017 = vmatmul.mubr.f32.gmra.mrb[58].mxu1 %v8296_v61 }
 0x3fe   : > { %4021 = vmatprep.mubr.f32.mxu1 %v9268_v45  ;;  %v9272_v45 = vmax.f32 %v8034_v20, 0.0  ;;  %v9275_v20 = vmax.f32 %v8040_v13, 0.0  ;;  %v9278_v13 = vmax.f32 %v8046_v8, 0.0  ;;  %v9281_v8 = vmax.f32 %v8052_v22, 0.0  ;;  %v8384_v22 = vld [vmem:[#allocation2 + $0x168] sm:$0xff] }
 0x3ff   : > { %5982 = vmatpush1.bf16.msra.mxu1 %v5981_v53  ;;  %v9270_v53 = vmax.f32 %v8030_v41, 0.0  ;;  %v8325_v41 = vld [vmem:[#allocation2 + $0xd8] sm:$0xff] }
 0x400   : > { %5983 = vmatprep.subr.bf16.mxu1 %v9258_v4 }
 0x401   : > { %4022 = vmatmul.mubr.f32.gmra.mrb[60].mxu1 %v8302_v38 }
 0x402   : > { %4026 = vmatprep.mubr.f32.mxu1 %v9269_v29  ;;  %v8340_v29 = vld [vmem:[#allocation2 + $0xf8] sm:$0xff] }
 0x403   : > { %5985 = vmatpush1.bf16.msra.mxu1 %v5984_v57  ;;  %v9273_v57 = vmax.f32 %v8036_v50, 0.0  ;;  %v9276_v50 = vmax.f32 %v8042_v44, 0.0  ;;  %v9279_v44 = vmax.f32 %v8048_v58, 0.0  ;;  %v9282_v58 = vmax.f32 %v8054_v43, 0.0  ;;  %v3800_v43 = vld [vmem:[#allocation9 + $0x200] sm:$0xff] }
 0x404   : > { %5986 = vmatprep.subr.bf16.mxu1 %v9258_v4 }
 0x405   : > { %4027 = vmatmul.mubr.f32.gmra.mrb[62].mxu1 %v8308_v2 }
 0x406   : > { %4031 = vmatprep.mubr.f32.mxu1 %v9270_v53  ;;  %v8360_v53 = vld [vmem:[#allocation2 + $0x128] sm:$0xff] }
 0x407   : > { %5988 = vmatpush1.bf16.msra.mxu1 %v5987_v23  ;;  %v8345_v23 = vld [vmem:[#allocation2 + $0x108] sm:$0xff] }
 0x408   : > { %5989 = vmatprep.subr.bf16.mxu1 %v9258_v4 }
 0x409   : > { %4032 = vmatmul.mubr.f32.gmra.mrb[64].mxu1 %v8314_v6 }
 0x40a   : > { %4036 = vmatprep.mubr.f32.mxu1 %v9271_v39  ;;  %v8365_v39 = vld [vmem:[#allocation2 + $0x138] sm:$0xff] }
 0x40d   : > { %4037 = vmatmul.mubr.f32.gmra.mrb[66].mxu1 %v8320_v46 }
 0x40e   : > { %4041 = vmatprep.mubr.f32.mxu1 %v9272_v45  ;;  %v8370_v45 = vld [vmem:[#allocation2 + $0x140] sm:$0xff] }
 0x411   : > { %4042 = vmatmul.mubr.f32.gmra.mrb[68].mxu1 %v8325_v41 }
 0x412   : > { %4046 = vmatprep.mubr.f32.mxu1 %v9273_v57  ;;  %v8375_v57 = vld [vmem:[#allocation2 + $0x150] sm:$0xff] }
 0x415   : > { %4047 = vmatmul.mubr.f32.gmra.mrb[70].mxu1 %v8330_v1 }
 0x416   : > { %4051 = vmatprep.mubr.f32.mxu1 %v9274_v27  ;;  %v8380_v27 = vld [vmem:[#allocation2 + $0x158] sm:$0xff] }
 0x419   : > { %4052 = vmatmul.mubr.f32.gmra.mrb[72].mxu1 %v8335_v17 }
 0x41a   : > { %4056 = vmatprep.mubr.f32.mxu1 %v9275_v20  ;;  %v3801_v20 = vld [vmem:[#allocation9 + $0x208] sm:$0xff] }
 0x41b   : > { %v5990_v5 = vpack.c.bf16 %v3801_v20, %v3800_v43  ;;  %v8396_v43 = vld [vmem:[#allocation2 + $0x1a] sm:$0xff]  ;;  %v3808_v20 = vld [vmem:[#allocation9 + $0x240] sm:$0xff] }
 0x41d   : > { %4057 = vmatmul.mubr.f32.gmra.mrb[74].mxu1 %v8340_v29 }
 0x41e   : > { %4061 = vmatprep.mubr.f32.mxu1 %v9276_v50  ;;  %v8388_v50 = vld [vmem:[#allocation2 + $0x170] sm:$0xff] }
 0x421   : > { %4062 = vmatmul.mubr.f32.gmra.mrb[76].mxu1 %v8345_v23 }
 0x422   : > { %4066 = vmatprep.mubr.f32.mxu1 %v9277_v25  ;;  %v3802_v25 = vld [vmem:[#allocation9 + $0x210] sm:$0xff] }
 0x425   : > { %4067 = vmatmul.mubr.f32.gmra.mrb[78].mxu1 %v8350_v0 }
 0x426   : > { %4071 = vmatprep.mubr.f32.mxu1 %v9278_v13  ;;  %v3803_v13 = vld [vmem:[#allocation9 + $0x218] sm:$0xff] }
 0x429   : > { %4072 = vmatmul.mubr.f32.gmra.mrb[80].mxu1 %v8355_v59 }
 0x42a   : > { %4076 = vmatprep.mubr.f32.mxu1 %v9279_v44  ;;  %v3000_v44 = vld [vmem:[#allocation2 + $0x2] sm:$0xff] }
 0x42d   : > { %4077 = vmatmul.mubr.f32.gmra.mrb[82].mxu1 %v8360_v53 }
 0x42e   : > { %4081 = vmatprep.mubr.f32.mxu1 %v9280_v62  ;;  %v3805_v62 = vld [vmem:[#allocation9 + $0x228] sm:$0xff] }
 0x431   : > { %4082 = vmatmul.mubr.f32.gmra.mrb[84].mxu1 %v8365_v39 }
 0x432   : > { %4086 = vmatprep.mubr.f32.mxu1 %v9281_v8  ;;  %v3001_v8 = vld [vmem:[#allocation2 + $0xa] sm:$0xff] }
 0x435   : > { %4087 = vmatmul.mubr.f32.gmra.mrb[86].mxu1 %v8370_v45 }
 0x436   : > { %4091 = vmatprep.mubr.f32.mxu1 %v9282_v58 }
 0x439   : > { %4092 = vmatmul.mubr.f32.gmra.mrb[88].mxu1 %v8375_v57 }
 0x43a   : > { %4096 = vmatprep.mubr.f32.mxu1 %v9283_v19  ;;  %v3807_v19 = vld [vmem:[#allocation9 + $0x238] sm:$0xff] }
 0x43d   : > { %4097 = vmatmul.mubr.f32.gmra.mrb[90].mxu1 %v8380_v27 }
 0x43e   : > { %4101 = vmatprep.mubr.f32.mxu1 %v8129_v40  ;;  %v5993_v40 = vpack.c.bf16 %v3803_v13, %v3802_v25  ;;  %v8401_v25 = vld [vmem:[#allocation2 + $0x22] sm:$0xff] }
 0x43f   : > { %v3810_v13 = vld [vmem:[#allocation9 + $0x250] sm:$0xff] }
 0x441   : > { %4102 = vmatmul.mubr.f32.gmra.mrb[92].mxu1 %v8384_v22 }
 0x442   : > { %4106 = vmatprep.mubr.f32.mxu1 %v8131_v31  ;;  %v3804_v31 = vld [vmem:[#allocation9 + $0x220] sm:$0xff] }
 0x443   : > { %v5996_v58 = vpack.c.bf16 %v3805_v62, %v3804_v31  ;;  %v3813_v31 = vld [vmem:[#allocation9 + $0x268] sm:$0xff]  ;;  %v3814_v62 = vld [vmem:[#allocation9 + $0x270] sm:$0xff] }
 0x445   : > { %4107 = vmatmul.mubr.f32.gmra.mrb[94].mxu1 %v8388_v50 }
 0x446   : > { %4176 = vmatprep.mubr.f32.mxu1 %v8175_v18  ;;  %v3806_v18 = vld [vmem:[#allocation9 + $0x230] sm:$0xff] }
 0x449   : > { %4177 = vmatmul.mubr.f32.vlgmr.msra.gmra.mrb[32].mxu1 %v3000_v44  ;;  %v3811_v44 = vld [vmem:[#allocation9 + $0x258] sm:$0xff] }
 0x44a   : > { %4181 = vmatprep.mubr.f32.mxu1 %v8187_v52  ;;  %5991 = vmatpush1.bf16.msra.mxu1 %v5990_v5  ;;  %v5999_v52 = vpack.c.bf16 %v3807_v19, %v3806_v18  ;;  %v3809_v5 = vld [vmem:[#allocation9 + $0x248] sm:$0xff]  ;;  %v3819_v18 = vld [vmem:[#allocation9 + $0x298] sm:$0xff] }
 0x44b   : > { %5992 = vmatprep.subr.bf16.mxu1 %v9258_v4  ;;  %v3821_v19 = vld [vmem:[#allocation9 + $0x2a8] sm:$0xff] }
 0x44d   : > { %4182 = vmatmul.mubr.f32.gmra.mrb[34].mxu1 %v3001_v8  ;;  %v3815_v8 = vld [vmem:[#allocation9 + $0x278] sm:$0xff] }
 0x44e   : > { %4186 = vmatprep.mubr.f32.mxu1 %v8198_v9  ;;  %5994 = vmatpush1.bf16.msra.mxu1 %v5993_v40  ;;  %v6002_v9 = vpack.c.bf16 %v3809_v5, %v3808_v20  ;;  %v3812_v40 = vld [vmem:[#allocation9 + $0x260] sm:$0xff]  ;;  %v3825_v20 = vld [vmem:[#allocation9 + $0x2c8] sm:$0xff]  ;;  %v3827_v5 = vld [vmem:[#allocation9 + $0x2d8] sm:$0xff] }
 0x44f   : > { %5995 = vmatprep.subr.bf16.mxu1 %v9258_v4 }
 0x451   : > { %4187 = vmatmul.mubr.f32.gmra.mrb[36].mxu1 %v8396_v43 }
 0x452   : > { %4191 = vmatprep.mubr.f32.mxu1 %v8209_v63  ;;  %5997 = vmatpush1.bf16.msra.mxu1 %v5996_v58  ;;  %v6005_v63 = vpack.c.bf16 %v3811_v44, %v3810_v13  ;;  %v3817_v58 = vld [vmem:[#allocation9 + $0x288] sm:$0xff]  ;;  %v3831_v13 = vld [vmem:[#allocation9 + $0x2f8] sm:$0xff] }
 0x453   : > { %5998 = vmatprep.subr.bf16.mxu1 %v9258_v4  ;;  %v3833_v44 = vld [vmem:[#allocation9 + $0x308] sm:$0xff] }
 0x455   : > { %4192 = vmatmul.mubr.f32.gmra.mrb[38].mxu1 %v8401_v25 }
 0x456   : > { %4196 = vmatprep.mubr.f32.mxu1 %v8221_v54  ;;  %6000 = vmatpush1.bf16.msra.mxu1 %v5999_v52  ;;  %v6008_v54 = vpack.c.bf16 %v3813_v31, %v3812_v40  ;;  %v3823_v52 = vld [vmem:[#allocation9 + $0x2b8] sm:$0xff] }
 0x457   : > { %6001 = vmatprep.subr.bf16.mxu1 %v9258_v4 }
 0x459   : > { %4197 = vmatmul.mubr.f32.gmra.mrb[40].mxu1 %v8156_v12  ;;  %v6011_v12 = vpack.c.bf16 %v3815_v8, %v3814_v62  ;;  %v3834_v62 = vld [vmem:[#allocation9 + $0x310] sm:$0xff]  ;;  %v3835_v8 = vld [vmem:[#allocation9 + $0x318] sm:$0xff] }
 0x45a   : > { %4201 = vmatprep.mubr.f32.mxu1 %v8233_v28  ;;  %6003 = vmatpush1.bf16.msra.mxu1 %v6002_v9  ;;  %v3816_v28 = vld [vmem:[#allocation9 + $0x280] sm:$0xff]  ;;  %v3829_v9 = vld [vmem:[#allocation9 + $0x2e8] sm:$0xff] }
 0x45b   : > { %6004 = vmatprep.subr.bf16.mxu1 %v9258_v4 }
 0x45d   : > { %4202 = vmatmul.mubr.f32.gmra.mrb[42].mxu1 %v8159_v35  ;;  %v6014_v35 = vpack.c.bf16 %v3817_v58, %v3816_v28 }
 0x45e   : > { %4206 = vmatprep.mubr.f32.mxu1 %v8245_v49  ;;  %6006 = vmatpush1.bf16.msra.mxu1 %v6005_v63  ;;  %v3818_v49 = vld [vmem:[#allocation9 + $0x290] sm:$0xff]  ;;  %v8522_v63 = vld [vmem:[#allocation2 + $0x172] sm:$0xff] }
 0x45f   : > { %6007 = vmatprep.subr.bf16.mxu1 %v9258_v4 }
 0x461   : > { %4207 = vmatmul.mubr.f32.gmra.mrb[44].mxu1 %v8163_v51  ;;  %v6017_v51 = vpack.c.bf16 %v3819_v18, %v3818_v49  ;;  %v3836_v49 = vld [vmem:[#allocation9 + $0x320] sm:$0xff]  ;;  %v3837_v18 = vld [vmem:[#allocation9 + $0x328] sm:$0xff] }
 0x462   : > { %4211 = vmatprep.mubr.f32.mxu1 %v8257_v15  ;;  %6009 = vmatpush1.bf16.msra.mxu1 %v6008_v54  ;;  %v3820_v15 = vld [vmem:[#allocation9 + $0x2a0] sm:$0xff] }
 0x463   : > { %6010 = vmatprep.subr.bf16.mxu1 %v9258_v4 }
 0x465   : > { %4212 = vmatmul.mubr.f32.gmra.mrb[46].mxu1 %v8167_v37  ;;  %v6020_v37 = vpack.c.bf16 %v3821_v19, %v3820_v15  ;;  %v6044_v15 = vpack.c.bf16 %v3837_v18, %v3836_v49  ;;  %v3838_v19 = vld [vmem:[#allocation9 + $0x330] sm:$0xff] }
 0x466   : > { %4216 = vmatprep.mubr.f32.mxu1 %v8269_v3  ;;  %6012 = vmatpush1.bf16.msra.mxu1 %v6011_v12  ;;  %v3822_v3 = vld [vmem:[#allocation9 + $0x2b0] sm:$0xff] }
 0x467   : > { %6013 = vmatprep.subr.bf16.mxu1 %v9258_v4  ;;  %v3128_v12 = vld [vmem:[#allocation2 + $0x19] sm:$0xff] }
 0x468   : > { %v3200_v49 = vld [vmem:[#allocation2 + $0x7a] sm:$0xff] }
 0x469   : > { %4217 = vmatmul.mubr.f32.gmra.mrb[48].mxu1 %v8172_v32  ;;  %v6023_v32 = vpack.c.bf16 %v3823_v52, %v3822_v3  ;;  %v8537_v3 = vld [vmem:[#allocation2 + $0x31] sm:$0xff] }
 0x46a   : > { %4221 = vmatprep.mubr.f32.mxu1 %v8281_v56  ;;  %6015 = vmatpush1.bf16.msra.mxu1 %v6014_v35  ;;  %v3824_v56 = vld [vmem:[#allocation9 + $0x2c0] sm:$0xff]  ;;  %v6041_v35 = vpack.c.bf16 %v3835_v8, %v3834_v62 }
 0x46b   : > { %6016 = vmatprep.subr.bf16.mxu1 %v9258_v4  ;;  %v3848_v8 = vld [vmem:[#allocation9 + $0x380] sm:$0xff] }
 0x46d   : > { %4222 = vmatmul.mubr.f32.gmra.mrb[50].mxu1 %v8179_v14  ;;  %v3826_v14 = vld [vmem:[#allocation9 + $0x2d0] sm:$0xff] }
 0x46e   : > { %4226 = vmatprep.mubr.f32.mxu1 %v8290_v26  ;;  %6018 = vmatpush1.bf16.msra.mxu1 %v6017_v51  ;;  %v6026_v26 = vpack.c.bf16 %v3825_v20, %v3824_v56  ;;  %v3129_v51 = vld [vmem:[#allocation2 + $0x21] sm:$0xff]  ;;  %v3841_v56 = vld [vmem:[#allocation9 + $0x348] sm:$0xff] }
 0x46f   : > { %6019 = vmatprep.subr.bf16.mxu1 %v9258_v4  ;;  %v8541_v20 = vld [vmem:[#allocation2 + $0x39] sm:$0xff] }
 0x471   : > { %4227 = vmatmul.mubr.f32.gmra.mrb[52].mxu1 %v8184_v16  ;;  %v3828_v16 = vld [vmem:[#allocation9 + $0x2e0] sm:$0xff] }
 0x472   : > { %4231 = vmatprep.mubr.f32.mxu1 %v8296_v61  ;;  %6021 = vmatpush1.bf16.msra.mxu1 %v6020_v37  ;;  %v6029_v61 = vpack.c.bf16 %v3827_v5, %v3826_v14  ;;  %v3839_v37 = vld [vmem:[#allocation9 + $0x338] sm:$0xff]  ;;  %v3842_v5 = vld [vmem:[#allocation9 + $0x350] sm:$0xff] }
 0x473   : > { %6022 = vmatprep.subr.bf16.mxu1 %v9258_v4  ;;  %v6047_v52 = vpack.c.bf16 %v3839_v37, %v3838_v19  ;;  %v3201_v19 = vld [vmem:[#allocation2 + $0x82] sm:$0xff] }
 0x475   : > { %4232 = vmatmul.mubr.f32.gmra.mrb[54].mxu1 %v8191_v30  ;;  %v6032_v30 = vpack.c.bf16 %v3829_v9, %v3828_v16  ;;  %v8545_v16 = vld [vmem:[#allocation2 + $0x49] sm:$0xff]  ;;  %v3197_v9 = vld [vmem:[#allocation2 + $0x52] sm:$0xff] }
 0x476   : > { %4236 = vmatprep.mubr.f32.mxu1 %v8302_v38  ;;  %6024 = vmatpush1.bf16.msra.mxu1 %v6023_v32  ;;  %v3830_v38 = vld [vmem:[#allocation9 + $0x2f0] sm:$0xff]  ;;  %v3840_v32 = vld [vmem:[#allocation9 + $0x340] sm:$0xff] }
 0x477   : > { %6025 = vmatprep.subr.bf16.mxu1 %v9258_v4  ;;  %v6050_v14 = vpack.c.bf16 %v3841_v56, %v3840_v32  ;;  %v8565_v32 = vld [vmem:[#allocation2 + $0x81] sm:$0xff]  ;;  %v3202_v56 = vld [vmem:[#allocation2 + $0x92] sm:$0xff] }
 0x479   : > { %4237 = vmatmul.mubr.f32.gmra.mrb[56].mxu1 %v8195_v55 }
 0x47a   : > { %4241 = vmatprep.mubr.f32.mxu1 %v8308_v2  ;;  %6027 = vmatpush1.bf16.msra.mxu1 %v6026_v26  ;;  %v6035_v2 = vpack.c.bf16 %v3831_v13, %v3830_v38  ;;  %v3196_v26 = vld [vmem:[#allocation2 + $0x4a] sm:$0xff]  ;;  %v3845_v13 = vld [vmem:[#allocation9 + $0x368] sm:$0xff] }
 0x47b   : > { %6028 = vmatprep.subr.bf16.mxu1 %v9258_v4  ;;  %v3844_v38 = vld [vmem:[#allocation9 + $0x360] sm:$0xff] }
 0x47d   : > { %4242 = vmatmul.mubr.f32.gmra.mrb[58].mxu1 %v8202_v11 }
 0x47e   : > { %4246 = vmatprep.mubr.f32.mxu1 %v8314_v6  ;;  %6030 = vmatpush1.bf16.msra.mxu1 %v6029_v61  ;;  %v9285_v6 = vld [vmem:[#allocation23_spill] sm:$0xff]  ;;  %v3843_v61 = vld [vmem:[#allocation9 + $0x358] sm:$0xff] }
 0x47f   : > { %6031 = vmatprep.subr.bf16.mxu1 %v9258_v4 }
 0x481   : > { %4247 = vmatmul.mubr.f32.gmra.mrb[60].mxu1 %v8206_v34 }
 0x482   : > { %4251 = vmatprep.mubr.f32.mxu1 %v8320_v46  ;;  %6033 = vmatpush1.bf16.msra.mxu1 %v6032_v30  ;;  %v6053_v30 = vpack.c.bf16 %v3843_v61, %v3842_v5  ;;  %v3855_v5 = vld [vmem:[#allocation9 + $0x3b8] sm:$0xff]  ;;  %v8569_v61 = vld [vmem:[#allocation2 + $0x91] sm:$0xff] }
 0x483   : > { %6034 = vmatprep.subr.bf16.mxu1 %v9258_v4 }
 0x485   : > { %4252 = vmatmul.mubr.f32.gmra.mrb[62].mxu1 %v8213_v33 }
 0x486   : > { %4256 = vmatprep.mubr.f32.mxu1 %v8325_v41  ;;  %6036 = vmatpush1.bf16.msra.mxu1 %v6035_v2  ;;  %v9286_v41 = vld [vmem:[#allocation24_spill] sm:$0xff]  ;;  %v8549_v2 = vld [vmem:[#allocation2 + $0x51] sm:$0xff] }
 0x487   : > { %6037 = vmatprep.subr.bf16.mxu1 %v9258_v4 }
 0x489   : > { %4257 = vmatmul.mubr.f32.gmra.mrb[64].mxu1 %v8218_v42 }
 0x48a   : > { %4261 = vmatprep.mubr.f32.mxu1 %v8330_v1 }
 0x48d   : > { %4262 = vmatmul.mubr.f32.gmra.mrb[66].mxu1 %v8225_v10 }
 0x48e   : > { %4266 = vmatprep.mubr.f32.mxu1 %v8335_v17  ;;  %v8494_v17 = vld [vmem:[#allocation2 + $0x152] sm:$0xff] }
 0x491   : > { %4267 = vmatmul.mubr.f32.gmra.mrb[68].mxu1 %v8230_v21 }
 0x492   : > { %4271 = vmatprep.mubr.f32.mxu1 %v8340_v29 }
 0x495   : > { %4272 = vmatmul.mubr.f32.gmra.mrb[70].mxu1 %v8237_v47 }
 0x496   : > { %4276 = vmatprep.mubr.f32.mxu1 %v8345_v23 }
 0x499   : > { %4277 = vmatmul.mubr.f32.gmra.mrb[72].mxu1 %v8242_v24  ;;  %v9284_v24 = vld [vmem:[#allocation22_spill] sm:$0xff] }
 0x49a   : > { %4281 = vmatprep.mubr.f32.mxu1 %v8350_v0  ;;  %v8502_v0 = vld [vmem:[#allocation2 + $0x15a] sm:$0xff] }
 0x49d   : > { %v8452_v55 = vpop.f32.mrb[64].mxu0  ;;  %4282 = vmatmul.mubr.f32.gmra.mrb[74].mxu1 %v8249_v48 }
 0x49e   : > { %v8455_v11 = vpop.f32.mrb[65].mxu0  ;;  %4286 = vmatprep.mubr.f32.mxu1 %v8355_v59 }
 0x4a1   : > { %v8458_v34 = vpop.f32.mrb[66].mxu0  ;;  %4287 = vmatmul.mubr.f32.gmra.mrb[76].mxu1 %v8254_v36 }
 0x4a2   : > { %v8461_v33 = vpop.f32.mrb[67].mxu0  ;;  %4291 = vmatprep.mubr.f32.mxu1 %v8360_v53  ;;  %v8507_v53 = vld [vmem:[#allocation2 + $0x180] sm:$0xff] }
 0x4a5   : > { %v8464_v42 = vpop.f32.mrb[68].mxu0  ;;  %4292 = vmatmul.mubr.f32.gmra.mrb[78].mxu1 %v8261_v60 }
 0x4a6   : > { %v8467_v10 = vpop.f32.mrb[69].mxu0  ;;  %4296 = vmatprep.mubr.f32.mxu1 %v8365_v39 }
 0x4a9   : > { %v8470_v48 = vpop.f32.mrb[70].mxu0  ;;  %4297 = vmatmul.mubr.f32.gmra.mrb[80].mxu1 %v8266_v7 }
 0x4aa   : > { %v8473_v21 = vpop.f32.mrb[71].mxu0  ;;  %4301 = vmatprep.mubr.f32.mxu1 %v8370_v45  ;;  %v8512_v45 = vld [vmem:[#allocation2 + $0x16a] sm:$0xff] }
 0x4ad   : > { %v8476_v47 = vpop.f32.mrb[72].mxu0  ;;  %4302 = vmatmul.mubr.f32.gmra.mrb[82].mxu1 %v9284_v24  ;;  %v3198_v24 = vld [vmem:[#allocation2 + $0x62] sm:$0xff] }
 0x4ae   : > { %v8479_v36 = vpop.f32.mrb[73].mxu0  ;;  %4306 = vmatprep.mubr.f32.mxu1 %v8375_v57 }
 0x4b1   : > { %v8482_v60 = vpop.f32.mrb[74].mxu0  ;;  %4307 = vmatmul.mubr.f32.gmra.mrb[84].mxu1 %v9285_v6  ;;  %v6056_v6 = vpack.c.bf16 %v3845_v13, %v3844_v38  ;;  %v3856_v38 = vld [vmem:[#allocation9 + $0x3c0] sm:$0xff]  ;;  %v3857_v13 = vld [vmem:[#allocation9 + $0x3c8] sm:$0xff] }
 0x4b2   : > { %v8485_v46 = vpop.f32.mrb[75].mxu0  ;;  %4311 = vmatprep.mubr.f32.mxu1 %v8380_v27  ;;  %v8517_v27 = vld [vmem:[#allocation2 + $0x188] sm:$0xff] }
 0x4b5   : > { %v8488_v7 = vpop.f32.mrb[76].mxu0  ;;  %4312 = vmatmul.mubr.f32.gmra.mrb[86].mxu1 %v9286_v41  ;;  %v3846_v41 = vld [vmem:[#allocation9 + $0x370] sm:$0xff] }
 0x4b6   : > { %v8491_v1 = vpop.f32.mrb[77].mxu0  ;;  %4316 = vmatprep.mubr.f32.mxu1 %v8384_v22 }
 0x4b9   : > { %v8496_v29 = vpop.f32.mrb[78].mxu0  ;;  %4317 = vmatmul.mubr.f32.gmra.mrb[88].mxu1 %v8494_v17 }
 0x4ba   : > { %v8499_v23 = vpop.f32.mrb[79].mxu0  ;;  %4321 = vmatprep.mubr.f32.mxu1 %v8388_v50  ;;  %v3832_v50 = vld [vmem:[#allocation9 + $0x300] sm:$0xff] }
 0x4bb   : > { %v6038_v54 = vpack.c.bf16 %v3833_v44, %v3832_v50  ;;  %v3847_v50 = vld [vmem:[#allocation9 + $0x378] sm:$0xff] }
 0x4bc   : > { %v8553_v44 = vld [vmem:[#allocation2 + $0x61] sm:$0xff]  ;;  %v6059_v62 = vpack.c.bf16 %v3847_v50, %v3846_v41  ;;  %v6074_v41 = vpack.c.bf16 %v3857_v13, %v3856_v38 }
 0x4bd   : > { %v8504_v59 = vpop.f32.mrb[80].mxu0  ;;  %4322 = vmatmul.mubr.f32.gmra.mrb[90].mxu1 %v8502_v0  ;;  %v3858_v50 = vld [vmem:[#allocation9 + $0x3d0] sm:$0xff] }
 0x4be   : > { %v8509_v39 = vpop.f32.mrb[81].mxu0  ;;  %4326 = vmatprep.mubr.f32.mxu1 %v8507_v53  ;;  %v3209_v38 = vld [vmem:[#allocation2 + $0xe2] sm:$0xff] }
 0x4bf   : > { %v8596_v13 = vld [vmem:[#allocation2 + $0xe1] sm:$0xff] }
 0x4c1   : > { %v8514_v57 = vpop.f32.mrb[82].mxu0  ;;  %4327 = vmatmul.mubr.f32.gmra.mrb[92].mxu1 %v8512_v45 }
 0x4c2   : > { %v8519_v22 = vpop.f32.mrb[83].mxu0  ;;  %4331 = vmatprep.mubr.f32.mxu1 %v8517_v27 }
 0x4c5   : > { %v8524_v40 = vpop.f32.mrb[84].mxu0  ;;  %4332 = vmatmul.mubr.f32.gmra.mrb[94].mxu1 %v8522_v63 }
 0x4c6   : > { %9287 = vst [vmem:[#allocation22_spill] sm:$0xff] %v8524_v40  ;;  %v8527_v31 = vpop.f32.mrb[85].mxu0  ;;  %4401 = vmatprep.mubr.f32.mxu1 %v8396_v43  ;;  %v3194_v43 = vld [vmem:[#allocation2 + $0x32] sm:$0xff]  ;;  %v9293_v40 = vld [vmem:[#allocation16_spill] sm:$0xff] }
 0x4c7   : > { %9288 = vst [vmem:[#allocation23_spill] sm:$0xff] %v8527_v31  ;;  %v3258_v31 = vld [vmem:[#allocation2 + $0x48] sm:$0xff] }
 0x4c9   : > { %v8530_v28 = vpop.f32.mrb[86].mxu0  ;;  %4402 = vmatmul.mubr.f32.vlgmr.msra.gmra.mrb[32].mxu1 %v3128_v12  ;;  %v3849_v12 = vld [vmem:[#allocation9 + $0x388] sm:$0xff] }
 0x4ca   : > { %9289 = vst [vmem:[#allocation24_spill] sm:$0xff] %v8530_v28  ;;  %v8532_v58 = vpop.f32.mrb[87].mxu0  ;;  %4406 = vmatprep.mubr.f32.mxu1 %v8401_v25  ;;  %6039 = vmatpush1.bf16.msra.mxu1 %v6038_v54  ;;  %v3195_v25 = vld [vmem:[#allocation2 + $0x3a] sm:$0xff]  ;;  %v3199_v54 = vld [vmem:[#allocation2 + $0x6a] sm:$0xff]  ;;  %v6062_v18 = vpack.c.bf16 %v3849_v12, %v3848_v8  ;;  %v3205_v8 = vld [vmem:[#allocation2 + $0xb2] sm:$0xff] }
 0x4cb   : > { %9290 = vst [vmem:[#allocation25_spill] sm:$0xff] %v8532_v58  ;;  %6040 = vmatprep.subr.bf16.mxu1 %v9258_v4  ;;  %v9292_v28 = vld [vmem:[#allocation15_spill] sm:$0xff] }
 0x4cc   : > { %v3257_v58 = vld [vmem:[#allocation2 + $0x38] sm:$0xff] }
 0x4cd   : > { %4407 = vmatmul.mubr.f32.gmra.mrb[34].mxu1 %v3129_v51  ;;  %v3850_v51 = vld [vmem:[#allocation9 + $0x390] sm:$0xff] }
 0x4ce   : > { %4411 = vmatprep.mubr.f32.mxu1 %v3194_v43  ;;  %6042 = vmatpush1.bf16.msra.mxu1 %v6041_v35  ;;  %v8557_v35 = vld [vmem:[#allocation2 + $0x69] sm:$0xff] }
 0x4cf   : > { %6043 = vmatprep.subr.bf16.mxu1 %v9258_v4  ;;  %v3851_v43 = vld [vmem:[#allocation9 + $0x398] sm:$0xff] }
 0x4d0   : > { %v6065_v37 = vpack.c.bf16 %v3851_v43, %v3850_v51  ;;  %v8581_v51 = vld [vmem:[#allocation2 + $0xb1] sm:$0xff]  ;;  %v3206_v43 = vld [vmem:[#allocation2 + $0xc2] sm:$0xff] }
 0x4d1   : > { %4412 = vmatmul.mubr.f32.gmra.mrb[36].mxu1 %v8537_v3 }
 0x4d2   : > { %4416 = vmatprep.mubr.f32.mxu1 %v3195_v25  ;;  %6045 = vmatpush1.bf16.msra.mxu1 %v6044_v15  ;;  %v8561_v15 = vld [vmem:[#allocation2 + $0x79] sm:$0xff]  ;;  %v3852_v25 = vld [vmem:[#allocation9 + $0x3a0] sm:$0xff] }
 0x4d3   : > { %6046 = vmatprep.subr.bf16.mxu1 %v9258_v4 }
 0x4d5   : > { %4417 = vmatmul.mubr.f32.gmra.mrb[38].mxu1 %v8541_v20 }
 0x4d6   : > { %4421 = vmatprep.mubr.f32.mxu1 %v3196_v26  ;;  %6048 = vmatpush1.bf16.msra.mxu1 %v6047_v52  ;;  %v3853_v52 = vld [vmem:[#allocation9 + $0x3a8] sm:$0xff] }
 0x4d7   : > { %6049 = vmatprep.subr.bf16.mxu1 %v9258_v4  ;;  %v6068_v26 = vpack.c.bf16 %v3853_v52, %v3852_v25  ;;  %v3863_v25 = vld [vmem:[#allocation9 + $0x3f8] sm:$0xff] }
 0x4d8   : > { %v8585_v52 = vld [vmem:[#allocation2 + $0xc1] sm:$0xff] }
 0x4d9   : > { %4422 = vmatmul.mubr.f32.gmra.mrb[40].mxu1 %v8545_v16 }
 0x4da   : > { %4426 = vmatprep.mubr.f32.mxu1 %v3197_v9  ;;  %6051 = vmatpush1.bf16.msra.mxu1 %v6050_v14  ;;  %v3854_v14 = vld [vmem:[#allocation9 + $0x3b0] sm:$0xff] }
 0x4db   : > { %6052 = vmatprep.subr.bf16.mxu1 %v9258_v4  ;;  %v3203_v9 = vld [vmem:[#allocation2 + $0x9a] sm:$0xff] }
 0x4dd   : > { %4427 = vmatmul.mubr.f32.gmra.mrb[42].mxu1 %v8549_v2 }
 0x4de   : > { %4431 = vmatprep.mubr.f32.mxu1 %v3198_v24  ;;  %6054 = vmatpush1.bf16.msra.mxu1 %v6053_v30  ;;  %v6071_v30 = vpack.c.bf16 %v3855_v5, %v3854_v14  ;;  %v8573_v24 = vld [vmem:[#allocation2 + $0x99] sm:$0xff]  ;;  %v8589_v14 = vld [vmem:[#allocation2 + $0xc9] sm:$0xff] }
 0x4df   : > { %6055 = vmatprep.subr.bf16.mxu1 %v9258_v4  ;;  %v3208_v5 = vld [vmem:[#allocation2 + $0xda] sm:$0xff] }
 0x4e1   : > { %4432 = vmatmul.mubr.f32.gmra.mrb[44].mxu1 %v8553_v44 }
 0x4e2   : > { %4436 = vmatprep.mubr.f32.mxu1 %v3199_v54  ;;  %6057 = vmatpush1.bf16.msra.mxu1 %v6056_v6  ;;  %v3204_v6 = vld [vmem:[#allocation2 + $0xaa] sm:$0xff] }
 0x4e3   : > { %6058 = vmatprep.subr.bf16.mxu1 %v9258_v4  ;;  %v3859_v54 = vld [vmem:[#allocation9 + $0x3d8] sm:$0xff] }
 0x4e4   : > { %v6077_v12 = vpack.c.bf16 %v3859_v54, %v3858_v50  ;;  %v8602_v50 = vld [vmem:[#allocation2 + $0xf9] sm:$0xff]  ;;  %v3212_v54 = vld [vmem:[#allocation2 + $0x10a] sm:$0xff] }
 0x4e5   : > { %4437 = vmatmul.mubr.f32.gmra.mrb[46].mxu1 %v8557_v35 }
 0x4e6   : > { %4441 = vmatprep.mubr.f32.mxu1 %v3200_v49  ;;  %6060 = vmatpush1.bf16.msra.mxu1 %v6059_v62  ;;  %v8577_v62 = vld [vmem:[#allocation2 + $0xa9] sm:$0xff] }
 0x4e7   : > { %6061 = vmatprep.subr.bf16.mxu1 %v9258_v4  ;;  %v3860_v49 = vld [vmem:[#allocation9 + $0x3e0] sm:$0xff] }
 0x4e9   : > { %4442 = vmatmul.mubr.f32.gmra.mrb[48].mxu1 %v8561_v15 }
 0x4ea   : > { %4446 = vmatprep.mubr.f32.mxu1 %v3201_v19  ;;  %6063 = vmatpush1.bf16.msra.mxu1 %v6062_v18  ;;  %v3861_v18 = vld [vmem:[#allocation9 + $0x3e8] sm:$0xff] }
 0x4eb   : > { %6064 = vmatprep.subr.bf16.mxu1 %v9258_v4  ;;  %v6080_v19 = vpack.c.bf16 %v3861_v18, %v3860_v49  ;;  %v8608_v49 = vld [vmem:[#allocation2 + $0x111] sm:$0xff]  ;;  %v3214_v18 = vld [vmem:[#allocation2 + $0x122] sm:$0xff] }
 0x4ed   : > { %4447 = vmatmul.mubr.f32.gmra.mrb[50].mxu1 %v8565_v32 }
 0x4ee   : > { %4451 = vmatprep.mubr.f32.mxu1 %v3202_v56  ;;  %6066 = vmatpush1.bf16.msra.mxu1 %v6065_v37  ;;  %v3862_v37 = vld [vmem:[#allocation9 + $0x3f0] sm:$0xff]  ;;  %v3207_v56 = vld [vmem:[#allocation2 + $0xca] sm:$0xff] }
 0x4ef   : > { %6067 = vmatprep.subr.bf16.mxu1 %v9258_v4 }
 0x4f1   : > { %4452 = vmatmul.mubr.f32.gmra.mrb[52].mxu1 %v8569_v61 }
 0x4f2   : > { %4456 = vmatprep.mubr.f32.mxu1 %v3203_v9  ;;  %6069 = vmatpush1.bf16.msra.mxu1 %v6068_v26  ;;  %v6083_v26 = vpack.c.bf16 %v3863_v25, %v3862_v37  ;;  %v9291_v9 = vld [vmem:[#allocation14_spill] sm:$0xff]  ;;  %v3216_v25 = vld [vmem:[#allocation2 + $0x13a] sm:$0xff] }
 0x4f3   : > { %6070 = vmatprep.subr.bf16.mxu1 %v9258_v4  ;;  %v8614_v37 = vld [vmem:[#allocation2 + $0x129] sm:$0xff] }
 0x4f5   : > { %4457 = vmatmul.mubr.f32.gmra.mrb[54].mxu1 %v8573_v24 }
 0x4f6   : > { %4461 = vmatprep.mubr.f32.mxu1 %v3204_v6  ;;  %6072 = vmatpush1.bf16.msra.mxu1 %v6071_v30  ;;  %v8593_v30 = vld [vmem:[#allocation2 + $0xd9] sm:$0xff]  ;;  %v8599_v6 = vld [vmem:[#allocation2 + $0xf1] sm:$0xff] }
 0x4f7   : > { %6073 = vmatprep.subr.bf16.mxu1 %v9258_v4 }
 0x4f9   : > { %4462 = vmatmul.mubr.f32.gmra.mrb[56].mxu1 %v8577_v62 }
 0x4fa   : > { %4466 = vmatprep.mubr.f32.mxu1 %v3205_v8  ;;  %6075 = vmatpush1.bf16.msra.mxu1 %v6074_v41  ;;  %v3211_v41 = vld [vmem:[#allocation2 + $0xfa] sm:$0xff]  ;;  %v8605_v8 = vld [vmem:[#allocation2 + $0x109] sm:$0xff] }
 0x4fb   : > { %6076 = vmatprep.subr.bf16.mxu1 %v9258_v4 }
 0x4fd   : > { %4467 = vmatmul.mubr.f32.gmra.mrb[58].mxu1 %v8581_v51 }
 0x4fe   : > { %4471 = vmatprep.mubr.f32.mxu1 %v3206_v43  ;;  %6078 = vmatpush1.bf16.msra.mxu1 %v6077_v12  ;;  %v3213_v12 = vld [vmem:[#allocation2 + $0x112] sm:$0xff]  ;;  %v8611_v43 = vld [vmem:[#allocation2 + $0x121] sm:$0xff] }
 0x4ff   : > { %6079 = vmatprep.subr.bf16.mxu1 %v9258_v4 }
 0x501   : > { %4472 = vmatmul.mubr.f32.gmra.mrb[60].mxu1 %v8585_v52 }
 0x502   : > { %4476 = vmatprep.mubr.f32.mxu1 %v3207_v56  ;;  %6081 = vmatpush1.bf16.msra.mxu1 %v6080_v19  ;;  %v3215_v19 = vld [vmem:[#allocation2 + $0x12a] sm:$0xff]  ;;  %v8617_v56 = vld [vmem:[#allocation2 + $0x139] sm:$0xff] }
 0x503   : > { %6082 = vmatprep.subr.bf16.mxu1 %v9258_v4  ;;  %v3210_v4 = vld [vmem:[#allocation2 + $0xf2] sm:$0xff] }
 0x505   : > { %4477 = vmatmul.mubr.f32.gmra.mrb[62].mxu1 %v8589_v14 }
 0x506   : > { %4481 = vmatprep.mubr.f32.mxu1 %v3208_v5  ;;  %6084 = vmatpush1.bf16.msra.mxu1 %v6083_v26  ;;  %v3217_v26 = vld [vmem:[#allocation2 + $0x142] sm:$0xff] }
 0x507   : > { %6117 = vmatprep.subr.bf16.mxu1 %v9291_v9  ;;  %v8620_v5 = vld [vmem:[#allocation2 + $0x141] sm:$0xff] }
 0x509   : > { %4482 = vmatmul.mubr.f32.gmra.mrb[64].mxu1 %v8593_v30 }
 0x50a   : > { %4486 = vmatprep.mubr.f32.mxu1 %v3209_v38  ;;  %v8624_v38 = vld [vmem:[#allocation2 + $0x151] sm:$0xff] }
 0x50d   : > { %4487 = vmatmul.mubr.f32.gmra.mrb[66].mxu1 %v8596_v13 }
 0x50e   : > { %4491 = vmatprep.mubr.f32.mxu1 %v3210_v4  ;;  %v8628_v4 = vld [vmem:[#allocation2 + $0x159] sm:$0xff] }
 0x511   : > { %4492 = vmatmul.mubr.f32.gmra.mrb[68].mxu1 %v8599_v6 }
 0x512   : > { %4496 = vmatprep.mubr.f32.mxu1 %v3211_v41  ;;  %v8632_v41 = vld [vmem:[#allocation2 + $0x169] sm:$0xff] }
 0x515   : > { %4497 = vmatmul.mubr.f32.gmra.mrb[70].mxu1 %v8602_v50 }
 0x516   : > { %4501 = vmatprep.mubr.f32.mxu1 %v3212_v54  ;;  %v8636_v54 = vld [vmem:[#allocation2 + $0x171] sm:$0xff] }
 0x519   : > { %4502 = vmatmul.mubr.f32.gmra.mrb[72].mxu1 %v8605_v8 }
 0x51a   : > { %4506 = vmatprep.mubr.f32.mxu1 %v3213_v12  ;;  %v8639_v12 = vld [vmem:[#allocation2 + $0x182] sm:$0xff] }
 0x51d   : > { %4507 = vmatmul.mubr.f32.gmra.mrb[74].mxu1 %v8608_v49 }
 0x51e   : > { %4511 = vmatprep.mubr.f32.mxu1 %v3214_v18  ;;  %v8642_v18 = vld [vmem:[#allocation2 + $0x181] sm:$0xff] }
 0x521   : > { %4512 = vmatmul.mubr.f32.gmra.mrb[76].mxu1 %v8611_v43 }
 0x522   : > { %4516 = vmatprep.mubr.f32.mxu1 %v3215_v19  ;;  %v8645_v19 = vld [vmem:[#allocation2 + $0x18a] sm:$0xff] }
 0x525   : > { %4517 = vmatmul.mubr.f32.gmra.mrb[78].mxu1 %v8614_v37 }
 0x526   : > { %4521 = vmatprep.mubr.f32.mxu1 %v3216_v25  ;;  %v8648_v25 = vld [vmem:[#allocation2 + $0x189] sm:$0xff] }
 0x529   : > { %4522 = vmatmul.mubr.f32.gmra.mrb[80].mxu1 %v8617_v56 }
 0x52a   : > { %4526 = vmatprep.mubr.f32.mxu1 %v3217_v26  ;;  %v3256_v26 = vld [vmem:[#allocation2 + $0x30] sm:$0xff] }
 0x52d   : > { %4527 = vmatmul.mubr.f32.gmra.mrb[82].mxu1 %v8620_v5 }
 0x52e   : > { %4531 = vmatprep.mubr.f32.mxu1 %v8494_v17 }
 0x531   : > { %4532 = vmatmul.mubr.f32.gmra.mrb[84].mxu1 %v8624_v38 }
 0x532   : > { %4536 = vmatprep.mubr.f32.mxu1 %v8502_v0 }
 0x535   : > { %4537 = vmatmul.mubr.f32.gmra.mrb[86].mxu1 %v8628_v4 }
 0x536   : > { %4541 = vmatprep.mubr.f32.mxu1 %v8512_v45 }
 0x539   : > { %4542 = vmatmul.mubr.f32.gmra.mrb[88].mxu1 %v8632_v41 }
 0x53a   : > { %4546 = vmatprep.mubr.f32.mxu1 %v8522_v63 }
 0x53d   : > { %4547 = vmatmul.mubr.f32.gmra.mrb[90].mxu1 %v8636_v54 }
 0x53e   : > { %4551 = vmatprep.mubr.f32.mxu1 %v8639_v12 }
 0x541   : > { %4552 = vmatmul.mubr.f32.gmra.mrb[92].mxu1 %v8642_v18 }
 0x542   : > { %4556 = vmatprep.mubr.f32.mxu1 %v8645_v19 }
 0x545   : > { %4557 = vmatmul.mubr.f32.gmra.mrb[94].mxu1 %v8648_v25 }
 0x546   : > { %4626 = vmatprep.mubr.f32.mxu1 %v8537_v3  ;;  %v9294_v3 = vld [vmem:[#allocation17_spill] sm:$0xff] }
 0x549   : > { %4627 = vmatmul.mubr.f32.vlgmr.msra.gmra.mrb[32].mxu1 %v3256_v26  ;;  %v3266_v26 = vld [vmem:[#allocation2 + $0xa8] sm:$0xff] }
 0x54a   : > { %4631 = vmatprep.mubr.f32.mxu1 %v8541_v20  ;;  %6125 = vmatpush3.bf16.msra.mxu1 %v9291_v9  ;;  %v3259_v20 = vld [vmem:[#allocation2 + $0x50] sm:$0xff] }
 0x54b   : > { %6118 = vmatprep.subr.bf16.mxu1 %v9292_v28  ;;  %v3264_v9 = vld [vmem:[#allocation2 + $0x90] sm:$0xff] }
 0x54d   : > { %4632 = vmatmul.mubr.f32.gmra.mrb[34].mxu1 %v3257_v58  ;;  %v9295_v58 = vld [vmem:[#allocation18_spill] sm:$0xff] }
 0x54e   : > { %4636 = vmatprep.mubr.f32.mxu1 %v8545_v16  ;;  %6126 = vmatpush3.bf16.msra.mxu1 %v9292_v28  ;;  %v3260_v16 = vld [vmem:[#allocation2 + $0x60] sm:$0xff]  ;;  %v3261_v28 = vld [vmem:[#allocation2 + $0x68] sm:$0xff] }
 0x54f   : > { %6119 = vmatprep.subr.bf16.mxu1 %v9293_v40 }
 0x551   : > { %4637 = vmatmul.mubr.f32.gmra.mrb[36].mxu1 %v3258_v31  ;;  %v9296_v31 = vld [vmem:[#allocation19_spill] sm:$0xff] }
 0x552   : > { %4641 = vmatprep.mubr.f32.mxu1 %v8549_v2  ;;  %6127 = vmatpush3.bf16.msra.mxu1 %v9293_v40  ;;  %v9297_v40 = vld [vmem:[#allocation20_spill] sm:$0xff]  ;;  %v3262_v2 = vld [vmem:[#allocation2 + $0x78] sm:$0xff] }
 0x553   : > { %6120 = vmatprep.subr.bf16.mxu1 %v9294_v3 }
 0x555   : > { %4642 = vmatmul.mubr.f32.gmra.mrb[38].mxu1 %v3259_v20 }
 0x556   : > { %4646 = vmatprep.mubr.f32.mxu1 %v8553_v44  ;;  %6128 = vmatpush3.bf16.msra.mxu1 %v9294_v3  ;;  %v9298_v44 = vld [vmem:[#allocation21_spill] sm:$0xff]  ;;  %v3268_v3 = vld [vmem:[#allocation2 + $0xc0] sm:$0xff] }
 0x557   : > { %6121 = vmatprep.subr.bf16.mxu1 %v9295_v58 }
 0x559   : > { %4647 = vmatmul.mubr.f32.gmra.mrb[40].mxu1 %v3260_v16 }
 0x55a   : > { %4651 = vmatprep.mubr.f32.mxu1 %v8557_v35  ;;  %6129 = vmatpush3.bf16.msra.mxu1 %v9295_v58  ;;  %v3263_v35 = vld [vmem:[#allocation2 + $0x80] sm:$0xff] }
 0x55b   : > { %6122 = vmatprep.subr.bf16.mxu1 %v9296_v31 }
 0x55d   : > { %4652 = vmatmul.mubr.f32.gmra.mrb[42].mxu1 %v3261_v28 }
 0x55e   : > { %4656 = vmatprep.mubr.f32.mxu1 %v8561_v15  ;;  %6130 = vmatpush3.bf16.msra.mxu1 %v9296_v31  ;;  %v3265_v15 = vld [vmem:[#allocation2 + $0x98] sm:$0xff] }
 0x55f   : > { %6123 = vmatprep.subr.bf16.mxu1 %v9297_v40 }
 0x561   : > { %4657 = vmatmul.mubr.f32.gmra.mrb[44].mxu1 %v3262_v2 }
 0x562   : > { %4661 = vmatprep.mubr.f32.mxu1 %v8565_v32  ;;  %6131 = vmatpush3.bf16.msra.mxu1 %v9297_v40  ;;  %v3267_v32 = vld [vmem:[#allocation2 + $0xb0] sm:$0xff] }
 0x563   : > { %6124 = vmatprep.subr.bf16.mxu1 %v9298_v44 }
 0x565   : > { %4662 = vmatmul.mubr.f32.gmra.mrb[46].mxu1 %v3263_v35 }
 0x566   : > { %4666 = vmatprep.mubr.f32.mxu1 %v8569_v61  ;;  %6132 = vmatpush3.bf16.msra.mxu1 %v9298_v44  ;;  %v3269_v61 = vld [vmem:[#allocation2 + $0xc8] sm:$0xff] }
 0x569   : > { %4667 = vmatmul.mubr.f32.gmra.mrb[48].mxu1 %v3264_v9 }
 0x56a   : > { %4671 = vmatprep.mubr.f32.mxu1 %v8573_v24  ;;  %v3270_v24 = vld [vmem:[#allocation2 + $0xd8] sm:$0xff] }
 0x56d   : > { %4672 = vmatmul.mubr.f32.gmra.mrb[50].mxu1 %v3265_v15 }
 0x56e   : > { %4676 = vmatprep.mubr.f32.mxu1 %v8577_v62  ;;  %v3271_v62 = vld [vmem:[#allocation2 + $0xe0] sm:$0xff] }
 0x571   : > { %4677 = vmatmul.mubr.f32.gmra.mrb[52].mxu1 %v3266_v26 }
 0x572   : > { %4681 = vmatprep.mubr.f32.mxu1 %v8581_v51  ;;  %v3272_v51 = vld [vmem:[#allocation2 + $0xf0] sm:$0xff] }
 0x575   : > { %4682 = vmatmul.mubr.f32.gmra.mrb[54].mxu1 %v3267_v32 }
 0x576   : > { %4686 = vmatprep.mubr.f32.mxu1 %v8585_v52  ;;  %v3273_v52 = vld [vmem:[#allocation2 + $0xf8] sm:$0xff] }
 0x579   : > { %4687 = vmatmul.mubr.f32.gmra.mrb[56].mxu1 %v3268_v3 }
 0x57a   : > { %4691 = vmatprep.mubr.f32.mxu1 %v8589_v14  ;;  %v3274_v14 = vld [vmem:[#allocation2 + $0x108] sm:$0xff] }
 0x57d   : > { %4692 = vmatmul.mubr.f32.gmra.mrb[58].mxu1 %v3269_v61 }
 0x57e   : > { %4696 = vmatprep.mubr.f32.mxu1 %v8593_v30  ;;  %v3275_v30 = vld [vmem:[#allocation2 + $0x110] sm:$0xff] }
 0x581   : > { %4697 = vmatmul.mubr.f32.gmra.mrb[60].mxu1 %v3270_v24 }
 0x582   : > { %4701 = vmatprep.mubr.f32.mxu1 %v8596_v13  ;;  %v3276_v13 = vld [vmem:[#allocation2 + $0x120] sm:$0xff] }
 0x585   : > { %4702 = vmatmul.mubr.f32.gmra.mrb[62].mxu1 %v3271_v62 }
 0x586   : > { %4706 = vmatprep.mubr.f32.mxu1 %v8599_v6  ;;  %v3277_v6 = vld [vmem:[#allocation2 + $0x128] sm:$0xff] }
 0x589   : > { %4707 = vmatmul.mubr.f32.gmra.mrb[64].mxu1 %v3272_v51 }
 0x58a   : > { %4711 = vmatprep.mubr.f32.mxu1 %v8602_v50  ;;  %v3278_v50 = vld [vmem:[#allocation2 + $0x138] sm:$0xff] }
 0x58d   : > { %4712 = vmatmul.mubr.f32.gmra.mrb[66].mxu1 %v3273_v52 }
 0x58e   : > { %4716 = vmatprep.mubr.f32.mxu1 %v8605_v8  ;;  %v3279_v8 = vld [vmem:[#allocation2 + $0x140] sm:$0xff] }
 0x591   : > { %4717 = vmatmul.mubr.f32.gmra.mrb[68].mxu1 %v3274_v14 }
 0x592   : > { %4721 = vmatprep.mubr.f32.mxu1 %v8608_v49  ;;  %v3280_v49 = vld [vmem:[#allocation2 + $0x150] sm:$0xff] }
 0x595   : > { %4722 = vmatmul.mubr.f32.gmra.mrb[70].mxu1 %v3275_v30 }
 0x596   : > { %4726 = vmatprep.mubr.f32.mxu1 %v8611_v43  ;;  %v3281_v43 = vld [vmem:[#allocation2 + $0x158] sm:$0xff] }
 0x599   : > { %4727 = vmatmul.mubr.f32.gmra.mrb[72].mxu1 %v3276_v13 }
 0x59a   : > { %4731 = vmatprep.mubr.f32.mxu1 %v8614_v37  ;;  %v3282_v37 = vld [vmem:[#allocation2 + $0x168] sm:$0xff] }
 0x59d   : > { %4732 = vmatmul.mubr.f32.gmra.mrb[74].mxu1 %v3277_v6 }
 0x59e   : > { %4736 = vmatprep.mubr.f32.mxu1 %v8617_v56  ;;  %v3283_v56 = vld [vmem:[#allocation2 + $0x170] sm:$0xff] }
 0x5a1   : > { %4737 = vmatmul.mubr.f32.gmra.mrb[76].mxu1 %v3278_v50 }
 0x5a2   : > { %4741 = vmatprep.mubr.f32.mxu1 %v8620_v5  ;;  %v3350_v5 = vld [vmem:[#allocation2 + $0x199] sm:$0xff] }
 0x5a5   : > { %4742 = vmatmul.mubr.f32.gmra.mrb[78].mxu1 %v3279_v8 }
 0x5a6   : > { %4746 = vmatprep.mubr.f32.mxu1 %v8624_v38  ;;  %v3286_v38 = vld [vmem:[#allocation2 + $0x198] sm:$0xff] }
 0x5a9   : > { %4747 = vmatmul.mubr.f32.gmra.mrb[80].mxu1 %v3280_v49 }
 0x5aa   : > { %4751 = vmatprep.mubr.f32.mxu1 %v8628_v4  ;;  %v3351_v4 = vld [vmem:[#allocation2 + $0x1a1] sm:$0xff] }
 0x5ad   : > { %4752 = vmatmul.mubr.f32.gmra.mrb[82].mxu1 %v3281_v43 }
 0x5ae   : > { %4756 = vmatprep.mubr.f32.mxu1 %v8632_v41  ;;  %v3287_v41 = vld [vmem:[#allocation2 + $0x1a0] sm:$0xff] }
 0x5b1   : > { %4757 = vmatmul.mubr.f32.gmra.mrb[84].mxu1 %v3282_v37 }
 0x5b2   : > { %4761 = vmatprep.mubr.f32.mxu1 %v8636_v54  ;;  %v8707_v54 = vld [vmem:[%s9192_s4] ss:$0 sm:$0xff] }
 0x5b5   : > { %4762 = vmatmul.mubr.f32.gmra.mrb[86].mxu1 %v3283_v56 }
 0x5b6   : > { %4766 = vmatprep.mubr.f32.mxu1 %v8642_v18 }
 0x5b9   : > { %4767 = vmatmul.mubr.f32.gmra.mrb[88].mxu1 %v8507_v53  ;;  %v3414_v53 = vld [vmem:[#allocation2 + $0x19a] sm:$0xff] }
 0x5ba   : > { %4771 = vmatprep.mubr.f32.mxu1 %v8648_v25 }
 0x5bd   : > { %4772 = vmatmul.mubr.f32.gmra.mrb[90].mxu1 %v8517_v27  ;;  %v3415_v27 = vld [vmem:[#allocation2 + $0x1a2] sm:$0xff] }
 0x5be   : > { %4776 = vmatprep.mubr.f32.mxu1 %v3350_v5 }
 0x5c1   : > { %4777 = vmatmul.mubr.f32.gmra.mrb[92].mxu1 %v3286_v38 }
 0x5c2   : > { %4781 = vmatprep.mubr.f32.mxu1 %v3351_v4 }
 0x5c5   : > { %4782 = vmatmul.mubr.f32.gmra.mrb[94].mxu1 %v3287_v41 }
 0x5c6   : > { %5657 = vmatprep.mubr.f32.mxu1 %v8494_v17 }
 0x5c9   : > { %5658 = vmatmul.mubr.f32.vlgmr.msra.gmra.mrb[96].mxu1 %v8502_v0 }
 0x5ca   : > { %5660 = vmatprep.mubr.f32.mxu1 %v8512_v45 }
 0x5cd   : > { %5661 = vmatmul.mubr.f32.gmra.mrb[98].mxu1 %v8522_v63 }
 0x5ce   : > { %5663 = vmatprep.mubr.f32.mxu1 %v8639_v12 }
 0x5d1   : > { %5664 = vmatmul.mubr.f32.gmra.mrb[100].mxu1 %v8645_v19 }
 0x5d2   : > { %5666 = vmatprep.mubr.f32.mxu1 %v3414_v53 }
 0x5d5   : > { %5667 = vmatmul.mubr.f32.gmra.mrb[102].mxu1 %v3415_v27 }
 0x61c   : > { %v4628_v17 = vpop.f32.mrb[32].mxu1 }
 0x61d   : > { %v6165_v0 = vadd.f32 %v8707_v54, %v4628_v17  ;;  %v4630_v18 = vpop.f32.mrb[33].mxu1 }
 0x61f   : > { %v8711_v45 = vadd.f32 %v6165_v0, %v8455_v11 }
 0x620   : > { %v4633_v63 = vpop.f32.mrb[34].mxu1 }
 0x621   : > { %v6166_v12 = vadd.f32 %v8707_v54, %v4633_v63  ;;  %v4635_v19 = vpop.f32.mrb[35].mxu1  ;;  %v5049_v27 = vmul.f32 %v8711_v45, %v8711_v45 }
 0x623   : > { %v8715_v25 = vadd.f32 %v6166_v12, %v8452_v55 }
 0x624   : > { %v4638_v20 = vpop.f32.mrb[36].mxu1 }
 0x625   : > { %v6167_v58 = vadd.f32 %v8707_v54, %v4638_v20  ;;  %v4640_v16 = vpop.f32.mrb[37].mxu1  ;;  %v5050_v41 = vmul.f32 %v8715_v25, %v8715_v25 }
 0x627   : > { %v8719_v31 = vadd.f32 %v6167_v58, %v8461_v33  ;;  %v5081_v18 = vadd.f32 %v5050_v41, %v5049_v27 }
 0x628   : > { %v4643_v28 = vpop.f32.mrb[38].mxu1 }
 0x629   : > { %v6168_v40 = vadd.f32 %v8707_v54, %v4643_v28  ;;  %v4645_v2 = vpop.f32.mrb[39].mxu1  ;;  %v5051_v17 = vmul.f32 %v8719_v31, %v8719_v31 }
 0x62b   : > { %v8723_v11 = vadd.f32 %v6168_v40, %v8458_v34  ;;  %v5082_v58 = vadd.f32 %v5081_v18, %v5051_v17 }
 0x62c   : > { %v4648_v44 = vpop.f32.mrb[40].mxu1 }
 0x62d   : > { %v6169_v35 = vadd.f32 %v8707_v54, %v4648_v44  ;;  %v4650_v9 = vpop.f32.mrb[41].mxu1  ;;  %v5052_v12 = vmul.f32 %v8723_v11, %v8723_v11 }
 0x62f   : > { %v8727_v55 = vadd.f32 %v6169_v35, %v8467_v10  ;;  %v5083_v2 = vadd.f32 %v5082_v58, %v5052_v12 }
 0x630   : > { %v4653_v15 = vpop.f32.mrb[42].mxu1 }
 0x631   : > { %v6170_v26 = vadd.f32 %v8707_v54, %v4653_v15  ;;  %v4655_v32 = vpop.f32.mrb[43].mxu1  ;;  %v5053_v28 = vmul.f32 %v8727_v55, %v8727_v55 }
 0x633   : > { %v8731_v33 = vadd.f32 %v6170_v26, %v8464_v42  ;;  %v5084_v26 = vadd.f32 %v5083_v2, %v5053_v28 }
 0x634   : > { %v4658_v3 = vpop.f32.mrb[44].mxu1 }
 0x635   : > { %v6171_v61 = vadd.f32 %v8707_v54, %v4658_v3  ;;  %v4660_v24 = vpop.f32.mrb[45].mxu1  ;;  %v5054_v35 = vmul.f32 %v8731_v33, %v8731_v33 }
 0x637   : > { %v8735_v34 = vadd.f32 %v6171_v61, %v8473_v21  ;;  %v5085_v24 = vadd.f32 %v5084_v26, %v5054_v35 }
 0x638   : > { %v4663_v62 = vpop.f32.mrb[46].mxu1 }
 0x639   : > { %v6172_v51 = vadd.f32 %v8707_v54, %v4663_v62  ;;  %v4665_v52 = vpop.f32.mrb[47].mxu1  ;;  %v5055_v3 = vmul.f32 %v8735_v34, %v8735_v34 }
 0x63b   : > { %v8739_v10 = vadd.f32 %v6172_v51, %v8470_v48 }
 0x63c   : > { %v4668_v14 = vpop.f32.mrb[48].mxu1 }
 0x63d   : > { %v6173_v30 = vadd.f32 %v8707_v54, %v4668_v14  ;;  %v4670_v13 = vpop.f32.mrb[49].mxu1  ;;  %v5056_v51 = vmul.f32 %v8739_v10, %v8739_v10 }
 0x63f   : > { %v8743_v42 = vadd.f32 %v6173_v30, %v8479_v36  ;;  %v5086_v30 = vadd.f32 %v5085_v24, %v5055_v3 }
 0x640   : > { %v4673_v6 = vpop.f32.mrb[50].mxu1 }
 0x641   : > { %v6174_v50 = vadd.f32 %v8707_v54, %v4673_v6  ;;  %v4675_v8 = vpop.f32.mrb[51].mxu1  ;;  %v5057_v6 = vmul.f32 %v8743_v42, %v8743_v42 }
 0x642   : > { %v5087_v8 = vadd.f32 %v5086_v30, %v5056_v51 }
 0x643   : > { %v8747_v21 = vadd.f32 %v6174_v50, %v8476_v47 }
 0x644   : > { %v4678_v49 = vpop.f32.mrb[52].mxu1 }
 0x645   : > { %v6175_v43 = vadd.f32 %v8707_v54, %v4678_v49  ;;  %v4680_v37 = vpop.f32.mrb[53].mxu1 }
 0x647   : > { %v8751_v48 = vadd.f32 %v6175_v43, %v8485_v46  ;;  %v5012_v46 = vadd.f32 %v8715_v25, %v8711_v45  ;;  %v5058_v43 = vmul.f32 %v8747_v21, %v8747_v21 }
 0x648   : > { %v4683_v56 = vpop.f32.mrb[54].mxu1 }
 0x649   : > { %v6176_v5 = vadd.f32 %v8707_v54, %v4683_v56  ;;  %v4685_v38 = vpop.f32.mrb[55].mxu1  ;;  %v5013_v63 = vadd.f32 %v5012_v46, %v8719_v31 }
 0x64b   : > { %v8755_v36 = vadd.f32 %v6176_v5, %v8482_v60  ;;  %v5014_v16 = vadd.f32 %v5013_v63, %v8723_v11  ;;  %v5088_v5 = vadd.f32 %v5087_v8, %v5057_v6 }
 0x64c   : > { %v4688_v4 = vpop.f32.mrb[56].mxu1 }
 0x64d   : > { %v6177_v47 = vadd.f32 %v8707_v54, %v4688_v4  ;;  %v4690_v53 = vpop.f32.mrb[57].mxu1  ;;  %v5015_v44 = vadd.f32 %v5014_v16, %v8727_v55  ;;  %v5059_v4 = vmul.f32 %v8751_v48, %v8751_v48  ;;  %v5060_v27 = vmul.f32 %v8755_v36, %v8755_v36 }
 0x64f   : > { %v8767_v0 = vadd.f32 %v6177_v47, %v8491_v1  ;;  %v5016_v32 = vadd.f32 %v5015_v44, %v8731_v33  ;;  %v5089_v47 = vadd.f32 %v5088_v5, %v5058_v43  ;;  %v9299_v43 = vld [vmem:[#allocation23_spill] sm:$0xff] }
 0x650   : > { %v4693_v60 = vpop.f32.mrb[58].mxu1 }
 0x651   : > { %v6178_v19 = vadd.f32 %v8707_v54, %v4693_v60  ;;  %v4695_v20 = vpop.f32.mrb[59].mxu1  ;;  %v5017_v62 = vadd.f32 %v5016_v32, %v8735_v34  ;;  %v5090_v60 = vadd.f32 %v5089_v47, %v5059_v4  ;;  %v5061_v63 = vmul.f32 %v8767_v0, %v8767_v0 }
 0x653   : > { %v8777_v40 = vadd.f32 %v6178_v19, %v8488_v7  ;;  %v5018_v13 = vadd.f32 %v5017_v62, %v8739_v10  ;;  %v5091_v19 = vadd.f32 %v5090_v60, %v5060_v27 }
 0x654   : > { %v4698_v1 = vpop.f32.mrb[60].mxu1 }
 0x655   : > { %v6179_v9 = vadd.f32 %v8707_v54, %v4698_v1  ;;  %v4700_v15 = vpop.f32.mrb[61].mxu1  ;;  %v5019_v49 = vadd.f32 %v5018_v13, %v8743_v42  ;;  %v5062_v58 = vmul.f32 %v8777_v40, %v8777_v40  ;;  %v5092_v1 = vadd.f32 %v5091_v19, %v5061_v63 }
 0x657   : > { %v8787_v61 = vadd.f32 %v6179_v9, %v8499_v23  ;;  %v5020_v38 = vadd.f32 %v5019_v49, %v8747_v21  ;;  %v5093_v9 = vadd.f32 %v5092_v1, %v5062_v58 }
 0x658   : > { %v4703_v7 = vpop.f32.mrb[62].mxu1 }
 0x659   : > { %v6180_v52 = vadd.f32 %v8707_v54, %v4703_v7  ;;  %v4705_v14 = vpop.f32.mrb[63].mxu1  ;;  %v5021_v53 = vadd.f32 %v5020_v38, %v8751_v48  ;;  %v5063_v44 = vmul.f32 %v8787_v61, %v8787_v61 }
 0x65b   : > { %v8797_v50 = vadd.f32 %v6180_v52, %v8496_v29  ;;  %v5022_v18 = vadd.f32 %v5021_v53, %v8755_v36  ;;  %v5094_v7 = vadd.f32 %v5093_v9, %v5063_v44 }
 0x65c   : > { %v4708_v23 = vpop.f32.mrb[64].mxu1 }
 0x65d   : > { %v6181_v37 = vadd.f32 %v8707_v54, %v4708_v23  ;;  %v4710_v56 = vpop.f32.mrb[65].mxu1  ;;  %v5023_v20 = vadd.f32 %v5022_v18, %v8767_v0  ;;  %v5064_v26 = vmul.f32 %v8797_v50, %v8797_v50 }
 0x65f   : > { %v8807_v41 = vadd.f32 %v6181_v37, %v8509_v39  ;;  %v5024_v2 = vadd.f32 %v5023_v20, %v8777_v40  ;;  %v5095_v52 = vadd.f32 %v5094_v7, %v5064_v26 }
 0x660   : > { %v4713_v29 = vpop.f32.mrb[66].mxu1 }
 0x661   : > { %v6182_v46 = vadd.f32 %v8707_v54, %v4713_v29  ;;  %v4715_v17 = vpop.f32.mrb[67].mxu1  ;;  %v5025_v15 = vadd.f32 %v5024_v2, %v8787_v61  ;;  %v5065_v62 = vmul.f32 %v8807_v41, %v8807_v41 }
 0x663   : > { %v8817_v12 = vadd.f32 %v6182_v46, %v8504_v59  ;;  %v5026_v24 = vadd.f32 %v5025_v15, %v8797_v50  ;;  %v5096_v23 = vadd.f32 %v5095_v52, %v5065_v62  ;;  %v9300_v46 = vld [vmem:[#allocation22_spill] sm:$0xff] }
 0x664   : > { %v4718_v39 = vpop.f32.mrb[68].mxu1 }
 0x665   : > { %v6183_v16 = vadd.f32 %v8707_v54, %v4718_v39  ;;  %v4720_v28 = vpop.f32.mrb[69].mxu1  ;;  %v5027_v14 = vadd.f32 %v5026_v24, %v8807_v41  ;;  %v5066_v30 = vmul.f32 %v8817_v12, %v8817_v12 }
 0x666   : > { %v9301_v28 = vld [vmem:[#allocation25_spill] sm:$0xff] }
 0x667   : > { %v8827_v35 = vadd.f32 %v6183_v16, %v8519_v22  ;;  %v5028_v8 = vadd.f32 %v5027_v14, %v8817_v12  ;;  %v5097_v56 = vadd.f32 %v5096_v23, %v5066_v30 }
 0x668   : > { %v4723_v59 = vpop.f32.mrb[70].mxu1 }
 0x669   : > { %v6184_v32 = vadd.f32 %v8707_v54, %v4723_v59  ;;  %v4725_v3 = vpop.f32.mrb[71].mxu1  ;;  %v5067_v49 = vmul.f32 %v8827_v35, %v8827_v35  ;;  %v5029_v5 = vadd.f32 %v5028_v8, %v8827_v35 }
 0x66a   : > { %v9302_v3 = vld [vmem:[#allocation24_spill] sm:$0xff] }
 0x66b   : > { %v8837_v51 = vadd.f32 %v6184_v32, %v8514_v57  ;;  %v5098_v47 = vadd.f32 %v5097_v56, %v5067_v49 }
 0x66c   : > { %v4728_v22 = vpop.f32.mrb[72].mxu1 }
 0x66d   : > { %v6185_v13 = vadd.f32 %v8707_v54, %v4728_v22  ;;  %v4730_v6 = vpop.f32.mrb[73].mxu1  ;;  %v5068_v38 = vmul.f32 %v8837_v51, %v8837_v51  ;;  %v5030_v53 = vadd.f32 %v5029_v5, %v8837_v51 }
 0x66f   : > { %v8847_v37 = vadd.f32 %v6185_v13, %v9299_v43  ;;  %v5099_v18 = vadd.f32 %v5098_v47, %v5068_v38 }
 0x670   : > { %v4733_v57 = vpop.f32.mrb[74].mxu1 }
 0x671   : > { %v6186_v4 = vadd.f32 %v8707_v54, %v4733_v57  ;;  %v4735_v29 = vpop.f32.mrb[75].mxu1  ;;  %v5069_v27 = vmul.f32 %v8847_v37, %v8847_v37  ;;  %v5031_v63 = vadd.f32 %v5030_v53, %v8847_v37 }
 0x673   : > { %v8857_v17 = vadd.f32 %v6186_v4, %v9300_v46  ;;  %v5100_v58 = vadd.f32 %v5099_v18, %v5069_v27 }
 0x674   : > { %v4738_v60 = vpop.f32.mrb[76].mxu1 }
 0x675   : > { %v5070_v39 = vmul.f32 %v8857_v17, %v8857_v17  ;;  %v6187_v19 = vadd.f32 %v8707_v54, %v4738_v60  ;;  %v4740_v20 = vpop.f32.mrb[77].mxu1  ;;  %v5032_v16 = vadd.f32 %v5031_v63, %v8857_v17 }
 0x677   : > { %v8865_v1 = vadd.f32 %v6187_v19, %v9301_v28  ;;  %v5101_v44 = vadd.f32 %v5100_v58, %v5070_v39 }
 0x678   : > { %v4743_v2 = vpop.f32.mrb[78].mxu1 }
 0x679   : > { %v5033_v59 = vadd.f32 %v5032_v16, %v8865_v1  ;;  %v5071_v9 = vmul.f32 %v8865_v1, %v8865_v1  ;;  %v6188_v15 = vadd.f32 %v8707_v54, %v4743_v2  ;;  %v4745_v26 = vpop.f32.mrb[79].mxu1 }
 0x67b   : > { %v5102_v32 = vadd.f32 %v5101_v44, %v5071_v9  ;;  %v8872_v7 = vadd.f32 %v6188_v15, %v9302_v3 }
 0x67c   : > { %v4748_v24 = vpop.f32.mrb[80].mxu1 }
 0x67d   : > { %v5072_v62 = vmul.f32 %v8872_v7, %v8872_v7  ;;  %v4750_v22 = vpop.f32.mrb[81].mxu1  ;;  %v5034_v52 = vadd.f32 %v5033_v59, %v8872_v7  ;;  %v6189_v27 = vadd.f32 %v8707_v54, %v4748_v24 }
 0x67f   : > { %v5103_v14 = vadd.f32 %v5102_v32, %v5072_v62 }
 0x680   : > { %v4753_v30 = vpop.f32.mrb[82].mxu1 }
 0x681   : > { %v4755_v13 = vpop.f32.mrb[83].mxu1  ;;  %v6190_v53 = vadd.f32 %v8707_v54, %v4753_v30 }
 0x684   : > { %v4758_v6 = vpop.f32.mrb[84].mxu1 }
 0x685   : > { %v4760_v23 = vpop.f32.mrb[85].mxu1  ;;  %v6191_v19 = vadd.f32 %v8707_v54, %v4758_v6 }
 0x688   : > { %v4763_v8 = vpop.f32.mrb[86].mxu1 }
 0x689   : > { %v4765_v49 = vpop.f32.mrb[87].mxu1  ;;  %v6192_v39 = vadd.f32 %v8707_v54, %v4763_v8 }
 0x68c   : > { %v4768_v43 = vpop.f32.mrb[88].mxu1 }
 0x68d   : > { %v4770_v57 = vpop.f32.mrb[89].mxu1  ;;  %v6193_v32 = vadd.f32 %v8707_v54, %v4768_v43 }
 0x690   : > { %v4773_v56 = vpop.f32.mrb[90].mxu1 }
 0x691   : > { %v4775_v5 = vpop.f32.mrb[91].mxu1  ;;  %v6194_v26 = vadd.f32 %v8707_v54, %v4773_v56 }
 0x694   : > { %v4778_v38 = vpop.f32.mrb[92].mxu1 }
 0x695   : > { %v4780_v4 = vpop.f32.mrb[93].mxu1  ;;  %v6195_v49 = vadd.f32 %v8707_v54, %v4778_v38 }
 0x698   : > { %v4783_v29 = vpop.f32.mrb[94].mxu1 }
 0x699   : > { %v4785_v47 = vpop.f32.mrb[95].mxu1  ;;  %v6196_v8 = vadd.f32 %v8707_v54, %v4783_v29 }
 0x69c   : > { %v5659_v46 = vpop.f32.mrb[96].mxu1 }
 0x69d   : > { %v8879_v60 = vadd.f32 %v6190_v53, %v5659_v46  ;;  %v4973_v18 = vpop.f32.mrb[97].mxu1 }
 0x69e   : > { %v8881_v63 = vadd.f32 %v6189_v27, %v4973_v18 }
 0x69f   : > { %v5074_v44 = vmul.f32 %v8879_v60, %v8879_v60 }
 0x6a0   : > { %v5035_v20 = vadd.f32 %v5034_v52, %v8881_v63  ;;  %v5073_v58 = vmul.f32 %v8881_v63, %v8881_v63  ;;  %v5662_v16 = vpop.f32.mrb[98].mxu1 }
 0x6a1   : > { %v8888_v28 = vadd.f32 %v6192_v39, %v5662_v16  ;;  %v4983_v2 = vpop.f32.mrb[99].mxu1 }
 0x6a2   : > { %v5104_v59 = vadd.f32 %v5103_v14, %v5073_v58  ;;  %v8892_v9 = vadd.f32 %v6191_v19, %v4983_v2  ;;  %v5036_v15 = vadd.f32 %v5035_v20, %v8879_v60 }
 0x6a3   : > { %v5076_v14 = vmul.f32 %v8888_v28, %v8888_v28 }
 0x6a4   : > { %v5037_v3 = vadd.f32 %v5036_v15, %v8892_v9  ;;  %v5075_v24 = vmul.f32 %v8892_v9, %v8892_v9  ;;  %v5105_v62 = vadd.f32 %v5104_v59, %v5074_v44  ;;  %v5665_v22 = vpop.f32.mrb[100].mxu1 }
 0x6a5   : > { %v8900_v52 = vadd.f32 %v6194_v26, %v5665_v22  ;;  %v4993_v30 = vpop.f32.mrb[101].mxu1 }
 0x6a6   : > { %v5106_v13 = vadd.f32 %v5105_v62, %v5075_v24  ;;  %v8904_v6 = vadd.f32 %v6193_v32, %v4993_v30  ;;  %v5038_v23 = vadd.f32 %v5037_v3, %v8888_v28 }
 0x6a7   : > { %v5078_v53 = vmul.f32 %v8900_v52, %v8900_v52 }
 0x6a8   : > { %v5039_v43 = vadd.f32 %v5038_v23, %v8904_v6  ;;  %v5077_v57 = vmul.f32 %v8904_v6, %v8904_v6  ;;  %v5107_v56 = vadd.f32 %v5106_v13, %v5076_v14  ;;  %v5668_v5 = vpop.f32.mrb[102].mxu1 }
 0x6a9   : > { %v8912_v4 = vadd.f32 %v6196_v8, %v5668_v5  ;;  %v5003_v47 = vpop.f32.mrb[103].mxu1 }
 0x6aa   : > { %v5108_v27 = vadd.f32 %v5107_v56, %v5077_v57  ;;  %v8916_v46 = vadd.f32 %v6195_v49, %v5003_v47  ;;  %v5040_v29 = vadd.f32 %v5039_v43, %v8900_v52 }
 0x6ab   : > { %v5080_v39 = vmul.f32 %v8912_v4, %v8912_v4 }
 0x6ac   : > { %v5041_v54 = vadd.f32 %v5040_v29, %v8916_v46  ;;  %v5079_v38 = vmul.f32 %v8916_v46, %v8916_v46  ;;  %v5109_v18 = vadd.f32 %v5108_v27, %v5078_v53 }
 0x6ae   : > { %v5042_v19 = vadd.f32 %v5041_v54, %v8912_v4  ;;  %v5110_v20 = vadd.f32 %v5109_v18, %v5079_v38 }
 0x6b0   : > { %v5043_v58 = vrot.slane %v5042_v19, 4  ;;  %v5111_v16 = vadd.f32 %v5110_v20, %v5080_v39 }
 0x6b2   : > { %v5044_v2 = vadd.f32 %v5043_v58, %v5042_v19  ;;  %v5112_v44 = vrot.slane %v5111_v16, 4 }
 0x6b4   : > { %v5045_v59 = vrot.slane %v5044_v2, 2  ;;  %v5113_v15 = vadd.f32 %v5112_v44, %v5111_v16 }
 0x6b6   : > { %v5046_v26 = vadd.f32 %v5045_v59, %v5044_v2  ;;  %v5114_v32 = vrot.slane %v5113_v15, 2 }
 0x6b8   : > { %v5047_v3 = vrot.slane %v5046_v26, 1  ;;  %v5115_v24 = vadd.f32 %v5114_v32, %v5113_v15 }
 0x6ba   : > { %v5048_v62 = vadd.f32 %v5047_v3, %v5046_v26  ;;  %v5116_v22 = vrot.slane %v5115_v24, 1 }
 0x6bc   : > { %v5117_v30 = vadd.f32 %v5116_v22, %v5115_v24  ;;  %v8925_v14 = vmul.f32 0.00390625, %v5048_v62 }
 0x6be   : > { %v5119_v13 = vmul.f32 0.00390625, %v5117_v30  ;;  %v5120_v23 = vmul.f32 %v8925_v14, %v8925_v14  ;;  %v5153_v8 = vsub.f32 %v8916_v46, %v8925_v14  ;;  %v5144_v56 = vsub.f32 %v8857_v17, %v8925_v14  ;;  %v5189_v30 = vld [vmem:[%s7066_s12] sm:$0xff] }
 0x6bf   : > { %v5145_v5 = vsub.f32 %v8865_v1, %v8925_v14  ;;  %v5146_v47 = vsub.f32 %v8872_v7, %v8925_v14  ;;  %v5147_v53 = vsub.f32 %v8881_v63, %v8925_v14  ;;  %v5148_v27 = vsub.f32 %v8879_v60, %v8925_v14  ;;  %v5203_v1 = vld [vmem:[%s7066_s12 + $0x70] sm:$0xff] }
 0x6c0   : > { %v5121_v49 = vsub.f32 %v5119_v13, %v5120_v23  ;;  %v5149_v46 = vsub.f32 %v8892_v9, %v8925_v14  ;;  %v5150_v29 = vsub.f32 %v8888_v28, %v8925_v14  ;;  %v5151_v54 = vsub.f32 %v8904_v6, %v8925_v14  ;;  %v5190_v13 = vld [vmem:[%s7066_s12 + $0x8] sm:$0xff]  ;;  %v5205_v9 = vld [vmem:[%s7066_s12 + $0x80] sm:$0xff] }
 0x6c1   : > { %v5152_v38 = vsub.f32 %v8900_v52, %v8925_v14  ;;  %v5154_v18 = vsub.f32 %v8912_v4, %v8925_v14  ;;  %v5123_v39 = vsub.f32 %v8711_v45, %v8925_v14  ;;  %v5124_v19 = vsub.f32 %v8715_v25, %v8925_v14  ;;  %v5209_v52 = vld [vmem:[%s7066_s12 + $0xa0] sm:$0xff]  ;;  %v5212_v4 = vld [vmem:[%s7066_s12 + $0xb8] sm:$0xff] }
 0x6c2   : > { %v5122_v43 = vmax.f32 %v5121_v49, 0.0  ;;  %v5125_v20 = vsub.f32 %v8719_v31, %v8925_v14  ;;  %v5126_v58 = vsub.f32 %v8723_v11, %v8925_v14  ;;  %v5127_v16 = vsub.f32 %v8727_v55, %v8925_v14 }
 0x6c3   : > { %v5128_v2 = vsub.f32 %v8731_v33, %v8925_v14  ;;  %v5129_v44 = vsub.f32 %v8735_v34, %v8925_v14  ;;  %v5130_v45 = vsub.f32 %v8739_v10, %v8925_v14  ;;  %v5131_v25 = vsub.f32 %v8743_v42, %v8925_v14 }
 0x6c4   : > { %v5155_v57 = vadd.f32 1e-05, %v5122_v43  ;;  %v5132_v31 = vsub.f32 %v8747_v21, %v8925_v14  ;;  %v5133_v11 = vsub.f32 %v8751_v48, %v8925_v14  ;;  %v5134_v55 = vsub.f32 %v8755_v36, %v8925_v14  ;;  %v5219_v48 = vld [vmem:[%s7066_s12 + $0xf0] sm:$0xff] }
 0x6c5   : > { %v5135_v33 = vsub.f32 %v8767_v0, %v8925_v14  ;;  %v5136_v34 = vsub.f32 %v8777_v40, %v8925_v14  ;;  %v5137_v10 = vsub.f32 %v8787_v61, %v8925_v14  ;;  %v5138_v42 = vsub.f32 %v8797_v50, %v8925_v14 }
 0x6c6   : > { %6655 = vrsqrt.f32 %v5155_v57  ;;  %v5139_v21 = vsub.f32 %v8807_v41, %v8925_v14  ;;  %v5140_v36 = vsub.f32 %v8817_v12, %v8925_v14  ;;  %v5141_v0 = vsub.f32 %v8827_v35, %v8925_v14  ;;  %v5192_v57 = vld [vmem:[%s7066_s12 + $0x18] sm:$0xff] }
 0x6c7   : > { %v5142_v40 = vsub.f32 %v8837_v51, %v8925_v14  ;;  %v5143_v61 = vsub.f32 %v8847_v37, %v8925_v14  ;;  %v5191_v37 = vld [vmem:[%s7066_s12 + $0x10] sm:$0xff]  ;;  %v5214_v14 = vld [vmem:[%s7066_s12 + $0xc8] sm:$0xff] }
 0x6d0   : > { %v6656_v59 = vpop.eup %6655 }
 0x6d1   : > { %v5187_v50 = vmul.f32 %v6656_v59, %v5153_v8  ;;  %v5157_v15 = vmul.f32 %v6656_v59, %v5123_v39  ;;  %v5158_v41 = vmul.f32 %v6656_v59, %v5124_v19  ;;  %v5159_v26 = vmul.f32 %v6656_v59, %v5125_v20  ;;  %v5193_v39 = vld [vmem:[%s7066_s12 + $0x20] sm:$0xff]  ;;  %v5194_v19 = vld [vmem:[%s7066_s12 + $0x28] sm:$0xff]  ;;  %v5195_v20 = vld [vmem:[%s7066_s12 + $0x30] sm:$0xff] }
 0x6d2   : > { %v5160_v32 = vmul.f32 %v6656_v59, %v5126_v58  ;;  %v5161_v12 = vmul.f32 %v6656_v59, %v5127_v16  ;;  %v5162_v3 = vmul.f32 %v6656_v59, %v5128_v2  ;;  %v5163_v35 = vmul.f32 %v6656_v59, %v5129_v44 }
 0x6d3   : > { %v5251_v24 = vadd.f32 %v5219_v48, %v5187_v50  ;;  %v5164_v62 = vmul.f32 %v6656_v59, %v5130_v45  ;;  %v5165_v51 = vmul.f32 %v6656_v59, %v5131_v25  ;;  %v5166_v22 = vmul.f32 %v6656_v59, %v5132_v31  ;;  %v5196_v45 = vld [vmem:[%s7066_s12 + $0x38] sm:$0xff]  ;;  %v5197_v25 = vld [vmem:[%s7066_s12 + $0x40] sm:$0xff]  ;;  %v5198_v31 = vld [vmem:[%s7066_s12 + $0x48] sm:$0xff] }
 0x6d4   : > { %v5167_v23 = vmul.f32 %v6656_v59, %v5133_v11  ;;  %v5168_v8 = vmul.f32 %v6656_v59, %v5134_v55  ;;  %v5169_v49 = vmul.f32 %v6656_v59, %v5135_v33  ;;  %v5170_v43 = vmul.f32 %v6656_v59, %v5136_v34 }
 0x6d5   : > { %5283 = vst [vmem:[%s9003_s10 + $0xf0] sm:$0xff] %v5251_v24  ;;  %v5171_v58 = vmul.f32 %v6656_v59, %v5137_v10  ;;  %v9006_v16 = vmul.f32 %v6656_v59, %v5138_v42  ;;  %v9008_v2 = vmul.f32 %v6656_v59, %v5139_v21  ;;  %v9010_v44 = vmul.f32 %v6656_v59, %v5140_v36  ;;  %v5199_v10 = vld [vmem:[%s7066_s12 + $0x50] sm:$0xff]  ;;  %v5200_v42 = vld [vmem:[%s7066_s12 + $0x58] sm:$0xff]  ;;  %v5201_v21 = vld [vmem:[%s7066_s12 + $0x60] sm:$0xff] }
 0x6d6   : > { %v5175_v11 = vmul.f32 %v6656_v59, %v5141_v0  ;;  %v9015_v55 = vmul.f32 %v6656_v59, %v5142_v40  ;;  %v9017_v33 = vmul.f32 %v6656_v59, %v5143_v61  ;;  %v9022_v34 = vmul.f32 %v6656_v59, %v5144_v56  ;;  %v5202_v0 = vld [vmem:[%s7066_s12 + $0x68] sm:$0xff] }
 0x6d7   : > { %v5179_v48 = vmul.f32 %v6656_v59, %v5145_v5  ;;  %v9033_v36 = vmul.f32 %v6656_v59, %v5146_v47  ;;  %v9038_v17 = vmul.f32 %v6656_v59, %v5147_v53  ;;  %v9043_v56 = vmul.f32 %v6656_v59, %v5148_v27  ;;  %v5204_v5 = vld [vmem:[%s7066_s12 + $0x78] sm:$0xff]  ;;  %v5206_v53 = vld [vmem:[%s7066_s12 + $0x88] sm:$0xff]  ;;  %v5207_v27 = vld [vmem:[%s7066_s12 + $0x90] sm:$0xff] }
 0x6d8   : > { %v9051_v7 = vmul.f32 %v6656_v59, %v5149_v46  ;;  %v9056_v63 = vmul.f32 %v6656_v59, %v5150_v29  ;;  %v9061_v60 = vmul.f32 %v6656_v59, %v5151_v54  ;;  %v9066_v47 = vmul.f32 %v6656_v59, %v5152_v38  ;;  %v5208_v54 = vld [vmem:[%s7066_s12 + $0x98] sm:$0xff]  ;;  %v5210_v38 = vld [vmem:[%s7066_s12 + $0xa8] sm:$0xff] }
 0x6d9   : > { %v9074_v28 = vmul.f32 %v6656_v59, %v5154_v18  ;;  %v5221_v46 = vadd.f32 %v5189_v30, %v5157_v15  ;;  %v5222_v6 = vadd.f32 %v5190_v13, %v5158_v41  ;;  %v5223_v29 = vadd.f32 %v5191_v37, %v5159_v26  ;;  %v5213_v26 = vld [vmem:[%s7066_s12 + $0xc0] sm:$0xff]  ;;  %v5220_v13 = vld [vmem:[%s7066_s12 + $0xf8] sm:$0xff] }
 0x6da   : > { %9303 = vst [vmem:[#allocation14_spill] sm:$0xff] %v9066_v47  ;;  %v5224_v40 = vadd.f32 %v5192_v57, %v5160_v32  ;;  %v5225_v61 = vadd.f32 %v5193_v39, %v5161_v12  ;;  %v5226_v50 = vadd.f32 %v5194_v19, %v5162_v3  ;;  %v5227_v24 = vadd.f32 %v5195_v20, %v5163_v35  ;;  %v5211_v47 = vld [vmem:[%s7066_s12 + $0xb0] sm:$0xff]  ;;  %v5216_v32 = vld [vmem:[%s7066_s12 + $0xd8] sm:$0xff]  ;;  %v5217_v30 = vld [vmem:[%s7066_s12 + $0xe0] sm:$0xff] }
 0x6db   : > { %v5228_v18 = vadd.f32 %v5196_v45, %v5164_v62  ;;  %v5229_v59 = vadd.f32 %v5197_v25, %v5165_v51  ;;  %v5230_v15 = vadd.f32 %v5198_v31, %v5166_v22  ;;  %v5231_v41 = vadd.f32 %v5199_v10, %v5167_v23  ;;  %5253 = vst [vmem:[%s9003_s10] sm:$0xff] %v5221_v46  ;;  %v5215_v12 = vld [vmem:[%s7066_s12 + $0xd0] sm:$0xff]  ;;  %v5218_v22 = vld [vmem:[%s7066_s12 + $0xe8] sm:$0xff] }
 0x6dc   : > { %5254 = vst [vmem:[%s9003_s10 + $0x8] sm:$0xff] %v5222_v6  ;;  %5255 = vst [vmem:[%s9003_s10 + $0x10] sm:$0xff] %v5223_v29  ;;  %v5232_v3 = vadd.f32 %v5200_v42, %v5168_v8  ;;  %v5233_v35 = vadd.f32 %v5201_v21, %v5169_v49  ;;  %v5234_v62 = vadd.f32 %v5202_v0, %v5170_v43 }
 0x6dd   : > { %v5235_v51 = vadd.f32 %v5203_v1, %v5171_v58  ;;  %5256 = vst [vmem:[%s9003_s10 + $0x18] sm:$0xff] %v5224_v40  ;;  %5257 = vst [vmem:[%s9003_s10 + $0x20] sm:$0xff] %v5225_v61  ;;  %v5236_v37 = vadd.f32 %v5204_v5, %v9006_v16  ;;  %v5237_v23 = vadd.f32 %v5205_v9, %v9008_v2 }
 0x6de   : > { %5258 = vst [vmem:[%s9003_s10 + $0x28] sm:$0xff] %v5226_v50  ;;  %5259 = vst [vmem:[%s9003_s10 + $0x30] sm:$0xff] %v5227_v24  ;;  %v5238_v8 = vadd.f32 %v5206_v53, %v9010_v44  ;;  %v5239_v49 = vadd.f32 %v5207_v27, %v5175_v11  ;;  %v5240_v43 = vadd.f32 %v5208_v54, %v9015_v55 }
 0x6df   : > { %5260 = vst [vmem:[%s9003_s10 + $0x38] sm:$0xff] %v5228_v18  ;;  %5261 = vst [vmem:[%s9003_s10 + $0x40] sm:$0xff] %v5229_v59  ;;  %v5241_v57 = vadd.f32 %v5209_v52, %v9017_v33  ;;  %v5242_v39 = vadd.f32 %v5210_v38, %v9022_v34  ;;  %v5243_v19 = vadd.f32 %v5211_v47, %v5179_v48 }
 0x6e0   : > { %5262 = vst [vmem:[%s9003_s10 + $0x48] sm:$0xff] %v5230_v15  ;;  %5263 = vst [vmem:[%s9003_s10 + $0x50] sm:$0xff] %v5231_v41  ;;  %v5244_v20 = vadd.f32 %v5212_v4, %v9033_v36  ;;  %v5245_v58 = vadd.f32 %v5213_v26, %v9038_v17  ;;  %v5246_v16 = vadd.f32 %v5214_v14, %v9043_v56 }
 0x6e1   : > { %5264 = vst [vmem:[%s9003_s10 + $0x58] sm:$0xff] %v5232_v3  ;;  %5265 = vst [vmem:[%s9003_s10 + $0x60] sm:$0xff] %v5233_v35  ;;  %v5247_v2 = vadd.f32 %v5215_v12, %v9051_v7  ;;  %v5248_v44 = vadd.f32 %v5216_v32, %v9056_v63  ;;  %v5249_v45 = vadd.f32 %v5217_v30, %v9061_v60  ;;  %v9304_v25 = vld [vmem:[#allocation14_spill] sm:$0xff] }
 0x6e2   : > { %5266 = vst [vmem:[%s9003_s10 + $0x68] sm:$0xff] %v5234_v62  ;;  %5267 = vst [vmem:[%s9003_s10 + $0x70] sm:$0xff] %v5235_v51  ;;  %v5250_v31 = vadd.f32 %v5218_v22, %v9304_v25  ;;  %v5252_v11 = vadd.f32 %v5220_v13, %v9074_v28 }
 0x6e3   : > { %5268 = vst [vmem:[%s9003_s10 + $0x78] sm:$0xff] %v5236_v37  ;;  %5269 = vst [vmem:[%s9003_s10 + $0x80] sm:$0xff] %v5237_v23 }
 0x6e4   : > { %5270 = vst [vmem:[%s9003_s10 + $0x88] sm:$0xff] %v5238_v8  ;;  %5271 = vst [vmem:[%s9003_s10 + $0x90] sm:$0xff] %v5239_v49 }
 0x6e5   : > { %5272 = vst [vmem:[%s9003_s10 + $0x98] sm:$0xff] %v5240_v43  ;;  %5273 = vst [vmem:[%s9003_s10 + $0xa0] sm:$0xff] %v5241_v57 }
 0x6e6   : > { %5274 = vst [vmem:[%s9003_s10 + $0xa8] sm:$0xff] %v5242_v39  ;;  %5275 = vst [vmem:[%s9003_s10 + $0xb0] sm:$0xff] %v5243_v19 }
 0x6e7   : > { %5276 = vst [vmem:[%s9003_s10 + $0xb8] sm:$0xff] %v5244_v20  ;;  %5277 = vst [vmem:[%s9003_s10 + $0xc0] sm:$0xff] %v5245_v58 }
 0x6e8   : > { %5278 = vst [vmem:[%s9003_s10 + $0xc8] sm:$0xff] %v5246_v16  ;;  %5279 = vst [vmem:[%s9003_s10 + $0xd0] sm:$0xff] %v5247_v2 }
 0x6e9   : > { %5280 = vst [vmem:[%s9003_s10 + $0xd8] sm:$0xff] %v5248_v44  ;;  %5281 = vst [vmem:[%s9003_s10 + $0xe0] sm:$0xff] %v5249_v45 }
 0x6ea   : > { %5282 = vst [vmem:[%s9003_s10 + $0xe8] sm:$0xff] %v5250_v31  ;;  %5284 = vst [vmem:[%s9003_s10 + $0xf8] sm:$0xff] %v5252_v11 }
 0x6eb   : > { %6781 = shalt.err (!%p6778_p1)
}
 0x6ec   : > { %s6782_s12 = scalar_lea.hbm %s9124_s11, 4096  ;;  %s6786_s15 = scalar_lea.hbm %s9193_s5, 8192 }
 0x6ed   : > { %p6783_p13 = scmp.ne.s32.totalorder %s9124_s11, %s6782_s12  ;;  %p6787_p4 = scmp.lt.u32.totalorder %s9124_s11, %s9193_s5 }
 0x6ee   : > { %p6788_p5 = scmp.lt.u32.totalorder %s6786_s15, %s6782_s12  ;;  %p6790_p11 = scmp.lt.u32.totalorder %s6782_s12, %s9124_s11 }
 0x6ef   : > { %p6784_p6 = pnand %p6783_p13, %p9305_p0 }
 0x6f0   : > { %p6789_p8 = por %p6788_p5, %p6787_p4 }
 0x6f1   : > { %p6785_p10 = pneg %p6784_p6 }
 0x6f2   : > { %p6791_p2 = por %p6790_p11, %p6789_p8 }
 0x6f4   : > { %p6792_p3 = pnand %p6791_p2, %p6785_p10 }
 0x6f6   : > { %6795 = shalt.err (!%p6792_p3)
}
 0x6f7   : > { %s6847_s28 = smov 128   ;;  %s6848_s9 = smov 8  }
 0x6f8   : > { %6591 = dma.vmem_to_hbm [thread:$0]  (%p9305_p0), %s9128_s13, 4096, %s9124_s11, %s5286_s22, %s6847_s28, %s6847_s28, %s6848_s9  }
 0x6f9 PF: > { %s5314_s30 = sand.u32 1, %s6826_s18   ;;  %p9306_p7 = scmp.ne.s32.totalorder %s9241_s25, 0 }
 0x6fa   : > { %p9307_p9 = scmp.ge.s32.totalorder %s6838_s21, 2  ;;  %s5315_s17 = scalar_lea.sflag [#allocation6], %s5314_s30 }
 0x6fc   : > { %p6605_p12 = pnand %p9307_p9, %p9306_p7 }
 0x6fe   : > { %6821 = dma.done.wait (!%p6605_p12), %s5315_s17, 4096  }
 0x6ff   : > { %6823 = vsyncadd (!%p6605_p12), %s5315_s17, 4294963200  ;;  %p19_p1 = scmp.ge.s32.totalorder %s6995_s29, 4   ;;  %s9308_s18 = smov %s6830_s19 }
 0x700   : > { %s9309_s19 = smov %s6834_s20  ;;  %s9310_s20 = smov %s7011_s27 }
 0x701   : > { %s9311_s21 = smov %s6995_s29  ;;  %21 = sbr.rel (!%p19_p1) target bundleno = 6 (0x6), region = 96 }
 0x708   :  { %5320 = vsyncpa [#allocation5], 1 }
 0x709   :  { %5322 = vsyncpa [#allocation5 + $0x1], 1 }
 0x70a   :  { %5323 = vsyncpa [#allocation8], 1 }
 0x70b   :  { %5324 = vsyncpa [#allocation6], 1 }
 0x70c   :  { %5326 = vsyncpa [#allocation6 + $0x1], 1 }

</bundles_post_ra>
